<compile_context>
chip_gen: v5e
topology: v5e:2x2
jax: 0.10.0
libtpu: 0.0.40
codegen_flags: <defaults>
</compile_context>

<pallas_src>
import functools

import jax
import jax.numpy as jnp
import numpy as np
from jax import lax
from jax.experimental import pallas as pl
from jax.experimental.pallas import tpu as pltpu


def _round_up(n, m):
  return ((n + m - 1) // m) * m


# ----------------------------------------------------------------------------
# Pallas kernel: full 2-layer bidirectional LSTM + fused relu/fc, all in VMEM.
# ----------------------------------------------------------------------------
def hecker_lstm_kernel(
    x_ref,                                        # (T, BP, C)
    wih0f_ref, whh0f_ref, b0f_ref,                # layer 0 fwd
    wih0b_ref, whh0b_ref, b0b_ref,                # layer 0 bwd
    wih1ff_ref, wih1fb_ref, whh1f_ref, b1f_ref,   # layer 1 fwd (input split fwd/bwd halves)
    wih1bf_ref, wih1bb_ref, whh1b_ref, b1b_ref,   # layer 1 bwd
    fcwf_ref, fcwb_ref,                           # fc split into fwd/bwd halves (HP, SP)
    out_ref,                                      # (T, BP, SP)
    fwd0_ref, bwd0_ref,                           # scratch: (T, BP, HP)   layer-0 outputs
    gpf_ref, gpb_ref,                             # scratch: (T, BP, 4*HP) hoisted projections
):
  T, BP, _C = x_ref.shape
  HP = whh0f_ref.shape[0]
  G = 4 * HP

  def cell(gates, c):
    # Gate order (i, f, o, g): one sigmoid on a contiguous 3*HP slab + one tanh (EUP),
    # slices land on 128-lane boundaries.
    sig = jax.nn.sigmoid(gates[:, 0:3 * HP])
    g_g = jnp.tanh(gates[:, 3 * HP:4 * HP])
    i_g = sig[:, 0:HP]
    f_g = sig[:, HP:2 * HP]
    o_g = sig[:, 2 * HP:3 * HP]
    c_new = f_g * c + i_g * g_g
    h_new = o_g * jnp.tanh(c_new)
    return h_new, c_new

  def run_layer(whh_f_ref, whh_b_ref, emit_fwd, emit_bwd):
    """Interleaved fwd + bwd recurrence; input projections already hoisted into gp*_ref."""

    def step(i, carry):
      hf, cf, hb, cb = carry
      tf = i
      tb = T - 1 - i
      # Two independent h->h chains per iteration: their MXU / EUP work overlaps.
      gates_f = (jnp.dot(hf, whh_f_ref[...], preferred_element_type=jnp.float32)
                 + gpf_ref[tf])
      gates_b = (jnp.dot(hb, whh_b_ref[...], preferred_element_type=jnp.float32)
                 + gpb_ref[tb])
      hf, cf = cell(gates_f, cf)
      hb, cb = cell(gates_b, cb)
      emit_fwd(tf, hf)
      emit_bwd(tb, hb)
      return hf, cf, hb, cb

    z = jnp.zeros((BP, HP), jnp.float32)
    # No unroll: two interleaved chains already fill the slots; avoids vreg spills at big HP.
    lax.fori_loop(0, T, step, (z, z, z, z))

  # ---- layer 0: hoisted input projections (both directions) + interleaved recurrence ----
  x_flat = x_ref[...].reshape(T * BP, _C)
  gpf_ref[...] = (jnp.dot(x_flat, wih0f_ref[...], preferred_element_type=jnp.float32)
                  + b0f_ref[...]).reshape(T, BP, G)
  gpb_ref[...] = (jnp.dot(x_flat, wih0b_ref[...], preferred_element_type=jnp.float32)
                  + b0b_ref[...]).reshape(T, BP, G)

  def store_fwd0(t, h):
    fwd0_ref[t] = h

  def store_bwd0(t, h):
    bwd0_ref[t] = h

  run_layer(whh0f_ref, whh0b_ref, store_fwd0, store_bwd0)

  # ---- layer 1: split-input projections (no lane concat) ----
  f0_flat = fwd0_ref[...].reshape(T * BP, HP)
  b0_flat = bwd0_ref[...].reshape(T * BP, HP)
  gpf_ref[...] = (jnp.dot(f0_flat, wih1ff_ref[...], preferred_element_type=jnp.float32)
                  + jnp.dot(b0_flat, wih1fb_ref[...], preferred_element_type=jnp.float32)
                  + b1f_ref[...]).reshape(T, BP, G)
  gpb_ref[...] = (jnp.dot(f0_flat, wih1bf_ref[...], preferred_element_type=jnp.float32)
                  + jnp.dot(b0_flat, wih1bb_ref[...], preferred_element_type=jnp.float32)
                  + b1b_ref[...]).reshape(T, BP, G)

  # ---- layer 1 recurrence with FUSED relu + fc epilogue ----
  # Both chains accumulate into the output, so zero-init the accumulator once.
  out_ref[...] = jnp.zeros_like(out_ref)

  def emit_fwd1(t, h):
    out_ref[t] += jnp.dot(jnp.maximum(h, 0.0), fcwf_ref[...],
                          preferred_element_type=jnp.float32)

  def emit_bwd1(t, h):
    out_ref[t] += jnp.dot(jnp.maximum(h, 0.0), fcwb_ref[...],
                          preferred_element_type=jnp.float32)

  run_layer(whh1f_ref, whh1b_ref, emit_fwd1, emit_bwd1)


# ----------------------------------------------------------------------------
# Wrapper
# ----------------------------------------------------------------------------
def hecker_lstm_forward(x, kernel_params, n_sources):
  """x: (B, C, T) float32  ->  (B, S, T) float32."""
  B, C, T = x.shape
  S = n_sources
  HP = kernel_params[1].shape[0]                  # whh0f: (HP, 4*HP)
  SP = kernel_params[14].shape[1]                 # fcwf:  (HP, SP)
  BP = _round_up(B, 8)                            # sublane-dense batch

  # (B, C, T) -> (T, BP, C), batch zero-padded to a sublane multiple.
  x_tbc = jnp.transpose(x, (2, 0, 1)).astype(jnp.float32)
  if BP != B:
    x_tbc = jnp.pad(x_tbc, ((0, 0), (0, BP - B), (0, 0)))

  vmem_spec = pl.BlockSpec(memory_space=pltpu.MemorySpace.VMEM)
  scratch_shapes = [pltpu.VMEM((T, BP, HP), jnp.float32),
                    pltpu.VMEM((T, BP, HP), jnp.float32),
                    pltpu.VMEM((T, BP, 4 * HP), jnp.float32),
                    pltpu.VMEM((T, BP, 4 * HP), jnp.float32)]

  # Generation-aware VMEM budget: ~1.2x resident set + headroom, clamped to this chip's
  # physical per-core VMEM (64 MiB on v7x, 128 MiB on v5e/v6e). No grid -> no BlockSpec
  # double-buffering, so no 2x multiplier.
  f32 = 4
  resident = (int(np.prod(x_tbc.shape)) + T * BP * SP
              + sum(int(np.prod(w.shape)) for w in kernel_params)
              + 2 * T * BP * HP + 2 * T * BP * 4 * HP) * f32
  try:
    vmem_cap = int(pltpu.get_tpu_info().vmem_capacity_bytes)
  except Exception:
    vmem_cap = 64 << 20                           # conservative across generations
  vmem_limit = int(min(max(int(1.2 * resident) + (4 << 20), 8 << 20), vmem_cap))

  out_tbs = pl.pallas_call(
      hecker_lstm_kernel,
      out_shape=jax.ShapeDtypeStruct((T, BP, SP), jnp.float32),
      in_specs=[vmem_spec] * (1 + len(kernel_params)),
      out_specs=vmem_spec,
      scratch_shapes=scratch_shapes,
      compiler_params=pltpu.CompilerParams(vmem_limit_bytes=vmem_limit),
  )(x_tbc, *kernel_params)

  return jnp.transpose(out_tbs[:, :B, :S], (1, 2, 0))        # (B, S, T)


# ----------------------------------------------------------------------------
# Deterministic PyTorch-shaped parameters + kernel-layout preparation.
# ----------------------------------------------------------------------------
def make_torch_params(key, n_electrodes, hidden_size, n_sources):
  C, H, S = n_electrodes, hidden_size, n_sources
  k = 1.0 / np.sqrt(H)
  keys = jax.random.split(key, 17)
  ki = iter(range(17))

  def uni(shape):
    return jax.random.uniform(keys[next(ki)], shape, jnp.float32, minval=-k, maxval=k)

  p = {}
  for name, in_dim in (("0f", C), ("0b", C), ("1f", 2 * H), ("1b", 2 * H)):
    p["w_ih_" + name] = uni((4 * H, in_dim))     # PyTorch weight_ih_l{k}[_reverse]
    p["w_hh_" + name] = uni((4 * H, H))          # PyTorch weight_hh
    p["b_ih_" + name] = uni((4 * H,))
    p["b_hh_" + name] = uni((4 * H,))
  fc_k = 1.0 / np.sqrt(2 * H)
  p["fc_w"] = jax.random.uniform(keys[next(ki)], (S, 2 * H), jnp.float32,
                                 minval=-fc_k, maxval=fc_k)  # PyTorch Linear weight
  return p


def prepare_kernel_params(p, n_electrodes, hidden_size, n_sources):
  """Transpose, gate-reorder, split and zero-pad PyTorch params into kernel layout."""
  C, H, S = n_electrodes, hidden_size, n_sources
  HP = _round_up(H, 128)                          # per-gate lane-dense width
  SP = _round_up(S, 128)
  # Kernel gate order (i, f, o, g) <- PyTorch order (i, f, g, o): one sigmoid slab + one tanh.
  src_gate = (0, 1, 3, 2)

  def gate_cols(w_t):                             # (rows, 4H) -> (rows, 4*HP), reordered
    rows = w_t.shape[0]
    out = jnp.zeros((rows, 4 * HP), jnp.float32)
    for dst, src in enumerate(src_gate):
      out = out.at[:, dst * HP:dst * HP + H].set(w_t[:, src * H:(src + 1) * H])
    return out

  def pad_rows(w, rows_pad):
    return jnp.pad(w, ((0, rows_pad - w.shape[0]), (0, 0)))

  def cell(name):
    wih_t = gate_cols(p["w_ih_" + name].T)                          # (in_dim, 4*HP)
    whh_t = pad_rows(gate_cols(p["w_hh_" + name].T), HP)            # (HP, 4*HP)
    b = gate_cols((p["b_ih_" + name] + p["b_hh_" + name]).reshape(1, -1))
    return wih_t, whh_t, b

  wih0f, whh0f, b0f = cell("0f")
  wih0b, whh0b, b0b = cell("0b")

  def cell_l1(name):
    wih_t, whh_t, b = cell(name)                  # wih_t: (2H, 4*HP)
    wih_from_fwd = pad_rows(wih_t[:H], HP)        # acts on layer-0 forward output
    wih_from_bwd = pad_rows(wih_t[H:], HP)        # acts on layer-0 backward output
    return wih_from_fwd, wih_from_bwd, whh_t, b

  wih1ff, wih1fb, whh1f, b1f = cell_l1("1f")
  wih1bf, wih1bb, whh1b, b1b = cell_l1("1b")

  fc_t = jnp.pad(p["fc_w"].T, ((0, 0), (0, SP - S)))                # (2H, SP)
  fcwf = pad_rows(fc_t[:H], HP)                                     # (HP, SP)
  fcwb = pad_rows(fc_t[H:], HP)

  return (wih0f, whh0f, b0f, wih0b, whh0b, b0b,
          wih1ff, wih1fb, whh1f, b1f, wih1bf, wih1bb, whh1b, b1b,
          fcwf, fcwb)


# ----------------------------------------------------------------------------
# Pure-JAX reference (lax.scan, unpadded, PyTorch gate order) for correctness.
# ----------------------------------------------------------------------------
def reference_forward(x, p, hidden_size):
  B, C, T = x.shape
  H = hidden_size
  xs = jnp.transpose(x, (2, 0, 1)).astype(jnp.float32)      # (T, B, C)

  def cell(xs, name, reverse):
    wih = p["w_ih_" + name].T
    whh = p["w_hh_" + name].T
    b = (p["b_ih_" + name] + p["b_hh_" + name]).reshape(1, -1)

    def step(carry, xt):
      h, c = carry
      g = xt @ wih + h @ whh + b
      i_g = jax.nn.sigmoid(g[:, 0:H])
      f_g = jax.nn.sigmoid(g[:, H:2 * H])
      g_g = jnp.tanh(g[:, 2 * H:3 * H])
      o_g = jax.nn.sigmoid(g[:, 3 * H:4 * H])
      c2 = f_g * c + i_g * g_g
      h2 = o_g * jnp.tanh(c2)
      return (h2, c2), h2

    seq = xs[::-1] if reverse else xs
    init = (jnp.zeros((B, H), jnp.float32), jnp.zeros((B, H), jnp.float32))
    _, hs = lax.scan(step, init, seq)
    return hs[::-1] if reverse else hs

  f0 = cell(xs, "0f", False)
  b0 = cell(xs, "0b", True)
  l0 = jnp.concatenate([f0, b0], axis=-1)
  f1 = cell(l0, "1f", False)
  b1 = cell(l0, "1b", True)
  out = jnp.maximum(jnp.concatenate([f1, b1], axis=-1), 0.0)  # (T, B, 2H)
  y = jnp.einsum("tbh,sh->tbs", out, p["fc_w"])
  return jnp.transpose(y, (1, 2, 0))                          # (B, S, T)


if __name__ == "__main__":
  # Small shapes consistent with the module interface.
  B, C, T = 2, 8, 8            # batch, n_electrodes, time
  H, S = 16, 32                # hidden_size, n_sources

  key = jax.random.PRNGKey(0)
  kx, kp = jax.random.split(key)
  x = jax.random.normal(kx, (B, C, T), jnp.float32)
  torch_params = make_torch_params(kp, C, H, S)
  kernel_params = prepare_kernel_params(torch_params, C, H, S)

  fwd = jax.jit(functools.partial(hecker_lstm_forward,
                                  kernel_params=kernel_params, n_sources=S))
  out = jax.block_until_ready(fwd(x))

  ref = reference_forward(x, torch_params, H)
  assert out.shape == (B, S, T), out.shape
  np.testing.assert_allclose(np.asarray(out), np.asarray(ref), rtol=2e-3, atol=2e-3)

  print("KERNEL_OK")
</pallas_src>

<mosaic_0001>
module attributes {stable_mosaic.version = 11 : i64} {
  func.func @hecker_lstm_kernel(%arg0: memref<8x8x8xf32, #tpu.memory_space<vmem>>, %arg1: memref<8x512xf32, #tpu.memory_space<vmem>>, %arg2: memref<128x512xf32, #tpu.memory_space<vmem>>, %arg3: memref<1x512xf32, #tpu.memory_space<vmem>>, %arg4: memref<8x512xf32, #tpu.memory_space<vmem>>, %arg5: memref<128x512xf32, #tpu.memory_space<vmem>>, %arg6: memref<1x512xf32, #tpu.memory_space<vmem>>, %arg7: memref<128x512xf32, #tpu.memory_space<vmem>>, %arg8: memref<128x512xf32, #tpu.memory_space<vmem>>, %arg9: memref<128x512xf32, #tpu.memory_space<vmem>>, %arg10: memref<1x512xf32, #tpu.memory_space<vmem>>, %arg11: memref<128x512xf32, #tpu.memory_space<vmem>>, %arg12: memref<128x512xf32, #tpu.memory_space<vmem>>, %arg13: memref<128x512xf32, #tpu.memory_space<vmem>>, %arg14: memref<1x512xf32, #tpu.memory_space<vmem>>, %arg15: memref<128x128xf32, #tpu.memory_space<vmem>>, %arg16: memref<128x128xf32, #tpu.memory_space<vmem>>, %arg17: memref<8x8x128xf32, #tpu.memory_space<vmem>>, %arg18: memref<8x8x128xf32, #tpu.memory_space<vmem>>, %arg19: memref<8x8x128xf32, #tpu.memory_space<vmem>>, %arg20: memref<8x8x512xf32, #tpu.memory_space<vmem>>, %arg21: memref<8x8x512xf32, #tpu.memory_space<vmem>>) attributes {dimension_semantics = [], scalar_prefetch = 0 : i64, scratch_operands = 4 : i64, tpu.core_type = #tpu.core_type<tc>} {
    %c0 = arith.constant 0 : index
    %c0_0 = arith.constant 0 : index
    %c0_1 = arith.constant 0 : index
    %0 = vector.load %arg0[%c0, %c0_0, %c0_1] : memref<8x8x8xf32, #tpu.memory_space<vmem>>, vector<8x8x8xf32>
    %1 = vector.shape_cast %0 : vector<8x8x8xf32> to vector<64x8xf32>
    %c0_2 = arith.constant 0 : index
    %c0_3 = arith.constant 0 : index
    %2 = vector.load %arg1[%c0_2, %c0_3] : memref<8x512xf32, #tpu.memory_space<vmem>>, vector<8x512xf32>
    %cst = arith.constant dense<0.000000e+00> : vector<64x512xf32>
    %3 = tpu.matmul %1, %2, %cst {dimension_numbers = #tpu.dot_dimension_numbers<[1], [0], [0], [1], [0, 0, 1, 1], [], []>} : vector<64x8xf32>, vector<8x512xf32>, vector<64x512xf32> -> vector<64x512xf32>
    %c0_4 = arith.constant 0 : index
    %c0_5 = arith.constant 0 : index
    %4 = vector.load %arg3[%c0_4, %c0_5] : memref<1x512xf32, #tpu.memory_space<vmem>>, vector<1x512xf32>
    %5 = vector.broadcast %4 : vector<1x512xf32> to vector<64x512xf32>
    %6 = arith.addf %3, %5 : vector<64x512xf32>
    %7 = vector.shape_cast %6 : vector<64x512xf32> to vector<8x8x512xf32>
    %c0_6 = arith.constant 0 : index
    %c0_7 = arith.constant 0 : index
    %c0_8 = arith.constant 0 : index
    %8 = vector.load %arg20[%c0_6, %c0_7, %c0_8] : memref<8x8x512xf32, #tpu.memory_space<vmem>>, vector<8x8x512xf32>
    tpu.vector_store %arg20[%c0_6, %c0_7, %c0_8], %7 {strides = array<i32>} : memref<8x8x512xf32, #tpu.memory_space<vmem>>, vector<8x8x512xf32>,
    %c0_9 = arith.constant 0 : index
    %c0_10 = arith.constant 0 : index
    %9 = vector.load %arg4[%c0_9, %c0_10] : memref<8x512xf32, #tpu.memory_space<vmem>>, vector<8x512xf32>
    %cst_11 = arith.constant dense<0.000000e+00> : vector<64x512xf32>
    %10 = tpu.matmul %1, %9, %cst_11 {dimension_numbers = #tpu.dot_dimension_numbers<[1], [0], [0], [1], [0, 0, 1, 1], [], []>} : vector<64x8xf32>, vector<8x512xf32>, vector<64x512xf32> -> vector<64x512xf32>
    %c0_12 = arith.constant 0 : index
    %c0_13 = arith.constant 0 : index
    %11 = vector.load %arg6[%c0_12, %c0_13] : memref<1x512xf32, #tpu.memory_space<vmem>>, vector<1x512xf32>
    %12 = vector.broadcast %11 : vector<1x512xf32> to vector<64x512xf32>
    %13 = arith.addf %10, %12 : vector<64x512xf32>
    %14 = vector.shape_cast %13 : vector<64x512xf32> to vector<8x8x512xf32>
    %c0_14 = arith.constant 0 : index
    %c0_15 = arith.constant 0 : index
    %c0_16 = arith.constant 0 : index
    %15 = vector.load %arg21[%c0_14, %c0_15, %c0_16] : memref<8x8x512xf32, #tpu.memory_space<vmem>>, vector<8x8x512xf32>
    tpu.vector_store %arg21[%c0_14, %c0_15, %c0_16], %14 {strides = array<i32>} : memref<8x8x512xf32, #tpu.memory_space<vmem>>, vector<8x8x512xf32>,
    %cst_17 = arith.constant 0.000000e+00 : f32
    %16 = vector.broadcast %cst_17 : f32 to vector<8x128xf32>
    %c0_i32 = arith.constant 0 : i32
    %c8_i32 = arith.constant 8 : i32
    %17 = arith.addi %c0_i32, %c8_i32 : i32
    %c1_i32 = arith.constant 1 : i32
    %18:4 = scf.for %arg22 = %c0_i32 to %17 step %c1_i32 iter_args(%arg23 = %16, %arg24 = %16, %arg25 = %16, %arg26 = %16) -> (vector<8x128xf32>, vector<8x128xf32>, vector<8x128xf32>, vector<8x128xf32>)  : i32 {
      %c7_i32 = arith.constant 7 : i32
      %48 = arith.subi %c7_i32, %arg22 : i32
      %c0_56 = arith.constant 0 : index
      %c0_57 = arith.constant 0 : index
      %49 = vector.load %arg2[%c0_56, %c0_57] : memref<128x512xf32, #tpu.memory_space<vmem>>, vector<128x512xf32>
      %cst_58 = arith.constant dense<0.000000e+00> : vector<8x512xf32>
      %50 = tpu.matmul %arg23, %49, %cst_58 {dimension_numbers = #tpu.dot_dimension_numbers<[1], [0], [0], [1], [0, 0, 1, 1], [], []>} : vector<8x128xf32>, vector<128x512xf32>, vector<8x512xf32> -> vector<8x512xf32>
      %51 = arith.index_cast %arg22 : i32 to index
      %c0_59 = arith.constant 0 : index
      %c0_60 = arith.constant 0 : index
      %52 = vector.load %arg20[%51, %c0_59, %c0_60] : memref<8x8x512xf32, #tpu.memory_space<vmem>>, vector<1x8x512xf32>
      %53 = vector.shape_cast %52 : vector<1x8x512xf32> to vector<8x512xf32>
      %54 = arith.addf %50, %53 : vector<8x512xf32>
      %c0_61 = arith.constant 0 : index
      %c0_62 = arith.constant 0 : index
      %55 = vector.load %arg5[%c0_61, %c0_62] : memref<128x512xf32, #tpu.memory_space<vmem>>, vector<128x512xf32>
      %cst_63 = arith.constant dense<0.000000e+00> : vector<8x512xf32>
      %56 = tpu.matmul %arg25, %55, %cst_63 {dimension_numbers = #tpu.dot_dimension_numbers<[1], [0], [0], [1], [0, 0, 1, 1], [], []>} : vector<8x128xf32>, vector<128x512xf32>, vector<8x512xf32> -> vector<8x512xf32>
      %57 = arith.index_cast %48 : i32 to index
      %c0_64 = arith.constant 0 : index
      %c0_65 = arith.constant 0 : index
      %58 = vector.load %arg21[%57, %c0_64, %c0_65] : memref<8x8x512xf32, #tpu.memory_space<vmem>>, vector<1x8x512xf32>
      %59 = vector.shape_cast %58 : vector<1x8x512xf32> to vector<8x512xf32>
      %60 = arith.addf %56, %59 : vector<8x512xf32>
      %61 = vector.extract_strided_slice %54 {offsets = [0, 0], sizes = [8, 384], strides = [1, 1]} : vector<8x512xf32> to vector<8x384xf32>
      %62 = arith.negf %61 : vector<8x384xf32>
      %63 = math.exp %62 : vector<8x384xf32>
      %cst_66 = arith.constant 1.000000e+00 : f32
      %64 = vector.broadcast %cst_66 : f32 to vector<8x384xf32>
      %65 = arith.addf %64, %63 : vector<8x384xf32>
      %66 = arith.divf %64, %65 : vector<8x384xf32>
      %67 = vector.extract_strided_slice %54 {offsets = [0, 384], sizes = [8, 128], strides = [1, 1]} : vector<8x512xf32> to vector<8x128xf32>
      %68 = math.tanh %67 : vector<8x128xf32>
      %69 = vector.extract_strided_slice %66 {offsets = [0, 0], sizes = [8, 128], strides = [1, 1]} : vector<8x384xf32> to vector<8x128xf32>
      %70 = vector.extract_strided_slice %66 {offsets = [0, 128], sizes = [8, 128], strides = [1, 1]} : vector<8x384xf32> to vector<8x128xf32>
      %71 = vector.extract_strided_slice %66 {offsets = [0, 256], sizes = [8, 128], strides = [1, 1]} : vector<8x384xf32> to vector<8x128xf32>
      %72 = arith.mulf %70, %arg24 : vector<8x128xf32>
      %73 = arith.mulf %69, %68 : vector<8x128xf32>
      %74 = arith.addf %72, %73 : vector<8x128xf32>
      %75 = math.tanh %74 : vector<8x128xf32>
      %76 = arith.mulf %71, %75 : vector<8x128xf32>
      %77 = vector.extract_strided_slice %60 {offsets = [0, 0], sizes = [8, 384], strides = [1, 1]} : vector<8x512xf32> to vector<8x384xf32>
      %78 = arith.negf %77 : vector<8x384xf32>
      %79 = math.exp %78 : vector<8x384xf32>
      %cst_67 = arith.constant 1.000000e+00 : f32
      %80 = vector.broadcast %cst_67 : f32 to vector<8x384xf32>
      %81 = arith.addf %80, %79 : vector<8x384xf32>
      %82 = arith.divf %80, %81 : vector<8x384xf32>
      %83 = vector.extract_strided_slice %60 {offsets = [0, 384], sizes = [8, 128], strides = [1, 1]} : vector<8x512xf32> to vector<8x128xf32>
      %84 = math.tanh %83 : vector<8x128xf32>
      %85 = vector.extract_strided_slice %82 {offsets = [0, 0], sizes = [8, 128], strides = [1, 1]} : vector<8x384xf32> to vector<8x128xf32>
      %86 = vector.extract_strided_slice %82 {offsets = [0, 128], sizes = [8, 128], strides = [1, 1]} : vector<8x384xf32> to vector<8x128xf32>
      %87 = vector.extract_strided_slice %82 {offsets = [0, 256], sizes = [8, 128], strides = [1, 1]} : vector<8x384xf32> to vector<8x128xf32>
      %88 = arith.mulf %86, %arg26 : vector<8x128xf32>
      %89 = arith.mulf %85, %84 : vector<8x128xf32>
      %90 = arith.addf %88, %89 : vector<8x128xf32>
      %91 = math.tanh %90 : vector<8x128xf32>
      %92 = arith.mulf %87, %91 : vector<8x128xf32>
      %93 = arith.index_cast %arg22 : i32 to index
      %c0_68 = arith.constant 0 : index
      %c0_69 = arith.constant 0 : index
      %94 = vector.load %arg18[%93, %c0_68, %c0_69] : memref<8x8x128xf32, #tpu.memory_space<vmem>>, vector<1x8x128xf32>
      %95 = vector.shape_cast %94 : vector<1x8x128xf32> to vector<8x128xf32>
      %96 = vector.shape_cast %76 : vector<8x128xf32> to vector<1x8x128xf32>
      tpu.vector_store %arg18[%93, %c0_68, %c0_69], %96 {strides = array<i32>} : memref<8x8x128xf32, #tpu.memory_space<vmem>>, vector<1x8x128xf32>,
      %97 = arith.index_cast %48 : i32 to index
      %c0_70 = arith.constant 0 : index
      %c0_71 = arith.constant 0 : index
      %98 = vector.load %arg19[%97, %c0_70, %c0_71] : memref<8x8x128xf32, #tpu.memory_space<vmem>>, vector<1x8x128xf32>
      %99 = vector.shape_cast %98 : vector<1x8x128xf32> to vector<8x128xf32>
      %100 = vector.shape_cast %92 : vector<8x128xf32> to vector<1x8x128xf32>
      tpu.vector_store %arg19[%97, %c0_70, %c0_71], %100 {strides = array<i32>} : memref<8x8x128xf32, #tpu.memory_space<vmem>>, vector<1x8x128xf32>,
      scf.yield %76, %74, %92, %90 : vector<8x128xf32>, vector<8x128xf32>, vector<8x128xf32>, vector<8x128xf32>
    }
    %c8_i32_18 = arith.constant 8 : i32
    %c0_19 = arith.constant 0 : index
    %c0_20 = arith.constant 0 : index
    %c0_21 = arith.constant 0 : index
    %19 = vector.load %arg18[%c0_19, %c0_20, %c0_21] : memref<8x8x128xf32, #tpu.memory_space<vmem>>, vector<8x8x128xf32>
    %20 = vector.shape_cast %19 : vector<8x8x128xf32> to vector<64x128xf32>
    %c0_22 = arith.constant 0 : index
    %c0_23 = arith.constant 0 : index
    %c0_24 = arith.constant 0 : index
    %21 = vector.load %arg19[%c0_22, %c0_23, %c0_24] : memref<8x8x128xf32, #tpu.memory_space<vmem>>, vector<8x8x128xf32>
    %22 = vector.shape_cast %21 : vector<8x8x128xf32> to vector<64x128xf32>
    %c0_25 = arith.constant 0 : index
    %c0_26 = arith.constant 0 : index
    %23 = vector.load %arg7[%c0_25, %c0_26] : memref<128x512xf32, #tpu.memory_space<vmem>>, vector<128x512xf32>
    %cst_27 = arith.constant dense<0.000000e+00> : vector<64x512xf32>
    %24 = tpu.matmul %20, %23, %cst_27 {dimension_numbers = #tpu.dot_dimension_numbers<[1], [0], [0], [1], [0, 0, 1, 1], [], []>} : vector<64x128xf32>, vector<128x512xf32>, vector<64x512xf32> -> vector<64x512xf32>
    %c0_28 = arith.constant 0 : index
    %c0_29 = arith.constant 0 : index
    %25 = vector.load %arg8[%c0_28, %c0_29] : memref<128x512xf32, #tpu.memory_space<vmem>>, vector<128x512xf32>
    %cst_30 = arith.constant dense<0.000000e+00> : vector<64x512xf32>
    %26 = tpu.matmul %22, %25, %cst_30 {dimension_numbers = #tpu.dot_dimension_numbers<[1], [0], [0], [1], [0, 0, 1, 1], [], []>} : vector<64x128xf32>, vector<128x512xf32>, vector<64x512xf32> -> vector<64x512xf32>
    %27 = arith.addf %24, %26 : vector<64x512xf32>
    %c0_31 = arith.constant 0 : index
    %c0_32 = arith.constant 0 : index
    %28 = vector.load %arg10[%c0_31, %c0_32] : memref<1x512xf32, #tpu.memory_space<vmem>>, vector<1x512xf32>
    %29 = vector.broadcast %28 : vector<1x512xf32> to vector<64x512xf32>
    %30 = arith.addf %27, %29 : vector<64x512xf32>
    %31 = vector.shape_cast %30 : vector<64x512xf32> to vector<8x8x512xf32>
    %c0_33 = arith.constant 0 : index
    %c0_34 = arith.constant 0 : index
    %c0_35 = arith.constant 0 : index
    %32 = vector.load %arg20[%c0_33, %c0_34, %c0_35] : memref<8x8x512xf32, #tpu.memory_space<vmem>>, vector<8x8x512xf32>
    tpu.vector_store %arg20[%c0_33, %c0_34, %c0_35], %31 {strides = array<i32>} : memref<8x8x512xf32, #tpu.memory_space<vmem>>, vector<8x8x512xf32>,
    %c0_36 = arith.constant 0 : index
    %c0_37 = arith.constant 0 : index
    %33 = vector.load %arg11[%c0_36, %c0_37] : memref<128x512xf32, #tpu.memory_space<vmem>>, vector<128x512xf32>
    %cst_38 = arith.constant dense<0.000000e+00> : vector<64x512xf32>
    %34 = tpu.matmul %20, %33, %cst_38 {dimension_numbers = #tpu.dot_dimension_numbers<[1], [0], [0], [1], [0, 0, 1, 1], [], []>} : vector<64x128xf32>, vector<128x512xf32>, vector<64x512xf32> -> vector<64x512xf32>
    %c0_39 = arith.constant 0 : index
    %c0_40 = arith.constant 0 : index
    %35 = vector.load %arg12[%c0_39, %c0_40] : memref<128x512xf32, #tpu.memory_space<vmem>>, vector<128x512xf32>
    %cst_41 = arith.constant dense<0.000000e+00> : vector<64x512xf32>
    %36 = tpu.matmul %22, %35, %cst_41 {dimension_numbers = #tpu.dot_dimension_numbers<[1], [0], [0], [1], [0, 0, 1, 1], [], []>} : vector<64x128xf32>, vector<128x512xf32>, vector<64x512xf32> -> vector<64x512xf32>
    %37 = arith.addf %34, %36 : vector<64x512xf32>
    %c0_42 = arith.constant 0 : index
    %c0_43 = arith.constant 0 : index
    %38 = vector.load %arg14[%c0_42, %c0_43] : memref<1x512xf32, #tpu.memory_space<vmem>>, vector<1x512xf32>
    %39 = vector.broadcast %38 : vector<1x512xf32> to vector<64x512xf32>
    %40 = arith.addf %37, %39 : vector<64x512xf32>
    %41 = vector.shape_cast %40 : vector<64x512xf32> to vector<8x8x512xf32>
    %c0_44 = arith.constant 0 : index
    %c0_45 = arith.constant 0 : index
    %c0_46 = arith.constant 0 : index
    %42 = vector.load %arg21[%c0_44, %c0_45, %c0_46] : memref<8x8x512xf32, #tpu.memory_space<vmem>>, vector<8x8x512xf32>
    tpu.vector_store %arg21[%c0_44, %c0_45, %c0_46], %41 {strides = array<i32>} : memref<8x8x512xf32, #tpu.memory_space<vmem>>, vector<8x8x512xf32>,
    %cst_47 = arith.constant 0.000000e+00 : f32
    %43 = vector.broadcast %cst_47 : f32 to vector<8x8x128xf32>
    %c0_48 = arith.constant 0 : index
    %c0_49 = arith.constant 0 : index
    %c0_50 = arith.constant 0 : index
    %44 = vector.load %arg17[%c0_48, %c0_49, %c0_50] : memref<8x8x128xf32, #tpu.memory_space<vmem>>, vector<8x8x128xf32>
    tpu.vector_store %arg17[%c0_48, %c0_49, %c0_50], %43 {strides = array<i32>} : memref<8x8x128xf32, #tpu.memory_space<vmem>>, vector<8x8x128xf32>,
    %cst_51 = arith.constant 0.000000e+00 : f32
    %45 = vector.broadcast %cst_51 : f32 to vector<8x128xf32>
    %c0_i32_52 = arith.constant 0 : i32
    %c8_i32_53 = arith.constant 8 : i32
    %46 = arith.addi %c0_i32_52, %c8_i32_53 : i32
    %c1_i32_54 = arith.constant 1 : i32
    %47:4 = scf.for %arg22 = %c0_i32_52 to %46 step %c1_i32_54 iter_args(%arg23 = %45, %arg24 = %45, %arg25 = %45, %arg26 = %45) -> (vector<8x128xf32>, vector<8x128xf32>, vector<8x128xf32>, vector<8x128xf32>)  : i32 {
      %c7_i32 = arith.constant 7 : i32
      %48 = arith.subi %c7_i32, %arg22 : i32
      %c0_56 = arith.constant 0 : index
      %c0_57 = arith.constant 0 : index
      %49 = vector.load %arg9[%c0_56, %c0_57] : memref<128x512xf32, #tpu.memory_space<vmem>>, vector<128x512xf32>
      %cst_58 = arith.constant dense<0.000000e+00> : vector<8x512xf32>
      %50 = tpu.matmul %arg23, %49, %cst_58 {dimension_numbers = #tpu.dot_dimension_numbers<[1], [0], [0], [1], [0, 0, 1, 1], [], []>} : vector<8x128xf32>, vector<128x512xf32>, vector<8x512xf32> -> vector<8x512xf32>
      %51 = arith.index_cast %arg22 : i32 to index
      %c0_59 = arith.constant 0 : index
      %c0_60 = arith.constant 0 : index
      %52 = vector.load %arg20[%51, %c0_59, %c0_60] : memref<8x8x512xf32, #tpu.memory_space<vmem>>, vector<1x8x512xf32>
      %53 = vector.shape_cast %52 : vector<1x8x512xf32> to vector<8x512xf32>
      %54 = arith.addf %50, %53 : vector<8x512xf32>
      %c0_61 = arith.constant 0 : index
      %c0_62 = arith.constant 0 : index
      %55 = vector.load %arg13[%c0_61, %c0_62] : memref<128x512xf32, #tpu.memory_space<vmem>>, vector<128x512xf32>
      %cst_63 = arith.constant dense<0.000000e+00> : vector<8x512xf32>
      %56 = tpu.matmul %arg25, %55, %cst_63 {dimension_numbers = #tpu.dot_dimension_numbers<[1], [0], [0], [1], [0, 0, 1, 1], [], []>} : vector<8x128xf32>, vector<128x512xf32>, vector<8x512xf32> -> vector<8x512xf32>
      %57 = arith.index_cast %48 : i32 to index
      %c0_64 = arith.constant 0 : index
      %c0_65 = arith.constant 0 : index
      %58 = vector.load %arg21[%57, %c0_64, %c0_65] : memref<8x8x512xf32, #tpu.memory_space<vmem>>, vector<1x8x512xf32>
      %59 = vector.shape_cast %58 : vector<1x8x512xf32> to vector<8x512xf32>
      %60 = arith.addf %56, %59 : vector<8x512xf32>
      %61 = vector.extract_strided_slice %54 {offsets = [0, 0], sizes = [8, 384], strides = [1, 1]} : vector<8x512xf32> to vector<8x384xf32>
      %62 = arith.negf %61 : vector<8x384xf32>
      %63 = math.exp %62 : vector<8x384xf32>
      %cst_66 = arith.constant 1.000000e+00 : f32
      %64 = vector.broadcast %cst_66 : f32 to vector<8x384xf32>
      %65 = arith.addf %64, %63 : vector<8x384xf32>
      %66 = arith.divf %64, %65 : vector<8x384xf32>
      %67 = vector.extract_strided_slice %54 {offsets = [0, 384], sizes = [8, 128], strides = [1, 1]} : vector<8x512xf32> to vector<8x128xf32>
      %68 = math.tanh %67 : vector<8x128xf32>
      %69 = vector.extract_strided_slice %66 {offsets = [0, 0], sizes = [8, 128], strides = [1, 1]} : vector<8x384xf32> to vector<8x128xf32>
      %70 = vector.extract_strided_slice %66 {offsets = [0, 128], sizes = [8, 128], strides = [1, 1]} : vector<8x384xf32> to vector<8x128xf32>
      %71 = vector.extract_strided_slice %66 {offsets = [0, 256], sizes = [8, 128], strides = [1, 1]} : vector<8x384xf32> to vector<8x128xf32>
      %72 = arith.mulf %70, %arg24 : vector<8x128xf32>
      %73 = arith.mulf %69, %68 : vector<8x128xf32>
      %74 = arith.addf %72, %73 : vector<8x128xf32>
      %75 = math.tanh %74 : vector<8x128xf32>
      %76 = arith.mulf %71, %75 : vector<8x128xf32>
      %77 = vector.extract_strided_slice %60 {offsets = [0, 0], sizes = [8, 384], strides = [1, 1]} : vector<8x512xf32> to vector<8x384xf32>
      %78 = arith.negf %77 : vector<8x384xf32>
      %79 = math.exp %78 : vector<8x384xf32>
      %cst_67 = arith.constant 1.000000e+00 : f32
      %80 = vector.broadcast %cst_67 : f32 to vector<8x384xf32>
      %81 = arith.addf %80, %79 : vector<8x384xf32>
      %82 = arith.divf %80, %81 : vector<8x384xf32>
      %83 = vector.extract_strided_slice %60 {offsets = [0, 384], sizes = [8, 128], strides = [1, 1]} : vector<8x512xf32> to vector<8x128xf32>
      %84 = math.tanh %83 : vector<8x128xf32>
      %85 = vector.extract_strided_slice %82 {offsets = [0, 0], sizes = [8, 128], strides = [1, 1]} : vector<8x384xf32> to vector<8x128xf32>
      %86 = vector.extract_strided_slice %82 {offsets = [0, 128], sizes = [8, 128], strides = [1, 1]} : vector<8x384xf32> to vector<8x128xf32>
      %87 = vector.extract_strided_slice %82 {offsets = [0, 256], sizes = [8, 128], strides = [1, 1]} : vector<8x384xf32> to vector<8x128xf32>
      %88 = arith.mulf %86, %arg26 : vector<8x128xf32>
      %89 = arith.mulf %85, %84 : vector<8x128xf32>
      %90 = arith.addf %88, %89 : vector<8x128xf32>
      %91 = math.tanh %90 : vector<8x128xf32>
      %92 = arith.mulf %87, %91 : vector<8x128xf32>
      %93 = arith.index_cast %arg22 : i32 to index
      %c0_68 = arith.constant 0 : index
      %c0_69 = arith.constant 0 : index
      %94 = vector.load %arg17[%93, %c0_68, %c0_69] : memref<8x8x128xf32, #tpu.memory_space<vmem>>, vector<1x8x128xf32>
      %95 = vector.shape_cast %94 : vector<1x8x128xf32> to vector<8x128xf32>
      %cst_70 = arith.constant 0.000000e+00 : f32
      %96 = vector.broadcast %cst_70 : f32 to vector<8x128xf32>
      %97 = arith.maximumf %76, %96 : vector<8x128xf32>
      %c0_71 = arith.constant 0 : index
      %c0_72 = arith.constant 0 : index
      %98 = vector.load %arg15[%c0_71, %c0_72] : memref<128x128xf32, #tpu.memory_space<vmem>>, vector<128x128xf32>
      %cst_73 = arith.constant dense<0.000000e+00> : vector<8x128xf32>
      %99 = tpu.matmul %97, %98, %cst_73 {dimension_numbers = #tpu.dot_dimension_numbers<[1], [0], [0], [1], [0, 0, 1, 1], [], []>} : vector<8x128xf32>, vector<128x128xf32>, vector<8x128xf32> -> vector<8x128xf32>
      %100 = arith.addf %95, %99 : vector<8x128xf32>
      %101 = arith.index_cast %arg22 : i32 to index
      %c0_74 = arith.constant 0 : index
      %c0_75 = arith.constant 0 : index
      %102 = vector.load %arg17[%101, %c0_74, %c0_75] : memref<8x8x128xf32, #tpu.memory_space<vmem>>, vector<1x8x128xf32>
      %103 = vector.shape_cast %102 : vector<1x8x128xf32> to vector<8x128xf32>
      %104 = vector.shape_cast %100 : vector<8x128xf32> to vector<1x8x128xf32>
      tpu.vector_store %arg17[%101, %c0_74, %c0_75], %104 {strides = array<i32>} : memref<8x8x128xf32, #tpu.memory_space<vmem>>, vector<1x8x128xf32>,
      %105 = arith.index_cast %48 : i32 to index
      %c0_76 = arith.constant 0 : index
      %c0_77 = arith.constant 0 : index
      %106 = vector.load %arg17[%105, %c0_76, %c0_77] : memref<8x8x128xf32, #tpu.memory_space<vmem>>, vector<1x8x128xf32>
      %107 = vector.shape_cast %106 : vector<1x8x128xf32> to vector<8x128xf32>
      %cst_78 = arith.constant 0.000000e+00 : f32
      %108 = vector.broadcast %cst_78 : f32 to vector<8x128xf32>
      %109 = arith.maximumf %92, %108 : vector<8x128xf32>
      %c0_79 = arith.constant 0 : index
      %c0_80 = arith.constant 0 : index
      %110 = vector.load %arg16[%c0_79, %c0_80] : memref<128x128xf32, #tpu.memory_space<vmem>>, vector<128x128xf32>
      %cst_81 = arith.constant dense<0.000000e+00> : vector<8x128xf32>
      %111 = tpu.matmul %109, %110, %cst_81 {dimension_numbers = #tpu.dot_dimension_numbers<[1], [0], [0], [1], [0, 0, 1, 1], [], []>} : vector<8x128xf32>, vector<128x128xf32>, vector<8x128xf32> -> vector<8x128xf32>
      %112 = arith.addf %107, %111 : vector<8x128xf32>
      %113 = arith.index_cast %48 : i32 to index
      %c0_82 = arith.constant 0 : index
      %c0_83 = arith.constant 0 : index
      %114 = vector.load %arg17[%113, %c0_82, %c0_83] : memref<8x8x128xf32, #tpu.memory_space<vmem>>, vector<1x8x128xf32>
      %115 = vector.shape_cast %114 : vector<1x8x128xf32> to vector<8x128xf32>
      %116 = vector.shape_cast %112 : vector<8x128xf32> to vector<1x8x128xf32>
      tpu.vector_store %arg17[%113, %c0_82, %c0_83], %116 {strides = array<i32>} : memref<8x8x128xf32, #tpu.memory_space<vmem>>, vector<1x8x128xf32>,
      scf.yield %76, %74, %92, %90 : vector<8x128xf32>, vector<8x128xf32>, vector<8x128xf32>, vector<8x128xf32>
    }
    %c8_i32_55 = arith.constant 8 : i32
    return
  }
}

</mosaic_0001>

<bundles_post_ra>
// kernel: hecker_lstm_forward.1
= control target key start
LH: loop header
LB: loop body
LE: loop exit
PB: predicated region body
PF: predicated region fallthrough
CT: control target
= control target key end

     0   :  { %s4566_s0 = inlined_call_operand.vmem [shape: f32[8,8,8], index: 0, kind: input, shape index: {}]   ;;  %s4567_s1 = inlined_call_operand.hbm [shape: f32[8,512], index: 1, kind: input, shape index: {}]   ;;  %s4568_s2 = inlined_call_operand.hbm [shape: f32[128,512], index: 2, kind: input, shape index: {}]   ;;  %s4569_s3 = inlined_call_operand.hbm [shape: f32[1,512], index: 3, kind: input, shape index: {}]   ;;  %s4570_s4 = inlined_call_operand.hbm [shape: f32[8,512], index: 4, kind: input, shape index: {}]   ;;  %s4571_s5 = inlined_call_operand.hbm [shape: f32[128,512], index: 5, kind: input, shape index: {}]   ;;  %s4572_s6 = inlined_call_operand.hbm [shape: f32[1,512], index: 6, kind: input, shape index: {}]   ;;  %s4573_s7 = inlined_call_operand.hbm [shape: f32[128,512], index: 7, kind: input, shape index: {}]   ;;  %s4574_s8 = inlined_call_operand.hbm [shape: f32[128,512], index: 8, kind: input, shape index: {}]   ;;  %s4575_s9 = inlined_call_operand.hbm [shape: f32[128,512], index: 9, kind: input, shape index: {}]   ;;  %s4576_s10 = inlined_call_operand.hbm [shape: f32[1,512], index: 10, kind: input, shape index: {}]   ;;  %s4577_s11 = inlined_call_operand.hbm [shape: f32[128,512], index: 11, kind: input, shape index: {}]   ;;  %s4578_s12 = inlined_call_operand.hbm [shape: f32[128,512], index: 12, kind: input, shape index: {}]   ;;  %s4579_s13 = inlined_call_operand.hbm [shape: f32[128,512], index: 13, kind: input, shape index: {}]   ;;  %s4580_s14 = inlined_call_operand.hbm [shape: f32[1,512], index: 14, kind: input, shape index: {}]   ;;  %s4581_s15 = inlined_call_operand.hbm [shape: f32[128,128], index: 15, kind: input, shape index: {}]   ;;  %s4582_s16 = inlined_call_operand.vmem [shape: f32[128,128], index: 16, kind: input, shape index: {}]   ;;  %s4583_s17 = inlined_call_operand.vmem [shape: f32[8,8,128], index: 17, kind: output, shape index: {}]  }
   0x1   :  { %4585 = sst [smem:[#allocation37_spill]] %s4566_s0 }
   0x2   :  { %4586 = sst [smem:[#allocation38_spill]] %s4567_s1 }
   0x3   :  { %22 = vsyncpa [#allocation7], 0 }
   0x4   :  { %23 = vsyncpa [#allocation9], 0 }
   0x5   :  { %24 = vsyncpa [#allocation12], 0 }
   0x6   :  { %25 = vsyncpa [#allocation15], 0 }
   0x7   :  { %26 = vsyncpa [#allocation18], 0 }
   0x8   :  { %27 = vsyncpa [#allocation21], 0 }
   0x9   :  { %28 = vsyncpa [#allocation24], 0  ;;  %s47_s26 = sshll.u32 %s4568_s2, 4  ;;  %s48_s26 = int_to_ptr.hbm [resolvable:$true] %s47_s26 }
   0xa   :  { %29 = vsyncpa [#allocation27], 0  ;;  %s3556_s27 = smov [#allocation8]   ;;  %s72_s30 = sshll.u32 %s4570_s4, 4  ;;  %s73_s30 = int_to_ptr.hbm [resolvable:$true] %s72_s30 }
   0xb   :  { %s49_s28 = sshll.u32 %s3556_s27, 4  ;;  %s3557_s18 = smov 512   ;;  %s50_s28 = int_to_ptr.vmem [resolvable:$true] %s49_s28 }
   0xc   :  { %s3558_s19 = smov 32   ;;  %s3559_s1 = smov [#allocation11]  }
   0xd   :  { %55 = dma.hbm_to_vmem [thread:$0]  %s48_s26, 8192, %s50_s28, [#allocation9], %s3557_s18, %s3557_s18, %s3558_s19  }
   0xe   :  { %s74_s20 = sshll.u32 %s3559_s1, 4  ;;  %s96_s22 = sshll.u32 %s4572_s6, 4  ;;  %s75_s20 = int_to_ptr.vmem [resolvable:$true] %s74_s20  ;;  %s97_s22 = int_to_ptr.hbm [resolvable:$true] %s96_s22 }
   0xf   :  { %77 = dma.hbm_to_vmem [thread:$0]  %s73_s30, 512, %s75_s20, [#allocation12]  }
  0x10   :  { %s119_s4 = sshll.u32 %s4574_s8, 4  ;;  %s3560_s25 = smov [#allocation14]   ;;  %s120_s4 = int_to_ptr.hbm [resolvable:$true] %s119_s4 }
  0x11   :  { %s98_s27 = sshll.u32 %s3560_s25, 4  ;;  %s3561_s26 = smov [#allocation17]   ;;  %s99_s27 = int_to_ptr.vmem [resolvable:$true] %s98_s27 }
  0x12   :  { %101 = dma.hbm_to_vmem [thread:$0]  %s97_s22, 64, %s99_s27, [#allocation15]  }
  0x13   :  { %s121_s28 = sshll.u32 %s3561_s26, 4  ;;  %s146_s1 = sshll.u32 %s4576_s10, 4  ;;  %s122_s28 = int_to_ptr.vmem [resolvable:$true] %s121_s28  ;;  %s147_s1 = int_to_ptr.hbm [resolvable:$true] %s146_s1 }
  0x14   :  { %127 = dma.hbm_to_vmem [thread:$0]  %s120_s4, 8192, %s122_s28, [#allocation18], %s3557_s18, %s3557_s18, %s3558_s19  }
  0x15   :  { %s169_s8 = sshll.u32 %s4578_s12, 4  ;;  %s3562_s20 = smov [#allocation20]   ;;  %s170_s8 = int_to_ptr.hbm [resolvable:$true] %s169_s8 }
  0x16   :  { %s148_s21 = sshll.u32 %s3562_s20, 4  ;;  %s3563_s2 = smov [#allocation23]   ;;  %s149_s21 = int_to_ptr.vmem [resolvable:$true] %s148_s21 }
  0x17   :  { %151 = dma.hbm_to_vmem [thread:$0]  %s147_s1, 64, %s149_s21, [#allocation21]  }
  0x18   :  { %s171_s22 = sshll.u32 %s3563_s2, 4  ;;  %s196_s10 = sshll.u32 %s4580_s14, 4  ;;  %s172_s22 = int_to_ptr.vmem [resolvable:$true] %s171_s22  ;;  %s197_s10 = int_to_ptr.hbm [resolvable:$true] %s196_s10 }
  0x19   :  { %177 = dma.hbm_to_vmem [thread:$0]  %s170_s8, 8192, %s172_s22, [#allocation24], %s3557_s18, %s3557_s18, %s3558_s19  }
  0x1a   :  { %s4587_s12 = sld [smem:[#allocation38_spill]]  ;;  %s3564_s26 = smov [#allocation26]  }
  0x1b   :  { %s198_s28 = sshll.u32 %s3564_s26, 4  ;;  %s3565_s29 = smov [#allocation6]   ;;  %s199_s28 = int_to_ptr.vmem [resolvable:$true] %s198_s28 }
  0x1c   :  { %201 = dma.hbm_to_vmem [thread:$0]  %s197_s10, 64, %s199_s28, [#allocation27]  }
  0x1d   :  { %s39_s0 = sshll.u32 %s3565_s29, 4  ;;  %s61_s14 = sshll.u32 %s4569_s3, 4  ;;  %s40_s0 = int_to_ptr.vmem [resolvable:$true] %s39_s0  ;;  %s62_s14 = int_to_ptr.hbm [resolvable:$true] %s61_s14 }
  0x1e   :  { %s82_s20 = sshll.u32 %s4571_s5, 4  ;;  %s3566_s21 = smov [#allocation10]   ;;  %s83_s20 = int_to_ptr.hbm [resolvable:$true] %s82_s20 }
  0x1f   :  { %s63_s2 = sshll.u32 %s3566_s21, 4  ;;  %s3567_s22 = smov [#allocation13]   ;;  %s64_s2 = int_to_ptr.vmem [resolvable:$true] %s63_s2 }
  0x20   :  { %s37_s27 = sshll.u32 %s4587_s12, 4  ;;  %s84_s23 = sshll.u32 %s3567_s22, 4  ;;  %s38_s27 = int_to_ptr.hbm [resolvable:$true] %s37_s27  ;;  %s85_s23 = int_to_ptr.vmem [resolvable:$true] %s84_s23 }
  0x21   :  { %42 = dma.hbm_to_vmem [thread:$0]  %s38_s27, 512, %s40_s0, [#allocation7]  }
  0x22   :  { %66 = dma.hbm_to_vmem [thread:$0]  %s62_s14, 64, %s64_s2, [#allocation9]  }
  0x23   :  { %s106_s4 = sshll.u32 %s4573_s7, 4  ;;  %s132_s5 = sshll.u32 %s4575_s9, 4  ;;  %s107_s4 = int_to_ptr.hbm [resolvable:$true] %s106_s4  ;;  %s133_s5 = int_to_ptr.hbm [resolvable:$true] %s132_s5 }
  0x24   :  { %90 = dma.hbm_to_vmem [thread:$0]  %s83_s20, 8192, %s85_s23, [#allocation12], %s3557_s18, %s3557_s18, %s3558_s19  }
  0x25   :  { %s3568_s12 = smov [#allocation16]   ;;  %s3569_s26 = smov [#allocation19]  }
  0x26   :  { %s108_s27 = sshll.u32 %s3568_s12, 4  ;;  %s134_s7 = sshll.u32 %s3569_s26, 4  ;;  %s109_s27 = int_to_ptr.vmem [resolvable:$true] %s108_s27  ;;  %s135_s7 = int_to_ptr.vmem [resolvable:$true] %s134_s7 }
  0x27   :  { %114 = dma.hbm_to_vmem [thread:$0]  %s107_s4, 8192, %s109_s27, [#allocation15], %s3557_s18, %s3557_s18, %s3558_s19  }
  0x28   :  { %s156_s0 = sshll.u32 %s4577_s11, 4  ;;  %s182_s6 = sshll.u32 %s4579_s13, 4  ;;  %s157_s0 = int_to_ptr.hbm [resolvable:$true] %s156_s0  ;;  %s183_s6 = int_to_ptr.hbm [resolvable:$true] %s182_s6 }
  0x29   :  { %140 = dma.hbm_to_vmem [thread:$0]  %s133_s5, 8192, %s135_s7, [#allocation18], %s3557_s18, %s3557_s18, %s3558_s19  }
  0x2a   :  { %s3570_s14 = smov [#allocation22]   ;;  %s3571_s8 = smov [#allocation25]  }
  0x2b   :  { %s158_s30 = sshll.u32 %s3570_s14, 4  ;;  %s184_s11 = sshll.u32 %s3571_s8, 4  ;;  %s159_s30 = int_to_ptr.vmem [resolvable:$true] %s158_s30  ;;  %s185_s11 = int_to_ptr.vmem [resolvable:$true] %s184_s11 }
  0x2c   :  { %164 = dma.hbm_to_vmem [thread:$0]  %s157_s0, 8192, %s159_s30, [#allocation21], %s3557_s18, %s3557_s18, %s3558_s19  }
  0x2d   :  { %s206_s2 = sshll.u32 %s4581_s15, 4  ;;  %s3572_s13 = smov [#allocation28]   ;;  %s207_s2 = int_to_ptr.hbm [resolvable:$true] %s206_s2 }
  0x2e   :  { %190 = dma.hbm_to_vmem [thread:$0]  %s183_s6, 8192, %s185_s11, [#allocation24], %s3557_s18, %s3557_s18, %s3558_s19  }
  0x2f   :  { %s208_s22 = sshll.u32 %s3572_s13, 4  ;;  %s3573_s23 = smov 128   ;;  %s209_s22 = int_to_ptr.vmem [resolvable:$true] %s208_s22 }
  0x30   :  { %s3574_s24 = smov 8  }
  0x31   :  { %214 = dma.hbm_to_vmem [thread:$0]  %s207_s2, 2048, %s209_s22, [#allocation27], %s3573_s23, %s3573_s23, %s3574_s24  }
  0x32   :  { %3500 = dma.done.wait [#allocation7], 512  }
  0x33   :  { %3501 = vsyncadd [#allocation7], 4294966784 }
  0x34   :  { %3502 = dma.done.wait [#allocation9], 8256  }
  0x35   :  { %3503 = vsyncadd [#allocation9], 4294959040 }
  0x36   :  { %3504 = dma.done.wait [#allocation12], 8704  }
  0x37   :  { %3505 = vsyncadd [#allocation12], 4294958592 }
  0x38   :  { %3506 = dma.done.wait [#allocation15], 8256  }
  0x39   :  { %3507 = vsyncadd [#allocation15], 4294959040 }
  0x3a   :  { %3508 = dma.done.wait [#allocation18], 16384  }
  0x3b   :  { %3509 = vsyncadd [#allocation18], 4294950912 }
  0x3c   :  { %3510 = dma.done.wait [#allocation21], 8256  }
  0x3d   :  { %3511 = vsyncadd [#allocation21], 4294959040 }
  0x3e   :  { %3512 = dma.done.wait [#allocation24], 16384  }
  0x3f   :  { %3513 = vsyncadd [#allocation24], 4294950912 }
  0x40   :  { %3514 = dma.done.wait [#allocation27], 2112  }
  0x41   :  { %3515 = vsyncadd [#allocation27], 4294965184  ;;  %vm299_vm0 = vcmask 64512   ;;  %v287_v0 = vld [vmem:[#allocation6 + $0x10] sm:$0xff]  ;;  %v288_v1 = vld [vmem:[#allocation6 + $0x18] sm:$0xff]  ;;  %s4588_s19 = sld [smem:[#allocation37_spill]] }
  0x42   :  { %421 = vmatpush.msra.mxu2 %v287_v0  ;;  %462 = vmatpush.msra.mxu3 %v288_v1  ;;  %v522_v3 = vld [vmem:[#allocation11 + $0x10] sm:$0xff]  ;;  %v523_v4 = vld [vmem:[#allocation11 + $0x18] sm:$0xff]  ;;  %v286_v6 = vld [vmem:[#allocation6 + $0x8] sm:$0xff]  ;;  %s3911_s6 = smov 0  }
  0x43   :  { %v285_v5 = vld [vmem:[#allocation6] sm:$0xff]  ;;  %v521_v8 = vld [vmem:[#allocation11 + $0x8] sm:$0xff]  ;;  %380 = vmatpush.msra.mxu1 %v286_v6 }
  0x44   :  { %631 = vmatpush.msrb.mxu2 %v522_v3  ;;  %672 = vmatpush.msrb.mxu3 %v523_v4  ;;  %v520_v7 = vld [vmem:[#allocation11] sm:$0xff]  ;;  %v289_v16 = vld [vmem:[#allocation10] sm:$0xf] }
  0x45   :  { %339 = vmatpush.msra.mxu0 %v285_v5  ;;  %590 = vmatpush.msrb.mxu1 %v521_v8  ;;  %v3823_v17 = vperm.slane %v289_v16, 0  ;;  %v3825_v18 = vperm.slane %v289_v16, 1  ;;  %v3827_v21 = vperm.slane %v289_v16, 2  ;;  %v3829_v22 = vperm.slane %v289_v16, 3 }
  0x47   :  { %v277_v2 = vld [vmem:[%s4588_s19] sm:$0xff]  ;;  %549 = vmatpush.msrb.mxu0 %v520_v7  ;;  %v278_v9 = vld [vmem:[%s4588_s19 + $0x8] sm:$0xff]  ;;  %v279_v10 = vld [vmem:[%s4588_s19 + $0x10] sm:$0xff] }
  0x48   :  { %2860 = vmatmul.msk.f32.vlgmr.msra.gmra.mxu2 %vm299_vm0, %v277_v2  ;;  %2868 = vmatmul.msk.f32.vlgmr.msra.gmra.mxu3 %vm299_vm0, %v277_v2  ;;  %v280_v11 = vld [vmem:[%s4588_s19 + $0x18] sm:$0xff]  ;;  %v281_v12 = vld [vmem:[%s4588_s19 + $0x20] sm:$0xff]  ;;  %v282_v13 = vld [vmem:[%s4588_s19 + $0x28] sm:$0xff] }
  0x49   :  { %2844 = vmatmul.msk.f32.vlgmr.msra.gmra.mxu0 %vm299_vm0, %v277_v2  ;;  %2852 = vmatmul.msk.f32.vlgmr.msra.gmra.mxu1 %vm299_vm0, %v277_v2  ;;  %v283_v14 = vld [vmem:[%s4588_s19 + $0x30] sm:$0xff]  ;;  %v284_v15 = vld [vmem:[%s4588_s19 + $0x38] sm:$0xff] }
  0x50   :  { %2861 = vmatmul.msk.f32.gmra.mxu2 %vm299_vm0, %v278_v9  ;;  %2869 = vmatmul.msk.f32.gmra.mxu3 %vm299_vm0, %v278_v9 }
  0x51   :  { %2845 = vmatmul.msk.f32.gmra.mxu0 %vm299_vm0, %v278_v9  ;;  %2853 = vmatmul.msk.f32.gmra.mxu1 %vm299_vm0, %v278_v9 }
  0x58   :  { %2862 = vmatmul.msk.f32.gmra.mxu2 %vm299_vm0, %v279_v10  ;;  %2870 = vmatmul.msk.f32.gmra.mxu3 %vm299_vm0, %v279_v10 }
  0x59   :  { %2846 = vmatmul.msk.f32.gmra.mxu0 %vm299_vm0, %v279_v10  ;;  %2854 = vmatmul.msk.f32.gmra.mxu1 %vm299_vm0, %v279_v10 }
  0x60   :  { %2863 = vmatmul.msk.f32.gmra.mxu2 %vm299_vm0, %v280_v11  ;;  %2871 = vmatmul.msk.f32.gmra.mxu3 %vm299_vm0, %v280_v11 }
  0x61   :  { %2847 = vmatmul.msk.f32.gmra.mxu0 %vm299_vm0, %v280_v11  ;;  %2855 = vmatmul.msk.f32.gmra.mxu1 %vm299_vm0, %v280_v11 }
  0x68   :  { %2864 = vmatmul.msk.f32.gmra.mxu2 %vm299_vm0, %v281_v12  ;;  %2872 = vmatmul.msk.f32.gmra.mxu3 %vm299_vm0, %v281_v12 }
  0x69   :  { %2848 = vmatmul.msk.f32.gmra.mxu0 %vm299_vm0, %v281_v12  ;;  %2856 = vmatmul.msk.f32.gmra.mxu1 %vm299_vm0, %v281_v12 }
  0x70   :  { %2865 = vmatmul.msk.f32.gmra.mxu2 %vm299_vm0, %v282_v13  ;;  %2873 = vmatmul.msk.f32.gmra.mxu3 %vm299_vm0, %v282_v13 }
  0x71   :  { %2849 = vmatmul.msk.f32.gmra.mxu0 %vm299_vm0, %v282_v13  ;;  %2857 = vmatmul.msk.f32.gmra.mxu1 %vm299_vm0, %v282_v13 }
  0x78   :  { %2866 = vmatmul.msk.f32.gmra.mxu2 %vm299_vm0, %v283_v14  ;;  %2874 = vmatmul.msk.f32.gmra.mxu3 %vm299_vm0, %v283_v14 }
  0x79   :  { %2850 = vmatmul.msk.f32.gmra.mxu0 %vm299_vm0, %v283_v14  ;;  %2858 = vmatmul.msk.f32.gmra.mxu1 %vm299_vm0, %v283_v14 }
  0x80   :  { %2867 = vmatmul.msk.f32.gmra.mxu2 %vm299_vm0, %v284_v15  ;;  %2875 = vmatmul.msk.f32.gmra.mxu3 %vm299_vm0, %v284_v15 }
  0x81   :  { %2851 = vmatmul.msk.f32.gmra.mxu0 %vm299_vm0, %v284_v15  ;;  %2859 = vmatmul.msk.f32.gmra.mxu1 %vm299_vm0, %v284_v15 }
  0x88   :  { %2892 = vmatmul.msk.f32.vlgmr.msrb.gmra.mxu2 %vm299_vm0, %v277_v2  ;;  %2900 = vmatmul.msk.f32.vlgmr.msrb.gmra.mxu3 %vm299_vm0, %v277_v2 }
  0x89   :  { %2876 = vmatmul.msk.f32.vlgmr.msrb.gmra.mxu0 %vm299_vm0, %v277_v2  ;;  %2884 = vmatmul.msk.f32.vlgmr.msrb.gmra.mxu1 %vm299_vm0, %v277_v2 }
  0x90   :  { %2893 = vmatmul.msk.f32.gmra.mxu2 %vm299_vm0, %v278_v9  ;;  %2901 = vmatmul.msk.f32.gmra.mxu3 %vm299_vm0, %v278_v9 }
  0x91   :  { %2877 = vmatmul.msk.f32.gmra.mxu0 %vm299_vm0, %v278_v9  ;;  %2885 = vmatmul.msk.f32.gmra.mxu1 %vm299_vm0, %v278_v9 }
  0x98   :  { %2894 = vmatmul.msk.f32.gmra.mxu2 %vm299_vm0, %v279_v10  ;;  %2902 = vmatmul.msk.f32.gmra.mxu3 %vm299_vm0, %v279_v10 }
  0x99   :  { %2878 = vmatmul.msk.f32.gmra.mxu0 %vm299_vm0, %v279_v10  ;;  %2886 = vmatmul.msk.f32.gmra.mxu1 %vm299_vm0, %v279_v10 }
  0xa0   :  { %2895 = vmatmul.msk.f32.gmra.mxu2 %vm299_vm0, %v280_v11  ;;  %2903 = vmatmul.msk.f32.gmra.mxu3 %vm299_vm0, %v280_v11 }
  0xa1   :  { %2879 = vmatmul.msk.f32.gmra.mxu0 %vm299_vm0, %v280_v11  ;;  %2887 = vmatmul.msk.f32.gmra.mxu1 %vm299_vm0, %v280_v11 }
  0xa8   :  { %2896 = vmatmul.msk.f32.gmra.mxu2 %vm299_vm0, %v281_v12  ;;  %2904 = vmatmul.msk.f32.gmra.mxu3 %vm299_vm0, %v281_v12 }
  0xa9   :  { %2880 = vmatmul.msk.f32.gmra.mxu0 %vm299_vm0, %v281_v12  ;;  %2888 = vmatmul.msk.f32.gmra.mxu1 %vm299_vm0, %v281_v12 }
  0xb0   :  { %2897 = vmatmul.msk.f32.gmra.mxu2 %vm299_vm0, %v282_v13  ;;  %2905 = vmatmul.msk.f32.gmra.mxu3 %vm299_vm0, %v282_v13 }
  0xb1   :  { %2881 = vmatmul.msk.f32.gmra.mxu0 %vm299_vm0, %v282_v13  ;;  %2889 = vmatmul.msk.f32.gmra.mxu1 %vm299_vm0, %v282_v13 }
  0xb8   :  { %2898 = vmatmul.msk.f32.gmra.mxu2 %vm299_vm0, %v283_v14  ;;  %2906 = vmatmul.msk.f32.gmra.mxu3 %vm299_vm0, %v283_v14 }
  0xb9   :  { %2882 = vmatmul.msk.f32.gmra.mxu0 %vm299_vm0, %v283_v14  ;;  %2890 = vmatmul.msk.f32.gmra.mxu1 %vm299_vm0, %v283_v14 }
  0xc0   :  { %2899 = vmatmul.msk.f32.gmra.mxu2 %vm299_vm0, %v284_v15  ;;  %2907 = vmatmul.msk.f32.gmra.mxu3 %vm299_vm0, %v284_v15 }
  0xc1   :  { %2883 = vmatmul.msk.f32.gmra.mxu0 %vm299_vm0, %v284_v15  ;;  %2891 = vmatmul.msk.f32.gmra.mxu1 %vm299_vm0, %v284_v15 }
  0xc6   :  { %v341_v19 = vpop.f32.mrf.mxu0  ;;  %v382_v20 = vpop.f32.mrf.mxu1 }
  0xc7   :  { %v342_v23 = vadd.f32 %v341_v19, %v3823_v17  ;;  %v383_v24 = vadd.f32 %v382_v20, %v3825_v18  ;;  %v524_v19 = vld [vmem:[#allocation14] sm:$0xf] }
  0xc9   :  { %488 = vst [vmem:[#allocation4] sm:$0xff] %v342_v23 }
  0xca   :  { %489 = vst [vmem:[#allocation4 + $0x8] sm:$0xff] %v383_v24 }
  0xcb   :  { %v423_v25 = vpop.f32.mrf.mxu2  ;;  %v464_v26 = vpop.f32.mrf.mxu3 }
  0xcc   :  { %v424_v27 = vadd.f32 %v423_v25, %v3827_v21  ;;  %v465_v28 = vadd.f32 %v464_v26, %v3829_v22  ;;  %v3863_v26 = vperm.slane %v524_v19, 0 }
  0xce   :  { %490 = vst [vmem:[#allocation4 + $0x10] sm:$0xff] %v424_v27  ;;  %v344_v29 = vpop.f32.mrf.mxu0  ;;  %v385_v30 = vpop.f32.mrf.mxu1  ;;  %v3865_v27 = vperm.slane %v524_v19, 1 }
  0xcf   :  { %491 = vst [vmem:[#allocation4 + $0x18] sm:$0xff] %v465_v28  ;;  %v345_v31 = vadd.f32 %v344_v29, %v3823_v17  ;;  %v386_v32 = vadd.f32 %v385_v30, %v3825_v18 }
  0xd1   :  { %492 = vst [vmem:[#allocation4 + $0x20] sm:$0xff] %v345_v31 }
  0xd2   :  { %493 = vst [vmem:[#allocation4 + $0x28] sm:$0xff] %v386_v32 }
  0xd3   :  { %v426_v33 = vpop.f32.mrf.mxu2  ;;  %v467_v34 = vpop.f32.mrf.mxu3 }
  0xd4   :  { %v427_v35 = vadd.f32 %v426_v33, %v3827_v21  ;;  %v468_v36 = vadd.f32 %v467_v34, %v3829_v22 }
  0xd6   :  { %494 = vst [vmem:[#allocation4 + $0x30] sm:$0xff] %v427_v35  ;;  %v347_v37 = vpop.f32.mrf.mxu0  ;;  %v388_v38 = vpop.f32.mrf.mxu1 }
  0xd7   :  { %495 = vst [vmem:[#allocation4 + $0x38] sm:$0xff] %v468_v36  ;;  %v348_v39 = vadd.f32 %v347_v37, %v3823_v17  ;;  %v389_v40 = vadd.f32 %v388_v38, %v3825_v18 }
  0xd9   :  { %496 = vst [vmem:[#allocation4 + $0x40] sm:$0xff] %v348_v39 }
  0xda   :  { %497 = vst [vmem:[#allocation4 + $0x48] sm:$0xff] %v389_v40 }
  0xdb   :  { %v429_v41 = vpop.f32.mrf.mxu2  ;;  %v470_v42 = vpop.f32.mrf.mxu3 }
  0xdc   :  { %v430_v43 = vadd.f32 %v429_v41, %v3827_v21  ;;  %v471_v44 = vadd.f32 %v470_v42, %v3829_v22 }
  0xde   :  { %498 = vst [vmem:[#allocation4 + $0x50] sm:$0xff] %v430_v43  ;;  %v350_v45 = vpop.f32.mrf.mxu0  ;;  %v391_v46 = vpop.f32.mrf.mxu1 }
  0xdf   :  { %499 = vst [vmem:[#allocation4 + $0x58] sm:$0xff] %v471_v44  ;;  %v351_v47 = vadd.f32 %v350_v45, %v3823_v17  ;;  %v392_v48 = vadd.f32 %v391_v46, %v3825_v18 }
  0xe1   :  { %500 = vst [vmem:[#allocation4 + $0x60] sm:$0xff] %v351_v47 }
  0xe2   :  { %501 = vst [vmem:[#allocation4 + $0x68] sm:$0xff] %v392_v48 }
  0xe3   :  { %v432_v49 = vpop.f32.mrf.mxu2  ;;  %v473_v50 = vpop.f32.mrf.mxu3 }
  0xe4   :  { %v433_v51 = vadd.f32 %v432_v49, %v3827_v21  ;;  %v474_v52 = vadd.f32 %v473_v50, %v3829_v22 }
  0xe6   :  { %502 = vst [vmem:[#allocation4 + $0x70] sm:$0xff] %v433_v51  ;;  %v353_v53 = vpop.f32.mrf.mxu0  ;;  %v394_v54 = vpop.f32.mrf.mxu1 }
  0xe7   :  { %503 = vst [vmem:[#allocation4 + $0x78] sm:$0xff] %v474_v52  ;;  %v354_v55 = vadd.f32 %v353_v53, %v3823_v17  ;;  %v395_v56 = vadd.f32 %v394_v54, %v3825_v18 }
  0xe9   :  { %504 = vst [vmem:[#allocation4 + $0x80] sm:$0xff] %v354_v55 }
  0xea   :  { %505 = vst [vmem:[#allocation4 + $0x88] sm:$0xff] %v395_v56 }
  0xeb   :  { %v435_v57 = vpop.f32.mrf.mxu2  ;;  %v476_v58 = vpop.f32.mrf.mxu3 }
  0xec   :  { %v436_v59 = vadd.f32 %v435_v57, %v3827_v21  ;;  %v477_v60 = vadd.f32 %v476_v58, %v3829_v22 }
  0xee   :  { %506 = vst [vmem:[#allocation4 + $0x90] sm:$0xff] %v436_v59  ;;  %v356_v61 = vpop.f32.mrf.mxu0  ;;  %v397_v62 = vpop.f32.mrf.mxu1 }
  0xef   :  { %507 = vst [vmem:[#allocation4 + $0x98] sm:$0xff] %v477_v60  ;;  %v357_v63 = vadd.f32 %v356_v61, %v3823_v17  ;;  %v398_v0 = vadd.f32 %v397_v62, %v3825_v18 }
  0xf1   :  { %508 = vst [vmem:[#allocation4 + $0xa0] sm:$0xff] %v357_v63 }
  0xf2   :  { %509 = vst [vmem:[#allocation4 + $0xa8] sm:$0xff] %v398_v0 }
  0xf3   :  { %v438_v1 = vpop.f32.mrf.mxu2  ;;  %v479_v2 = vpop.f32.mrf.mxu3 }
  0xf4   :  { %v439_v3 = vadd.f32 %v438_v1, %v3827_v21  ;;  %v480_v4 = vadd.f32 %v479_v2, %v3829_v22 }
  0xf6   :  { %510 = vst [vmem:[#allocation4 + $0xb0] sm:$0xff] %v439_v3  ;;  %v359_v5 = vpop.f32.mrf.mxu0  ;;  %v400_v6 = vpop.f32.mrf.mxu1 }
  0xf7   :  { %511 = vst [vmem:[#allocation4 + $0xb8] sm:$0xff] %v480_v4  ;;  %v360_v7 = vadd.f32 %v359_v5, %v3823_v17  ;;  %v401_v8 = vadd.f32 %v400_v6, %v3825_v18 }
  0xf9   :  { %512 = vst [vmem:[#allocation4 + $0xc0] sm:$0xff] %v360_v7 }
  0xfa   :  { %513 = vst [vmem:[#allocation4 + $0xc8] sm:$0xff] %v401_v8 }
  0xfb   :  { %v441_v9 = vpop.f32.mrf.mxu2  ;;  %v482_v10 = vpop.f32.mrf.mxu3 }
  0xfc   :  { %v442_v11 = vadd.f32 %v441_v9, %v3827_v21  ;;  %v483_v12 = vadd.f32 %v482_v10, %v3829_v22 }
  0xfe   :  { %514 = vst [vmem:[#allocation4 + $0xd0] sm:$0xff] %v442_v11  ;;  %v362_v13 = vpop.f32.mrf.mxu0  ;;  %v403_v14 = vpop.f32.mrf.mxu1 }
  0xff   :  { %515 = vst [vmem:[#allocation4 + $0xd8] sm:$0xff] %v483_v12  ;;  %v363_v15 = vadd.f32 %v362_v13, %v3823_v17  ;;  %v404_v16 = vadd.f32 %v403_v14, %v3825_v18  ;;  %v3867_v17 = vperm.slane %v524_v19, 2  ;;  %v3869_v18 = vperm.slane %v524_v19, 3 }
 0x101   :  { %516 = vst [vmem:[#allocation4 + $0xe0] sm:$0xff] %v363_v15 }
 0x102   :  { %517 = vst [vmem:[#allocation4 + $0xe8] sm:$0xff] %v404_v16 }
 0x103   :  { %v444_v20 = vpop.f32.mrf.mxu2  ;;  %v485_v23 = vpop.f32.mrf.mxu3 }
 0x104   :  { %v445_v24 = vadd.f32 %v444_v20, %v3827_v21  ;;  %v486_v25 = vadd.f32 %v485_v23, %v3829_v22 }
 0x106   :  { %518 = vst [vmem:[#allocation4 + $0xf0] sm:$0xff] %v445_v24  ;;  %v551_v28 = vpop.f32.mrf.mxu0  ;;  %v592_v29 = vpop.f32.mrf.mxu1 }
 0x107   :  { %519 = vst [vmem:[#allocation4 + $0xf8] sm:$0xff] %v486_v25  ;;  %v552_v30 = vadd.f32 %v551_v28, %v3863_v26  ;;  %v593_v31 = vadd.f32 %v592_v29, %v3865_v27 }
 0x109   :  { %698 = vst [vmem:[#allocation5] sm:$0xff] %v552_v30 }
 0x10a   :  { %699 = vst [vmem:[#allocation5 + $0x8] sm:$0xff] %v593_v31 }
 0x10b   :  { %v633_v21 = vpop.f32.mrf.mxu2  ;;  %v674_v32 = vpop.f32.mrf.mxu3 }
 0x10c   :  { %v634_v22 = vadd.f32 %v633_v21, %v3867_v17  ;;  %v675_v33 = vadd.f32 %v674_v32, %v3869_v18  ;;  %v3903_v21 = vmov 0.0   ;;  %v3905_v32 = vmov 0.0  }
 0x10e   :  { %700 = vst [vmem:[#allocation5 + $0x10] sm:$0xff] %v634_v22  ;;  %v554_v34 = vpop.f32.mrf.mxu0  ;;  %v595_v35 = vpop.f32.mrf.mxu1  ;;  %v3907_v22 = vmov 0.0  }
 0x10f   :  { %701 = vst [vmem:[#allocation5 + $0x18] sm:$0xff] %v675_v33  ;;  %v555_v36 = vadd.f32 %v554_v34, %v3863_v26  ;;  %v596_v37 = vadd.f32 %v595_v35, %v3865_v27  ;;  %v3909_v33 = vmov 0.0  }
 0x111   :  { %702 = vst [vmem:[#allocation5 + $0x20] sm:$0xff] %v555_v36 }
 0x112   :  { %703 = vst [vmem:[#allocation5 + $0x28] sm:$0xff] %v596_v37 }
 0x113   :  { %v636_v38 = vpop.f32.mrf.mxu2  ;;  %v677_v39 = vpop.f32.mrf.mxu3 }
 0x114   :  { %v637_v40 = vadd.f32 %v636_v38, %v3867_v17  ;;  %v678_v41 = vadd.f32 %v677_v39, %v3869_v18 }
 0x116   :  { %704 = vst [vmem:[#allocation5 + $0x30] sm:$0xff] %v637_v40  ;;  %v557_v42 = vpop.f32.mrf.mxu0  ;;  %v598_v43 = vpop.f32.mrf.mxu1 }
 0x117   :  { %705 = vst [vmem:[#allocation5 + $0x38] sm:$0xff] %v678_v41  ;;  %v558_v44 = vadd.f32 %v557_v42, %v3863_v26  ;;  %v599_v45 = vadd.f32 %v598_v43, %v3865_v27 }
 0x119   :  { %706 = vst [vmem:[#allocation5 + $0x40] sm:$0xff] %v558_v44 }
 0x11a   :  { %707 = vst [vmem:[#allocation5 + $0x48] sm:$0xff] %v599_v45 }
 0x11b   :  { %v639_v46 = vpop.f32.mrf.mxu2  ;;  %v680_v47 = vpop.f32.mrf.mxu3 }
 0x11c   :  { %v640_v48 = vadd.f32 %v639_v46, %v3867_v17  ;;  %v681_v49 = vadd.f32 %v680_v47, %v3869_v18 }
 0x11e   :  { %708 = vst [vmem:[#allocation5 + $0x50] sm:$0xff] %v640_v48  ;;  %v560_v50 = vpop.f32.mrf.mxu0  ;;  %v601_v51 = vpop.f32.mrf.mxu1 }
 0x11f   :  { %709 = vst [vmem:[#allocation5 + $0x58] sm:$0xff] %v681_v49  ;;  %v561_v52 = vadd.f32 %v560_v50, %v3863_v26  ;;  %v602_v53 = vadd.f32 %v601_v51, %v3865_v27 }
 0x121   :  { %710 = vst [vmem:[#allocation5 + $0x60] sm:$0xff] %v561_v52 }
 0x122   :  { %711 = vst [vmem:[#allocation5 + $0x68] sm:$0xff] %v602_v53 }
 0x123   :  { %v642_v54 = vpop.f32.mrf.mxu2  ;;  %v683_v55 = vpop.f32.mrf.mxu3 }
 0x124   :  { %v643_v56 = vadd.f32 %v642_v54, %v3867_v17  ;;  %v684_v57 = vadd.f32 %v683_v55, %v3869_v18 }
 0x126   :  { %712 = vst [vmem:[#allocation5 + $0x70] sm:$0xff] %v643_v56  ;;  %v563_v58 = vpop.f32.mrf.mxu0  ;;  %v604_v59 = vpop.f32.mrf.mxu1 }
 0x127   :  { %713 = vst [vmem:[#allocation5 + $0x78] sm:$0xff] %v684_v57  ;;  %v564_v60 = vadd.f32 %v563_v58, %v3863_v26  ;;  %v605_v61 = vadd.f32 %v604_v59, %v3865_v27 }
 0x129   :  { %714 = vst [vmem:[#allocation5 + $0x80] sm:$0xff] %v564_v60 }
 0x12a   :  { %715 = vst [vmem:[#allocation5 + $0x88] sm:$0xff] %v605_v61 }
 0x12b   :  { %v645_v62 = vpop.f32.mrf.mxu2  ;;  %v686_v63 = vpop.f32.mrf.mxu3 }
 0x12c   :  { %v646_v0 = vadd.f32 %v645_v62, %v3867_v17  ;;  %v687_v1 = vadd.f32 %v686_v63, %v3869_v18 }
 0x12e   :  { %716 = vst [vmem:[#allocation5 + $0x90] sm:$0xff] %v646_v0  ;;  %v566_v2 = vpop.f32.mrf.mxu0  ;;  %v607_v3 = vpop.f32.mrf.mxu1 }
 0x12f   :  { %717 = vst [vmem:[#allocation5 + $0x98] sm:$0xff] %v687_v1  ;;  %v567_v4 = vadd.f32 %v566_v2, %v3863_v26  ;;  %v608_v5 = vadd.f32 %v607_v3, %v3865_v27 }
 0x131   :  { %718 = vst [vmem:[#allocation5 + $0xa0] sm:$0xff] %v567_v4 }
 0x132   :  { %719 = vst [vmem:[#allocation5 + $0xa8] sm:$0xff] %v608_v5 }
 0x133   :  { %v648_v6 = vpop.f32.mrf.mxu2  ;;  %v689_v7 = vpop.f32.mrf.mxu3 }
 0x134   :  { %v649_v8 = vadd.f32 %v648_v6, %v3867_v17  ;;  %v690_v9 = vadd.f32 %v689_v7, %v3869_v18 }
 0x136   :  { %720 = vst [vmem:[#allocation5 + $0xb0] sm:$0xff] %v649_v8  ;;  %v569_v10 = vpop.f32.mrf.mxu0  ;;  %v610_v11 = vpop.f32.mrf.mxu1 }
 0x137   :  { %721 = vst [vmem:[#allocation5 + $0xb8] sm:$0xff] %v690_v9  ;;  %v570_v12 = vadd.f32 %v569_v10, %v3863_v26  ;;  %v611_v13 = vadd.f32 %v610_v11, %v3865_v27 }
 0x139   :  { %722 = vst [vmem:[#allocation5 + $0xc0] sm:$0xff] %v570_v12 }
 0x13a   :  { %723 = vst [vmem:[#allocation5 + $0xc8] sm:$0xff] %v611_v13 }
 0x13b   :  { %v651_v14 = vpop.f32.mrf.mxu2  ;;  %v692_v15 = vpop.f32.mrf.mxu3 }
 0x13c   :  { %v652_v16 = vadd.f32 %v651_v14, %v3867_v17  ;;  %v693_v19 = vadd.f32 %v692_v15, %v3869_v18 }
 0x13e   :  { %724 = vst [vmem:[#allocation5 + $0xd0] sm:$0xff] %v652_v16  ;;  %v572_v20 = vpop.f32.mrf.mxu0  ;;  %v613_v23 = vpop.f32.mrf.mxu1 }
 0x13f   :  { %725 = vst [vmem:[#allocation5 + $0xd8] sm:$0xff] %v693_v19  ;;  %v573_v24 = vadd.f32 %v572_v20, %v3863_v26  ;;  %v614_v25 = vadd.f32 %v613_v23, %v3865_v27 }
 0x141   :  { %726 = vst [vmem:[#allocation5 + $0xe0] sm:$0xff] %v573_v24 }
 0x142   :  { %727 = vst [vmem:[#allocation5 + $0xe8] sm:$0xff] %v614_v25 }
 0x143   :  { %v654_v28 = vpop.f32.mrf.mxu2  ;;  %v695_v29 = vpop.f32.mrf.mxu3 }
 0x144   :  { %v655_v30 = vadd.f32 %v654_v28, %v3867_v17  ;;  %v696_v31 = vadd.f32 %v695_v29, %v3869_v18 }
 0x146   :  { %728 = vst [vmem:[#allocation5 + $0xf0] sm:$0xff] %v655_v30 }
 0x147   :  { %729 = vst [vmem:[#allocation5 + $0xf8] sm:$0xff] %v696_v31 }
 0x148 LB: > { %v801_v26 = vld [vmem:[#allocation8 + $0x1e0] sm:$0xff]  ;;  %v802_v27 = vld [vmem:[#allocation8 + $0x1e8] sm:$0xff]  ;;  %v803_v17 = vld [vmem:[#allocation8 + $0x1f0] sm:$0xff]  ;;  %s2932_s14 = sshll.u32 %s3534_s6, 5  ;;  %s740_s8 = ssub.s32 7, %s3534_s6  ;;  %s3534_s6 = sphi %s3911_s6, %s735_s6   ;;  %v3530_v33 = vphi %v3909_v33, %v1105_v33   ;;  %v3526_v22 = vphi %v3907_v22, %v3965_v22   ;;  %v3522_v32 = vphi %v3905_v32, %v1168_v32   ;;  %v3518_v21 = vphi %v3903_v21, %v1166_v21  }
 0x149   : > { %812 = vmatpush.msra.mxu0 %v801_v26  ;;  %832 = vmatpush.msra.mxu1 %v802_v27  ;;  %v797_v18 = vld [vmem:[#allocation8 + $0x1c0] sm:$0xff]  ;;  %v798_v34 = vld [vmem:[#allocation8 + $0x1c8] sm:$0xff]  ;;  %v799_v35 = vld [vmem:[#allocation8 + $0x1d0] sm:$0xff]  ;;  %s3937_s30 = scalar_lea.vmem [#allocation4], %s2932_s14  ;;  %s2933_s11 = sshll.u32 %s740_s8, 5 }
 0x14a   : > { %852 = vmatpush.msra.mxu2 %v803_v17  ;;  %v793_v36 = vld [vmem:[#allocation8 + $0x1a0] sm:$0xff]  ;;  %v794_v37 = vld [vmem:[#allocation8 + $0x1a8] sm:$0xff]  ;;  %v795_v38 = vld [vmem:[#allocation8 + $0x1b0] sm:$0xff]  ;;  %s3946_s20 = scalar_lea.vmem [#allocation5], %s2933_s11  ;;  %s2918_s21 = sshll.u32 %s3534_s6, 3 }
 0x14b   : > { %813 = vmatpush.msra.mxu0 %v797_v18  ;;  %833 = vmatpush.msra.mxu1 %v798_v34  ;;  %v789_v39 = vld [vmem:[#allocation8 + $0x180] sm:$0xff]  ;;  %v790_v40 = vld [vmem:[#allocation8 + $0x188] sm:$0xff]  ;;  %v791_v41 = vld [vmem:[#allocation8 + $0x190] sm:$0xff]  ;;  %s1170_s2 = scalar_lea.vmem [#allocation2], %s2918_s21  ;;  %s2919_s13 = sshll.u32 %s740_s8, 3 }
 0x14c   : > { %853 = vmatpush.msra.mxu2 %v799_v35  ;;  %v785_v42 = vld [vmem:[#allocation8 + $0x160] sm:$0xff]  ;;  %v786_v43 = vld [vmem:[#allocation8 + $0x168] sm:$0xff]  ;;  %v787_v44 = vld [vmem:[#allocation8 + $0x170] sm:$0xff]  ;;  %s1173_s22 = scalar_lea.vmem [#allocation3], %s2919_s13  ;;  %s735_s6 = sadd.s32 1, %s3534_s6  }
 0x14d   : > { %814 = vmatpush.msra.mxu0 %v793_v36  ;;  %834 = vmatpush.msra.mxu1 %v794_v37  ;;  %v781_v45 = vld [vmem:[#allocation8 + $0x140] sm:$0xff]  ;;  %v782_v46 = vld [vmem:[#allocation8 + $0x148] sm:$0xff]  ;;  %v804_v47 = vld [vmem:[#allocation8 + $0x1f8] sm:$0xff]  ;;  %p732_p0 = scmp.ge.s32.totalorder %s735_s6, 8  }
 0x14e   : > { %854 = vmatpush.msra.mxu2 %v795_v38  ;;  %v783_v48 = vld [vmem:[#allocation8 + $0x150] sm:$0xff]  ;;  %v800_v49 = vld [vmem:[#allocation8 + $0x1d8] sm:$0xff]  ;;  %v777_v50 = vld [vmem:[#allocation8 + $0x120] sm:$0xff]  ;;  %872 = vmatpush.msra.mxu3 %v804_v47  ;;  %s4419_s0 = smov (%p732_p0), 0  }
 0x14f   : > { %815 = vmatpush.msra.mxu0 %v789_v39  ;;  %835 = vmatpush.msra.mxu1 %v790_v40  ;;  %v778_v51 = vld [vmem:[#allocation8 + $0x128] sm:$0xff]  ;;  %v779_v52 = vld [vmem:[#allocation8 + $0x130] sm:$0xff]  ;;  %v796_v53 = vld [vmem:[#allocation8 + $0x1b8] sm:$0xff] }
 0x150   : > { %855 = vmatpush.msra.mxu2 %v791_v41  ;;  %v773_v54 = vld [vmem:[#allocation8 + $0x100] sm:$0xff]  ;;  %v774_v55 = vld [vmem:[#allocation8 + $0x108] sm:$0xff]  ;;  %873 = vmatpush.msra.mxu3 %v800_v49  ;;  %v775_v56 = vld [vmem:[#allocation8 + $0x110] sm:$0xff] }
 0x151   : > { %816 = vmatpush.msra.mxu0 %v785_v42  ;;  %836 = vmatpush.msra.mxu1 %v786_v43  ;;  %v792_v57 = vld [vmem:[#allocation8 + $0x198] sm:$0xff]  ;;  %v769_v58 = vld [vmem:[#allocation8 + $0xe0] sm:$0xff]  ;;  %v770_v59 = vld [vmem:[#allocation8 + $0xe8] sm:$0xff] }
 0x152   : > { %856 = vmatpush.msra.mxu2 %v787_v44  ;;  %874 = vmatpush.msra.mxu3 %v796_v53  ;;  %v771_v60 = vld [vmem:[#allocation8 + $0xf0] sm:$0xff]  ;;  %v788_v61 = vld [vmem:[#allocation8 + $0x178] sm:$0xff]  ;;  %v765_v62 = vld [vmem:[#allocation8 + $0xc0] sm:$0xff] }
 0x153   : > { %817 = vmatpush.msra.mxu0 %v781_v45  ;;  %837 = vmatpush.msra.mxu1 %v782_v46  ;;  %v766_v63 = vld [vmem:[#allocation8 + $0xc8] sm:$0xff]  ;;  %v767_v0 = vld [vmem:[#allocation8 + $0xd0] sm:$0xff]  ;;  %v784_v1 = vld [vmem:[#allocation8 + $0x158] sm:$0xff] }
 0x154   : > { %857 = vmatpush.msra.mxu2 %v783_v48  ;;  %875 = vmatpush.msra.mxu3 %v792_v57  ;;  %v761_v2 = vld [vmem:[#allocation8 + $0xa0] sm:$0xff]  ;;  %v762_v3 = vld [vmem:[#allocation8 + $0xa8] sm:$0xff]  ;;  %v763_v4 = vld [vmem:[#allocation8 + $0xb0] sm:$0xff] }
 0x155   : > { %818 = vmatpush.msra.mxu0 %v777_v50  ;;  %838 = vmatpush.msra.mxu1 %v778_v51  ;;  %v780_v5 = vld [vmem:[#allocation8 + $0x138] sm:$0xff]  ;;  %v757_v6 = vld [vmem:[#allocation8 + $0x80] sm:$0xff]  ;;  %v758_v7 = vld [vmem:[#allocation8 + $0x88] sm:$0xff] }
 0x156   : > { %858 = vmatpush.msra.mxu2 %v779_v52  ;;  %876 = vmatpush.msra.mxu3 %v788_v61  ;;  %v759_v8 = vld [vmem:[#allocation8 + $0x90] sm:$0xff]  ;;  %v776_v9 = vld [vmem:[#allocation8 + $0x118] sm:$0xff]  ;;  %v753_v10 = vld [vmem:[#allocation8 + $0x60] sm:$0xff] }
 0x157   : > { %819 = vmatpush.msra.mxu0 %v773_v54  ;;  %839 = vmatpush.msra.mxu1 %v774_v55  ;;  %v754_v11 = vld [vmem:[#allocation8 + $0x68] sm:$0xff]  ;;  %v755_v12 = vld [vmem:[#allocation8 + $0x70] sm:$0xff]  ;;  %v772_v13 = vld [vmem:[#allocation8 + $0xf8] sm:$0xff] }
 0x158   : > { %859 = vmatpush.msra.mxu2 %v775_v56  ;;  %877 = vmatpush.msra.mxu3 %v784_v1  ;;  %v749_v14 = vld [vmem:[#allocation8 + $0x40] sm:$0xff]  ;;  %v750_v15 = vld [vmem:[#allocation8 + $0x48] sm:$0xff]  ;;  %v751_v16 = vld [vmem:[#allocation8 + $0x50] sm:$0xff] }
 0x159   : > { %820 = vmatpush.msra.mxu0 %v769_v58  ;;  %840 = vmatpush.msra.mxu1 %v770_v59  ;;  %v768_v19 = vld [vmem:[#allocation8 + $0xd8] sm:$0xff]  ;;  %v745_v20 = vld [vmem:[#allocation8 + $0x20] sm:$0xff]  ;;  %v746_v23 = vld [vmem:[#allocation8 + $0x28] sm:$0xff] }
 0x15a   : > { %860 = vmatpush.msra.mxu2 %v771_v60  ;;  %878 = vmatpush.msra.mxu3 %v780_v5  ;;  %v747_v24 = vld [vmem:[#allocation8 + $0x30] sm:$0xff]  ;;  %v764_v25 = vld [vmem:[#allocation8 + $0xb8] sm:$0xff]  ;;  %v741_v28 = vld [vmem:[#allocation8] sm:$0xff] }
 0x15b   : > { %821 = vmatpush.msra.mxu0 %v765_v62  ;;  %841 = vmatpush.msra.mxu1 %v766_v63  ;;  %v742_v29 = vld [vmem:[#allocation8 + $0x8] sm:$0xff]  ;;  %v743_v30 = vld [vmem:[#allocation8 + $0x10] sm:$0xff]  ;;  %v760_v18 = vld [vmem:[#allocation8 + $0x98] sm:$0xff] }
 0x15c   : > { %861 = vmatpush.msra.mxu2 %v767_v0  ;;  %879 = vmatpush.msra.mxu3 %v776_v9  ;;  %v952_v31 = vld [vmem:[#allocation13 + $0x1e0] sm:$0xff]  ;;  %v953_v26 = vld [vmem:[#allocation13 + $0x1e8] sm:$0xff]  ;;  %v954_v27 = vld [vmem:[#allocation13 + $0x1f0] sm:$0xff] }
 0x15d   : > { %822 = vmatpush.msra.mxu0 %v761_v2  ;;  %842 = vmatpush.msra.mxu1 %v762_v3  ;;  %v948_v17 = vld [vmem:[#allocation13 + $0x1c0] sm:$0xff]  ;;  %v949_v34 = vld [vmem:[#allocation13 + $0x1c8] sm:$0xff]  ;;  %v950_v35 = vld [vmem:[#allocation13 + $0x1d0] sm:$0xff] }
 0x15e   : > { %862 = vmatpush.msra.mxu2 %v763_v4  ;;  %880 = vmatpush.msra.mxu3 %v772_v13  ;;  %v944_v36 = vld [vmem:[#allocation13 + $0x1a0] sm:$0xff]  ;;  %v756_v37 = vld [vmem:[#allocation8 + $0x78] sm:$0xff]  ;;  %v945_v38 = vld [vmem:[#allocation13 + $0x1a8] sm:$0xff] }
 0x15f   : > { %823 = vmatpush.msra.mxu0 %v757_v6  ;;  %843 = vmatpush.msra.mxu1 %v758_v7  ;;  %v946_v39 = vld [vmem:[#allocation13 + $0x1b0] sm:$0xff]  ;;  %v940_v40 = vld [vmem:[#allocation13 + $0x180] sm:$0xff]  ;;  %v941_v41 = vld [vmem:[#allocation13 + $0x188] sm:$0xff] }
 0x160   : > { %863 = vmatpush.msra.mxu2 %v759_v8  ;;  %881 = vmatpush.msra.mxu3 %v768_v19  ;;  %v942_v42 = vld [vmem:[#allocation13 + $0x190] sm:$0xff]  ;;  %v936_v43 = vld [vmem:[#allocation13 + $0x160] sm:$0xff]  ;;  %v937_v45 = vld [vmem:[#allocation13 + $0x168] sm:$0xff] }
 0x161   : > { %824 = vmatpush.msra.mxu0 %v753_v10  ;;  %844 = vmatpush.msra.mxu1 %v754_v11  ;;  %v752_v44 = vld [vmem:[#allocation8 + $0x58] sm:$0xff]  ;;  %v932_v48 = vld [vmem:[#allocation13 + $0x140] sm:$0xff]  ;;  %v933_v49 = vld [vmem:[#allocation13 + $0x148] sm:$0xff] }
 0x162   : > { %864 = vmatpush.msra.mxu2 %v755_v12  ;;  %882 = vmatpush.msra.mxu3 %v764_v25  ;;  %v938_v46 = vld [vmem:[#allocation13 + $0x170] sm:$0xff]  ;;  %v928_v52 = vld [vmem:[#allocation13 + $0x120] sm:$0xff]  ;;  %v929_v53 = vld [vmem:[#allocation13 + $0x128] sm:$0xff] }
 0x163   : > { %825 = vmatpush.msra.mxu0 %v749_v14  ;;  %845 = vmatpush.msra.mxu1 %v750_v15  ;;  %v748_v47 = vld [vmem:[#allocation8 + $0x38] sm:$0xff]  ;;  %v924_v56 = vld [vmem:[#allocation13 + $0x100] sm:$0xff]  ;;  %v925_v57 = vld [vmem:[#allocation13 + $0x108] sm:$0xff] }
 0x164   : > { %865 = vmatpush.msra.mxu2 %v751_v16  ;;  %883 = vmatpush.msra.mxu3 %v760_v18  ;;  %v934_v50 = vld [vmem:[#allocation13 + $0x150] sm:$0xff]  ;;  %v955_v55 = vld [vmem:[#allocation13 + $0x1f8] sm:$0xff]  ;;  %v920_v60 = vld [vmem:[#allocation13 + $0xe0] sm:$0xff] }
 0x165   : > { %826 = vmatpush.msra.mxu0 %v745_v20  ;;  %846 = vmatpush.msra.mxu1 %v746_v23  ;;  %v744_v51 = vld [vmem:[#allocation8 + $0x18] sm:$0xff]  ;;  %v921_v61 = vld [vmem:[#allocation13 + $0xe8] sm:$0xff]  ;;  %v916_v63 = vld [vmem:[#allocation13 + $0xc0] sm:$0xff] }
 0x166   : > { %866 = vmatpush.msra.mxu2 %v747_v24  ;;  %884 = vmatpush.msra.mxu3 %v756_v37  ;;  %v930_v54 = vld [vmem:[#allocation13 + $0x130] sm:$0xff]  ;;  %v951_v59 = vld [vmem:[#allocation13 + $0x1d8] sm:$0xff]  ;;  %v917_v1 = vld [vmem:[#allocation13 + $0xc8] sm:$0xff] }
 0x167   : > { %827 = vmatpush.msra.mxu0 %v741_v28  ;;  %847 = vmatpush.msra.mxu1 %v742_v29  ;;  %v926_v58 = vld [vmem:[#allocation13 + $0x110] sm:$0xff]  ;;  %v947_v0 = vld [vmem:[#allocation13 + $0x1b8] sm:$0xff]  ;;  %v912_v3 = vld [vmem:[#allocation13 + $0xa0] sm:$0xff] }
 0x168   : > { %867 = vmatpush.msra.mxu2 %v743_v30  ;;  %848 = vmatmul.f32.vlgmr.msra.gmra.mxu1 %v3530_v33  ;;  %v922_v62 = vld [vmem:[#allocation13 + $0xf0] sm:$0xff]  ;;  %v943_v4 = vld [vmem:[#allocation13 + $0x198] sm:$0xff]  ;;  %v913_v5 = vld [vmem:[#allocation13 + $0xa8] sm:$0xff] }
 0x169   : > { %963 = vmatpush.msrb.mxu0 %v952_v31  ;;  %983 = vmatpush.msrb.mxu1 %v953_v26  ;;  %v918_v2 = vld [vmem:[#allocation13 + $0xd0] sm:$0xff]  ;;  %v908_v7 = vld [vmem:[#allocation13 + $0x80] sm:$0xff]  ;;  %v939_v8 = vld [vmem:[#allocation13 + $0x178] sm:$0xff] }
 0x16a   : > { %1003 = vmatpush.msrb.mxu2 %v954_v27  ;;  %885 = vmatpush.msra.mxu3 %v752_v44  ;;  %v914_v6 = vld [vmem:[#allocation13 + $0xb0] sm:$0xff]  ;;  %v909_v9 = vld [vmem:[#allocation13 + $0x88] sm:$0xff]  ;;  %v904_v11 = vld [vmem:[#allocation13 + $0x60] sm:$0xff] }
 0x16b   : > { %964 = vmatpush.msrb.mxu0 %v948_v17  ;;  %984 = vmatpush.msrb.mxu1 %v949_v34  ;;  %v910_v10 = vld [vmem:[#allocation13 + $0x90] sm:$0xff]  ;;  %v905_v12 = vld [vmem:[#allocation13 + $0x68] sm:$0xff]  ;;  %v935_v14 = vld [vmem:[#allocation13 + $0x158] sm:$0xff] }
 0x16c   : > { %1004 = vmatpush.msrb.mxu2 %v950_v35  ;;  %828 = vmatmul.f32.vlgmr.msra.gmra.mxu0 %v3530_v33  ;;  %v906_v13 = vld [vmem:[#allocation13 + $0x70] sm:$0xff]  ;;  %v900_v15 = vld [vmem:[#allocation13 + $0x40] sm:$0xff]  ;;  %v901_v16 = vld [vmem:[#allocation13 + $0x48] sm:$0xff] }
 0x16d   : > { %965 = vmatpush.msrb.mxu0 %v944_v36  ;;  %985 = vmatpush.msrb.mxu1 %v945_v38  ;;  %v902_v19 = vld [vmem:[#allocation13 + $0x50] sm:$0xff]  ;;  %v931_v20 = vld [vmem:[#allocation13 + $0x138] sm:$0xff]  ;;  %v896_v23 = vld [vmem:[#allocation13 + $0x20] sm:$0xff] }
 0x16e   : > { %1005 = vmatpush.msrb.mxu2 %v946_v39  ;;  %886 = vmatpush.msra.mxu3 %v748_v47  ;;  %v897_v24 = vld [vmem:[#allocation13 + $0x28] sm:$0xff]  ;;  %v898_v25 = vld [vmem:[#allocation13 + $0x30] sm:$0xff]  ;;  %v927_v28 = vld [vmem:[#allocation13 + $0x118] sm:$0xff] }
 0x16f   : > { %966 = vmatpush.msrb.mxu0 %v940_v40  ;;  %986 = vmatpush.msrb.mxu1 %v941_v41  ;;  %v892_v29 = vld [vmem:[#allocation13] sm:$0xff]  ;;  %v893_v30 = vld [vmem:[#allocation13 + $0x8] sm:$0xff]  ;;  %v894_v31 = vld [vmem:[#allocation13 + $0x10] sm:$0xff] }
 0x170   : > { %1006 = vmatpush.msrb.mxu2 %v942_v42  ;;  %887 = vmatpush.msra.mxu3 %v744_v51  ;;  %v919_v26 = vld [vmem:[#allocation13 + $0xd8] sm:$0xff]  ;;  %v809_v37 = vld [vmem:[%s3937_s30 + $0x8] sm:$0xff]  ;;  %v810_v47 = vld [vmem:[%s3937_s30 + $0x10] sm:$0xff] }
 0x171   : > { %967 = vmatpush.msrb.mxu0 %v936_v43  ;;  %987 = vmatpush.msrb.mxu1 %v937_v45  ;;  %v915_v27 = vld [vmem:[#allocation13 + $0xb8] sm:$0xff] }
 0x172   : > { %1007 = vmatpush.msrb.mxu2 %v938_v46  ;;  %1023 = vmatpush.msrb.mxu3 %v955_v55  ;;  %v911_v17 = vld [vmem:[#allocation13 + $0x98] sm:$0xff] }
 0x173   : > { %968 = vmatpush.msrb.mxu0 %v932_v48  ;;  %988 = vmatpush.msrb.mxu1 %v933_v49  ;;  %v907_v18 = vld [vmem:[#allocation13 + $0x78] sm:$0xff] }
 0x174   : > { %1008 = vmatpush.msrb.mxu2 %v934_v50  ;;  %1024 = vmatpush.msrb.mxu3 %v951_v59  ;;  %v903_v34 = vld [vmem:[#allocation13 + $0x58] sm:$0xff] }
 0x175   : > { %969 = vmatpush.msrb.mxu0 %v928_v52  ;;  %989 = vmatpush.msrb.mxu1 %v929_v53  ;;  %v899_v35 = vld [vmem:[#allocation13 + $0x38] sm:$0xff] }
 0x176   : > { %1009 = vmatpush.msrb.mxu2 %v930_v54  ;;  %1025 = vmatpush.msrb.mxu3 %v947_v0  ;;  %v895_v36 = vld [vmem:[#allocation13 + $0x18] sm:$0xff] }
 0x177   : > { %970 = vmatpush.msrb.mxu0 %v924_v56  ;;  %990 = vmatpush.msrb.mxu1 %v925_v57  ;;  %v808_v40 = vld [vmem:[%s3937_s30] sm:$0xff]  ;;  %v811_v57 = vld [vmem:[%s3937_s30 + $0x18] sm:$0xff] }
 0x178   : > { %1010 = vmatpush.msrb.mxu2 %v926_v58  ;;  %1026 = vmatpush.msrb.mxu3 %v943_v4 }
 0x179   : > { %868 = vmatmul.f32.vlgmr.msra.gmra.mxu2 %v3530_v33  ;;  %971 = vmatpush.msrb.mxu0 %v920_v60 }
 0x17a   : > { %991 = vmatpush.msrb.mxu1 %v921_v61  ;;  %1011 = vmatpush.msrb.mxu2 %v922_v62  ;;  %v959_v62 = vld [vmem:[%s3946_s20] sm:$0xff] }
 0x17b   : > { %972 = vmatpush.msrb.mxu0 %v916_v63  ;;  %1027 = vmatpush.msrb.mxu3 %v939_v8  ;;  %v960_v63 = vld [vmem:[%s3946_s20 + $0x8] sm:$0xff] }
 0x17c   : > { %992 = vmatpush.msrb.mxu1 %v917_v1  ;;  %1012 = vmatpush.msrb.mxu2 %v918_v2 }
 0x17d   : > { %973 = vmatpush.msrb.mxu0 %v912_v3  ;;  %888 = vmatmul.f32.vlgmr.msra.gmra.mxu3 %v3530_v33  ;;  %v923_v33 = vld [vmem:[#allocation13 + $0xf8] sm:$0xff] }
 0x17e   : > { %993 = vmatpush.msrb.mxu1 %v913_v5  ;;  %1013 = vmatpush.msrb.mxu2 %v914_v6 }
 0x17f   : > { %974 = vmatpush.msrb.mxu0 %v908_v7  ;;  %1028 = vmatpush.msrb.mxu3 %v935_v14 }
 0x180   : > { %994 = vmatpush.msrb.mxu1 %v909_v9  ;;  %1014 = vmatpush.msrb.mxu2 %v910_v10 }
 0x181   : > { %975 = vmatpush.msrb.mxu0 %v904_v11  ;;  %1029 = vmatpush.msrb.mxu3 %v931_v20 }
 0x182   : > { %995 = vmatpush.msrb.mxu1 %v905_v12  ;;  %1015 = vmatpush.msrb.mxu2 %v906_v13 }
 0x183   : > { %976 = vmatpush.msrb.mxu0 %v900_v15  ;;  %1030 = vmatpush.msrb.mxu3 %v927_v28 }
 0x184   : > { %996 = vmatpush.msrb.mxu1 %v901_v16  ;;  %1016 = vmatpush.msrb.mxu2 %v902_v19 }
 0x185   : > { %977 = vmatpush.msrb.mxu0 %v896_v23  ;;  %1031 = vmatpush.msrb.mxu3 %v923_v33 }
 0x186   : > { %997 = vmatpush.msrb.mxu1 %v897_v24  ;;  %1017 = vmatpush.msrb.mxu2 %v898_v25  ;;  %v961_v25 = vld [vmem:[%s3946_s20 + $0x10] sm:$0xff] }
 0x187   : > { %978 = vmatpush.msrb.mxu0 %v892_v29  ;;  %1032 = vmatpush.msrb.mxu3 %v919_v26 }
 0x188   : > { %998 = vmatpush.msrb.mxu1 %v893_v30  ;;  %1018 = vmatpush.msrb.mxu2 %v894_v31 }
 0x189   : > { %979 = vmatmul.f32.vlgmr.msrb.gmra.mxu0 %v3522_v32  ;;  %999 = vmatmul.f32.vlgmr.msrb.gmra.mxu1 %v3522_v32 }
 0x18a   : > { %1019 = vmatmul.f32.vlgmr.msrb.gmra.mxu2 %v3522_v32  ;;  %1033 = vmatpush.msrb.mxu3 %v915_v27 }
 0x18c   : > { %1034 = vmatpush.msrb.mxu3 %v911_v17 }
 0x18e   : > { %1035 = vmatpush.msrb.mxu3 %v907_v18 }
 0x190   : > { %1036 = vmatpush.msrb.mxu3 %v903_v34 }
 0x192   : > { %1037 = vmatpush.msrb.mxu3 %v899_v35 }
 0x194   : > { %1038 = vmatpush.msrb.mxu3 %v895_v36 }
 0x195   : > { %1039 = vmatmul.f32.vlgmr.msrb.gmra.mxu3 %v3522_v32 }
 0x1e5   : > { %v849_v38 = vpop.f32.mrf.mxu1 }
 0x1e6   : > { %v850_v39 = vadd.f32 %v849_v38, %v809_v37 }
 0x1e8   : > { %v2913_v41 = vmul.f32 -1.442695, %v850_v39 }
 0x1e9   : > { %v829_v42 = vpop.f32.mrf.mxu0 }
 0x1ea   : > { %v830_v43 = vadd.f32 %v829_v42, %v808_v40  ;;  %3036 = vpow2.f32 %v2913_v41 }
 0x1ec   : > { %v2912_v44 = vmul.f32 -1.442695, %v830_v43 }
 0x1ee   : > { %3038 = vpow2.f32 %v2912_v44 }
 0x1f0   : > { %v3037_v45 = vpop.eup %3036 }
 0x1f1   : > { %v1053_v32 = vadd.f32 1.0, %v3037_v45 }
 0x1f3   : > { %3040 = vrcp.f32 %v1053_v32  ;;  %v1081_v54 = vand.u32 2147483648, %v1053_v32  ;;  %v1079_v55 = vand.u32 2147483647, %v1053_v32  ;;  %vm1075_vm1 = vweird.f32 %v1053_v32 }
 0x1f4   : > { %v3039_v46 = vpop.eup %3038 }
 0x1f5   : > { %v1052_v48 = vadd.f32 1.0, %v3039_v46  ;;  %v1082_v1 = vor.u32 1.1754944e-38, %v1081_v54  ;;  %vm3954_vm5 = vcmp.eq.f32.partialorder %v1079_v55, 8.507059e+37 }
 0x1f7   : > { %3042 = vrcp.f32 %v1052_v48  ;;  %vm1060_vm4 = vweird.f32 %v1052_v48  ;;  %v1064_v5 = vand.u32 2147483647, %v1052_v48  ;;  %v1066_v6 = vand.u32 2147483648, %v1052_v48 }
 0x1f9   : > { %v3041_v51 = vpop.eup %3040  ;;  %v1067_v20 = vor.u32 1.1754944e-38, %v1066_v6  ;;  %vm1065_vm8 = vcmp.eq.f32.partialorder %v1064_v5, 8.507059e+37 }
 0x1fa   : > { %v1071_v53 = vmul.f32 %v3041_v51, %v1053_v32  ;;  %vm1076_vm2 = vweird.f32 %v3041_v51 }
 0x1fb   : > { %vm3950_vm3 = vmor %vm1075_vm1, %vm1076_vm2 }
 0x1fc   : > { %v869_v49 = vpop.f32.mrf.mxu2  ;;  %v1072_v56 = vsub.f32 1.0, %v1071_v53 }
 0x1fd   : > { %v870_v50 = vadd.f32 %v869_v49, %v810_v47  ;;  %v3043_v58 = vpop.eup %3042 }
 0x1fe   : > { %v1056_v59 = vmul.f32 %v3043_v58, %v1052_v48  ;;  %v1073_v60 = vmul.f32 %v3041_v51, %v1072_v56  ;;  %vm1061_vm6 = vweird.f32 %v3043_v58 }
 0x1ff   : > { %v2914_v52 = vmul.f32 -1.442695, %v870_v50  ;;  %vm1062_vm7 = vmor %vm1060_vm4, %vm1061_vm6  ;;  %v962_v50 = vld [vmem:[%s3946_s20 + $0x18] sm:$0xff] }
 0x200   : > { %v889_v61 = vpop.f32.mrf.mxu3  ;;  %v1057_v4 = vsub.f32 1.0, %v1056_v59  ;;  %v1074_v7 = vadd.f32 %v3041_v51, %v1073_v60 }
 0x201   : > { %3044 = vpow2.f32 %v2914_v52  ;;  %v890_v2 = vadd.f32 %v889_v61, %v811_v57 }
 0x202   : > { %v1058_v14 = vmul.f32 %v3043_v58, %v1057_v4  ;;  %v1078_v15 = vsel %vm3950_vm3, %v3041_v51, %v1074_v7 }
 0x203   : > { %3046 = vtanh.f32 %v890_v2  ;;  %v1083_v23 = vsel %vm3954_vm5, %v1082_v1, %v1078_v15 }
 0x204   : > { %v1059_v24 = vadd.f32 %v3043_v58, %v1058_v14  ;;  %v1101_v30 = vmul.f32 %v3526_v22, %v1083_v23 }
 0x206   : > { %v980_v8 = vpop.f32.mrf.mxu0  ;;  %v1000_v9 = vpop.f32.mrf.mxu1  ;;  %v1063_v29 = vsel %vm1062_vm7, %v3043_v58, %v1059_v24 }
 0x207   : > { %v3045_v10 = vpop.eup %3044  ;;  %v981_v11 = vadd.f32 %v980_v8, %v959_v62  ;;  %v1001_v12 = vadd.f32 %v1000_v9, %v960_v63  ;;  %v1068_v33 = vsel %vm1065_vm8, %v1067_v20, %v1063_v29  ;;  %v1316_v29 = vld [vmem:[#allocation17 + $0x1e8] sm:$0xff] (%p732_p0) }
 0x208   : > { %v1054_v13 = vadd.f32 1.0, %v3045_v10  ;;  %1360 = vmatpush.msra.mxu1 (%p732_p0), %v1316_v29  ;;  %v1253_v29 = vld [vmem:[#allocation16 + $0x1f0] sm:$0xff] (%p732_p0) }
 0x209   : > { %v2915_v16 = vmul.f32 -1.442695, %v981_v11  ;;  %v2916_v19 = vmul.f32 -1.442695, %v1001_v12  ;;  %v3047_v28 = vpop.eup %3046 }
 0x20a   : > { %3048 = vrcp.f32 %v1054_v13  ;;  %v1102_v27 = vmul.f32 %v3047_v28, %v1068_v33  ;;  %vm1090_vm9 = vweird.f32 %v1054_v13  ;;  %v1094_v37 = vand.u32 2147483647, %v1054_v13  ;;  %v1315_v28 = vld [vmem:[#allocation17 + $0x1e0] sm:$0xff] (%p732_p0) }
 0x20b   : > { %3050 = vpow2.f32 %v2915_v16  ;;  %v1096_v38 = vand.u32 2147483648, %v1054_v13  ;;  %1319 = vmatpush.msra.mxu0 (%p732_p0), %v1315_v28 }
 0x20c   : > { %3052 = vpow2.f32 %v2916_v19  ;;  %v3965_v22 = vadd.f32 %v1102_v27, %v1101_v30   ;;  %vm1095_vm12 = vcmp.eq.f32.partialorder %v1094_v37, 8.507059e+37  ;;  %v1317_v30 = vld [vmem:[#allocation17 + $0x1f0] sm:$0xff] (%p732_p0)  ;;  %v1312_v27 = vld [vmem:[#allocation17 + $0x1c8] sm:$0xff] (%p732_p0) }
 0x20d   : > { %v1020_v31 = vpop.f32.mrf.mxu2  ;;  %v1097_v43 = vor.u32 1.1754944e-38, %v1096_v38  ;;  %1401 = vmatpush.msra.mxu2 (%p732_p0), %v1317_v30  ;;  %1361 = vmatpush.msra.mxu1 (%p732_p0), %v1312_v27  ;;  %v1305_v37 = vld [vmem:[#allocation17 + $0x190] sm:$0xff] (%p732_p0)  ;;  %v1306_v38 = vld [vmem:[#allocation17 + $0x198] sm:$0xff] (%p732_p0) }
 0x20e   : > { %v1021_v26 = vadd.f32 %v1020_v31, %v961_v25  ;;  %v1318_v31 = vld [vmem:[#allocation17 + $0x1f8] sm:$0xff] (%p732_p0)  ;;  %v1249_v27 = vld [vmem:[#allocation16 + $0x1d0] sm:$0xff] (%p732_p0) }
 0x20f   :  { %1442 = vmatpush.msra.mxu3 (%p732_p0), %v1318_v31  ;;  %v1254_v30 = vld [vmem:[#allocation16 + $0x1f8] sm:$0xff] (%p732_p0)  ;;  %v1251_v31 = vld [vmem:[#allocation16 + $0x1e0] sm:$0xff] (%p732_p0) }
 0x210   : > { %v3049_v17 = vpop.eup %3048  ;;  %v2917_v18 = vmul.f32 -1.442695, %v1021_v26  ;;  %v1311_v26 = vld [vmem:[#allocation17 + $0x1c0] sm:$0xff] (%p732_p0) }
 0x211   : > { %v3051_v34 = vpop.eup %3050  ;;  %v1086_v35 = vmul.f32 %v3049_v17, %v1054_v13  ;;  %vm1091_vm10 = vweird.f32 %v3049_v17  ;;  %1320 = vmatpush.msra.mxu0 (%p732_p0), %v1311_v26  ;;  %v1252_v26 = vld [vmem:[#allocation16 + $0x1e8] sm:$0xff] (%p732_p0) }
 0x212   : > { %v3053_v36 = vpop.eup %3052  ;;  %v1115_v39 = vadd.f32 1.0, %v3051_v34  ;;  %3054 = vpow2.f32 %v2917_v18  ;;  %vm1092_vm11 = vmor %vm1090_vm9, %vm1091_vm10  ;;  %v1314_v18 = vld [vmem:[#allocation17 + $0x1d8] sm:$0xff] (%p732_p0)  ;;  %v1307_v34 = vld [vmem:[#allocation17 + $0x1a0] sm:$0xff] (%p732_p0) }
 0x213   : > { %v1087_v40 = vsub.f32 1.0, %v1086_v35  ;;  %3056 = vtanh.f32 %v3965_v22  ;;  %v1116_v41 = vadd.f32 1.0, %v3053_v36  ;;  %v1308_v35 = vld [vmem:[#allocation17 + $0x1a8] sm:$0xff] (%p732_p0)  ;;  %v1310_v36 = vld [vmem:[#allocation17 + $0x1b8] sm:$0xff] (%p732_p0)  ;;  %1443 = vmatpush.msra.mxu3 (%p732_p0), %v1314_v18  ;;  %1321 = vmatpush.msra.mxu0 (%p732_p0), %v1307_v34  ;;  %v1247_v18 = vld [vmem:[#allocation16 + $0x1c0] sm:$0xff] (%p732_p0) }
 0x214   : > { %3058 = vrcp.f32 %v1115_v39  ;;  %v1127_v58 = vand.u32 2147483647, %v1115_v39  ;;  %v1129_v59 = vand.u32 2147483648, %v1115_v39  ;;  %vm1123_vm15 = vweird.f32 %v1115_v39  ;;  %v1304_v22 = vld [vmem:[#allocation17 + $0x188] sm:$0xff] (%p732_p0)  ;;  %1362 = vmatpush.msra.mxu1 (%p732_p0), %v1308_v35  ;;  %v1245_v35 = vld [vmem:[#allocation16 + $0x1b0] sm:$0xff] (%p732_p0) }
 0x215   : > { %v1088_v42 = vmul.f32 %v3049_v17, %v1087_v40  ;;  %3060 = vrcp.f32 %v1116_v41  ;;  %v1144_v60 = vand.u32 2147483648, %v1116_v41  ;;  %v1142_v63 = vand.u32 2147483647, %v1116_v41  ;;  %1444 = vmatpush.msra.mxu3 (%p732_p0), %v1310_v36  ;;  %v1300_v40 = vld [vmem:[#allocation17 + $0x168] sm:$0xff] (%p732_p0)  ;;  %v1243_v36 = vld [vmem:[#allocation16 + $0x1a0] sm:$0xff] (%p732_p0) }
 0x216   : > { %vm1138_vm0 = vweird.f32 %v1116_v41  ;;  %v1130_v3 = vor.u32 1.1754944e-38, %v1129_v59  ;;  %vm1128_vm3 = vcmp.eq.f32.partialorder %v1127_v58, 8.507059e+37  ;;  %1363 = vmatpush.msra.mxu1 (%p732_p0), %v1304_v22  ;;  %v1279_v58 = vld [vmem:[#allocation17 + $0xc0] sm:$0xff] (%p732_p0)  ;;  %v1280_v59 = vld [vmem:[#allocation17 + $0xc8] sm:$0xff] (%p732_p0) }
 0x217   : > { %v1089_v44 = vadd.f32 %v3049_v17, %v1088_v42  ;;  %v1145_v5 = vor.u32 1.1754944e-38, %v1144_v60  ;;  %vm1143_vm4 = vcmp.eq.f32.partialorder %v1142_v63, 8.507059e+37  ;;  %v1302_v42 = vld [vmem:[#allocation17 + $0x178] sm:$0xff] (%p732_p0)  ;;  %1445 = vmatpush.msra.mxu3 (%p732_p0), %v1306_v38  ;;  %v1281_v60 = vld [vmem:[#allocation17 + $0xd0] sm:$0xff] (%p732_p0)  ;;  %v1276_v63 = vld [vmem:[#allocation17 + $0xa8] sm:$0xff] (%p732_p0) }
 0x218   : > { %v3055_v45 = vpop.eup %3054  ;;  %v1040_v54 = vpop.f32.mrf.mxu3  ;;  %1364 = vmatpush.msra.mxu1 (%p732_p0), %v1300_v40  ;;  %v1248_v34 = vld [vmem:[#allocation16 + $0x1c8] sm:$0xff] (%p732_p0)  ;;  %v1242_v38 = vld [vmem:[#allocation16 + $0x198] sm:$0xff] (%p732_p0) }
 0x219   : > { %v3057_v32 = vpop.eup %3056  ;;  %v1093_v46 = vsel %vm1092_vm11, %v3049_v17, %v1089_v44  ;;  %v1117_v47 = vadd.f32 1.0, %v3055_v45  ;;  %v1041_v56 = vadd.f32 %v1040_v54, %v962_v50  ;;  %v1313_v17 = vld [vmem:[#allocation17 + $0x1d0] sm:$0xff] (%p732_p0)  ;;  %v1296_v44 = vld [vmem:[#allocation17 + $0x148] sm:$0xff] (%p732_p0)  ;;  %1446 = vmatpush.msra.mxu3 (%p732_p0), %v1302_v42  ;;  %v1287_v50 = vld [vmem:[#allocation17 + $0x100] sm:$0xff] (%p732_p0) }
 0x21a   : > { %v3059_v48 = vpop.eup %3058  ;;  %v1098_v49 = vsel %vm1095_vm12, %v1097_v43, %v1093_v46  ;;  %1402 = vmatpush.msra.mxu2 (%p732_p0), %v1313_v17  ;;  %v1295_v43 = vld [vmem:[#allocation17 + $0x140] sm:$0xff] (%p732_p0)  ;;  %v1297_v45 = vld [vmem:[#allocation17 + $0x150] sm:$0xff] (%p732_p0)  ;;  %1365 = vmatpush.msra.mxu1 (%p732_p0), %v1296_v44  ;;  %v1250_v17 = vld [vmem:[#allocation16 + $0x1d8] sm:$0xff] (%p732_p0) }
 0x21b   : > { %v3061_v51 = vpop.eup %3060  ;;  %v1105_v33 = vmul.f32 %v3057_v32, %v1098_v49   ;;  %v1119_v52 = vmul.f32 %v3059_v48, %v1115_v39  ;;  %3062 = vrcp.f32 %v1117_v47  ;;  %vm1124_vm13 = vweird.f32 %v3059_v48  ;;  %v1299_v39 = vld [vmem:[#allocation17 + $0x160] sm:$0xff] (%p732_p0)  ;;  %v1294_v49 = vld [vmem:[#allocation17 + $0x138] sm:$0xff] (%p732_p0)  ;;  %v1240_v40 = vld [vmem:[#allocation16 + $0x188] sm:$0xff] (%p732_p0) }
 0x21c   : > { %v1134_v53 = vmul.f32 %v3061_v51, %v1116_v41  ;;  %3064 = vtanh.f32 %v1041_v56  ;;  %vm1139_vm14 = vweird.f32 %v3061_v51  ;;  %vm1125_vm1 = vmor %vm1123_vm15, %vm1124_vm13  ;;  %v1159_v16 = vand.u32 2147483648, %v1117_v47  ;;  %v1301_v41 = vld [vmem:[#allocation17 + $0x170] sm:$0xff] (%p732_p0)  ;;  %v1291_v46 = vld [vmem:[#allocation17 + $0x120] sm:$0xff] (%p732_p0) }
 0x21d   : > { %1171 = vst [vmem:[%s1170_s2] sm:$0xff] %v1105_v33  ;;  %v1120_v55 = vsub.f32 1.0, %v1119_v52  ;;  %vm1140_vm2 = vmor %vm1138_vm0, %vm1139_vm14  ;;  %vm1153_vm6 = vweird.f32 %v1117_v47  ;;  %v1157_v19 = vand.u32 2147483647, %v1117_v47  ;;  %v1309_v33 = vld [vmem:[#allocation17 + $0x1b0] sm:$0xff] (%p732_p0)  ;;  %v1283_v54 = vld [vmem:[#allocation17 + $0xe0] sm:$0xff] (%p732_p0) }
 0x21e   : > { %v1135_v57 = vsub.f32 1.0, %v1134_v53  ;;  %v1160_v23 = vor.u32 1.1754944e-38, %v1159_v16  ;;  %1403 = vmatpush.msra.mxu2 (%p732_p0), %v1309_v33  ;;  %v1289_v52 = vld [vmem:[#allocation17 + $0x110] sm:$0xff] (%p732_p0)  ;;  %v1290_v53 = vld [vmem:[#allocation17 + $0x118] sm:$0xff] (%p732_p0)  ;;  %v1236_v44 = vld [vmem:[#allocation16 + $0x168] sm:$0xff] (%p732_p0) }
 0x21f   : > { %v1121_v61 = vmul.f32 %v3059_v48, %v1120_v55  ;;  %vm1158_vm8 = vcmp.eq.f32.partialorder %v1157_v19, 8.507059e+37  ;;  %v1284_v55 = vld [vmem:[#allocation17 + $0xe8] sm:$0xff] (%p732_p0)  ;;  %v1285_v56 = vld [vmem:[#allocation17 + $0xf0] sm:$0xff] (%p732_p0)  ;;  %v1262_v19 = vld [vmem:[#allocation17 + $0x38] sm:$0xff] (%p732_p0) }
 0x220   : > { %v1136_v62 = vmul.f32 %v3061_v51, %v1135_v57  ;;  %1404 = vmatpush.msra.mxu2 (%p732_p0), %v1305_v37  ;;  %v1286_v57 = vld [vmem:[#allocation17 + $0xf8] sm:$0xff] (%p732_p0)  ;;  %v1261_v16 = vld [vmem:[#allocation17 + $0x30] sm:$0xff] (%p732_p0) }
 0x221   : > { %v3063_v0 = vpop.eup %3062  ;;  %v1122_v1 = vadd.f32 %v3059_v48, %v1121_v61  ;;  %v1282_v61 = vld [vmem:[#allocation17 + $0xd8] sm:$0xff] (%p732_p0)  ;;  %v1241_v37 = vld [vmem:[#allocation16 + $0x190] sm:$0xff] (%p732_p0) }
 0x222   : > { %v1149_v2 = vmul.f32 %v3063_v0, %v1117_v47  ;;  %v1137_v4 = vadd.f32 %v3061_v51, %v1136_v62  ;;  %v3065_v10 = vpop.eup %3064  ;;  %vm1154_vm5 = vweird.f32 %v3063_v0  ;;  %1405 = vmatpush.msra.mxu2 (%p732_p0), %v1301_v41  ;;  %v1292_v47 = vld [vmem:[#allocation17 + $0x128] sm:$0xff] (%p732_p0)  ;;  %v1275_v62 = vld [vmem:[#allocation17 + $0xa0] sm:$0xff] (%p732_p0)  ;;  %v1246_v33 = vld [vmem:[#allocation16 + $0x1b8] sm:$0xff] (%p732_p0) }
 0x223   : > { %v1126_v6 = vsel %vm1125_vm1, %v3059_v48, %v1122_v1  ;;  %vm1155_vm7 = vmor %vm1153_vm6, %vm1154_vm5  ;;  %v1293_v48 = vld [vmem:[#allocation17 + $0x130] sm:$0xff] (%p732_p0)  ;;  %1366 = vmatpush.msra.mxu1 (%p732_p0), %v1292_v47  ;;  %v1278_v1 = vld [vmem:[#allocation17 + $0xb8] sm:$0xff] (%p732_p0) }
 0x224   : > { %v1150_v7 = vsub.f32 1.0, %v1149_v2  ;;  %v1131_v8 = vsel %vm1128_vm3, %v1130_v3, %v1126_v6  ;;  %v1141_v9 = vsel %vm1140_vm2, %v3061_v51, %v1137_v4  ;;  %1406 = vmatpush.msra.mxu2 (%p732_p0), %v1297_v45  ;;  %v1288_v51 = vld [vmem:[#allocation17 + $0x108] sm:$0xff] (%p732_p0)  ;;  %v1271_v2 = vld [vmem:[#allocation17 + $0x80] sm:$0xff] (%p732_p0)  ;;  %v1273_v4 = vld [vmem:[#allocation17 + $0x90] sm:$0xff] (%p732_p0) }
 0x225   : > { %v1146_v11 = vsel %vm1143_vm4, %v1145_v5, %v1141_v9  ;;  %v1165_v14 = vmul.f32 %v3065_v10, %v1131_v8  ;;  %1367 = vmatpush.msra.mxu1 (%p732_p0), %v1288_v51  ;;  %v1272_v3 = vld [vmem:[#allocation17 + $0x88] sm:$0xff] (%p732_p0)  ;;  %v1274_v5 = vld [vmem:[#allocation17 + $0x98] sm:$0xff] (%p732_p0)  ;;  %v1267_v6 = vld [vmem:[#allocation17 + $0x60] sm:$0xff] (%p732_p0) }
 0x226   : > { %v1151_v12 = vmul.f32 %v3063_v0, %v1150_v7  ;;  %v1164_v13 = vmul.f32 %v3518_v21, %v1146_v11  ;;  %1407 = vmatpush.msra.mxu2 (%p732_p0), %v1293_v48  ;;  %v1268_v7 = vld [vmem:[#allocation17 + $0x68] sm:$0xff] (%p732_p0)  ;;  %v1269_v8 = vld [vmem:[#allocation17 + $0x70] sm:$0xff] (%p732_p0)  ;;  %v1270_v9 = vld [vmem:[#allocation17 + $0x78] sm:$0xff] (%p732_p0) }
 0x227   :  { %1368 = vmatpush.msra.mxu1 (%p732_p0), %v1284_v55  ;;  %v1263_v10 = vld [vmem:[#allocation17 + $0x40] sm:$0xff] (%p732_p0)  ;;  %v1264_v11 = vld [vmem:[#allocation17 + $0x48] sm:$0xff] (%p732_p0)  ;;  %v1237_v41 = vld [vmem:[#allocation16 + $0x170] sm:$0xff] (%p732_p0) }
 0x228   : > { %v1166_v21 = vadd.f32 %v1165_v14, %v1164_v13   ;;  %v1152_v15 = vadd.f32 %v3063_v0, %v1151_v12  ;;  %1408 = vmatpush.msra.mxu2 (%p732_p0), %v1289_v52  ;;  %v1265_v12 = vld [vmem:[#allocation17 + $0x50] sm:$0xff] (%p732_p0)  ;;  %v1266_v13 = vld [vmem:[#allocation17 + $0x58] sm:$0xff] (%p732_p0)  ;;  %v1259_v14 = vld [vmem:[#allocation17 + $0x20] sm:$0xff] (%p732_p0) }
 0x229   :  { %1369 = vmatpush.msra.mxu1 (%p732_p0), %v1280_v59  ;;  %v1238_v42 = vld [vmem:[#allocation16 + $0x178] sm:$0xff] (%p732_p0)  ;;  %v1233_v45 = vld [vmem:[#allocation16 + $0x150] sm:$0xff] (%p732_p0)  ;;  %v1232_v47 = vld [vmem:[#allocation16 + $0x148] sm:$0xff] (%p732_p0) }
 0x22a   : > { %3066 = vtanh.f32 %v1166_v21  ;;  %v1156_v20 = vsel %vm1155_vm7, %v3063_v0, %v1152_v15  ;;  %v1303_v21 = vld [vmem:[#allocation17 + $0x180] sm:$0xff] (%p732_p0)  ;;  %1409 = vmatpush.msra.mxu2 (%p732_p0), %v1285_v56  ;;  %v1277_v0 = vld [vmem:[#allocation17 + $0xb0] sm:$0xff] (%p732_p0)  ;;  %v1260_v15 = vld [vmem:[#allocation17 + $0x28] sm:$0xff] (%p732_p0) }
 0x22b   : > { %v1161_v25 = vsel %vm1158_vm8, %v1160_v23, %v1156_v20  ;;  %1322 = vmatpush.msra.mxu0 (%p732_p0), %v1303_v21  ;;  %1370 = vmatpush.msra.mxu1 (%p732_p0), %v1276_v63  ;;  %v1255_v20 = vld [vmem:[#allocation17] sm:$0xff] (%p732_p0)  ;;  %v1256_v23 = vld [vmem:[#allocation17 + $0x8] sm:$0xff] (%p732_p0)  ;;  %v1218_v63 = vld [vmem:[#allocation16 + $0xd8] sm:$0xff] (%p732_p0) }
 0x22c   :  { %1410 = vmatpush.msra.mxu2 (%p732_p0), %v1281_v60  ;;  %v1244_v21 = vld [vmem:[#allocation16 + $0x1a8] sm:$0xff] (%p732_p0)  ;;  %v1227_v51 = vld [vmem:[#allocation16 + $0x120] sm:$0xff] (%p732_p0) }
 0x22d   :  { %1323 = vmatpush.msra.mxu0 (%p732_p0), %v1299_v39  ;;  %1371 = vmatpush.msra.mxu1 (%p732_p0), %v1272_v3  ;;  %v1239_v39 = vld [vmem:[#allocation16 + $0x180] sm:$0xff] (%p732_p0)  ;;  %v1228_v52 = vld [vmem:[#allocation16 + $0x128] sm:$0xff] (%p732_p0)  ;;  %v1214_v3 = vld [vmem:[#allocation16 + $0xb8] sm:$0xff] (%p732_p0) }
 0x22e   :  { %1411 = vmatpush.msra.mxu2 (%p732_p0), %v1277_v0  ;;  %v1223_v55 = vld [vmem:[#allocation16 + $0x100] sm:$0xff] (%p732_p0)  ;;  %v1224_v56 = vld [vmem:[#allocation16 + $0x108] sm:$0xff] (%p732_p0) }
 0x22f   :  { %734 = sbr.rel (!%p732_p0) target bundleno = 328 (0x148), region = 170  ;;  %1324 = vmatpush.msra.mxu0 (%p732_p0), %v1295_v43  ;;  %1372 = vmatpush.msra.mxu1 (%p732_p0), %v1268_v7  ;;  %v1235_v43 = vld [vmem:[#allocation16 + $0x160] sm:$0xff] (%p732_p0)  ;;  %v1220_v60 = vld [vmem:[#allocation16 + $0xe8] sm:$0xff] (%p732_p0)  ;;  %v1210_v7 = vld [vmem:[#allocation16 + $0x98] sm:$0xff] (%p732_p0) }
 0x230   : > { %v3067_v24 = vpop.eup %3066  ;;  %1412 = vmatpush.msra.mxu2 (%p732_p0), %v1273_v4  ;;  %v1219_v59 = vld [vmem:[#allocation16 + $0xe0] sm:$0xff] (%p732_p0) }
 0x231   : > { %v1168_v32 = vmul.f32 %v3067_v24, %v1161_v25   ;;  %1325 = vmatpush.msra.mxu0 (%p732_p0), %v1291_v46  ;;  %1373 = vmatpush.msra.mxu1 (%p732_p0), %v1264_v11  ;;  %v1257_v24 = vld [vmem:[#allocation17 + $0x10] sm:$0xff] (%p732_p0)  ;;  %v1258_v25 = vld [vmem:[#allocation17 + $0x18] sm:$0xff] (%p732_p0)  ;;  %v1231_v46 = vld [vmem:[#allocation16 + $0x140] sm:$0xff] (%p732_p0) }
 0x232   :  { %1413 = vmatpush.msra.mxu2 (%p732_p0), %v1269_v8  ;;  %v1215_v0 = vld [vmem:[#allocation16 + $0xc0] sm:$0xff] (%p732_p0)  ;;  %v1205_v11 = vld [vmem:[#allocation16 + $0x70] sm:$0xff] (%p732_p0) }
 0x233   : > { %1174 = vst [vmem:[%s1173_s22] sm:$0xff] %v1168_v32  ;;  %v1298_v32 = vld [vmem:[#allocation17 + $0x158] sm:$0xff] (%p732_p0)  ;;  %1326 = vmatpush.msra.mxu0 (%p732_p0), %v1287_v50  ;;  %1374 = vmatpush.msra.mxu1 (%p732_p0), %v1260_v15  ;;  %v1211_v4 = vld [vmem:[#allocation16 + $0xa0] sm:$0xff] (%p732_p0)  ;;  %v1201_v15 = vld [vmem:[#allocation16 + $0x50] sm:$0xff] (%p732_p0) }
 0x234   :  { %1447 = vmatpush.msra.mxu3 %v1298_v32  ;;  %1414 = vmatpush.msra.mxu2 %v1265_v12  ;;  %v1234_v32 = vld [vmem:[#allocation16 + $0x158] sm:$0xff]  ;;  %v1207_v8 = vld [vmem:[#allocation16 + $0x80] sm:$0xff] }
 0x235   :  { %1327 = vmatpush.msra.mxu0 %v1283_v54  ;;  %1375 = vmatpush.msra.mxu1 %v1256_v23  ;;  %v1230_v50 = vld [vmem:[#allocation16 + $0x138] sm:$0xff]  ;;  %v1197_v23 = vld [vmem:[#allocation16 + $0x30] sm:$0xff] }
 0x236   :  { %1448 = vmatpush.msra.mxu3 %v1294_v49  ;;  %1415 = vmatpush.msra.mxu2 %v1261_v16  ;;  %v1229_v49 = vld [vmem:[#allocation16 + $0x130] sm:$0xff]  ;;  %v1226_v54 = vld [vmem:[#allocation16 + $0x118] sm:$0xff] }
 0x237   :  { %1328 = vmatpush.msra.mxu0 %v1279_v58  ;;  %1524 = vmatpush.msrb.mxu1 %v1252_v26  ;;  %v1222_v58 = vld [vmem:[#allocation16 + $0xf8] sm:$0xff] }
 0x238   :  { %1449 = vmatpush.msra.mxu3 %v1290_v53  ;;  %1416 = vmatpush.msra.mxu2 %v1257_v24  ;;  %v1225_v53 = vld [vmem:[#allocation16 + $0x110] sm:$0xff]  ;;  %v1206_v12 = vld [vmem:[#allocation16 + $0x78] sm:$0xff] }
 0x239   :  { %1329 = vmatpush.msra.mxu0 %v1275_v62  ;;  %1525 = vmatpush.msrb.mxu1 %v1248_v34  ;;  %v1217_v62 = vld [vmem:[#allocation16 + $0xd0] sm:$0xff]  ;;  %v1202_v16 = vld [vmem:[#allocation16 + $0x58] sm:$0xff] }
 0x23a   :  { %1450 = vmatpush.msra.mxu3 %v1286_v57  ;;  %v3985_v28 = vld [vmem:[#allocation3] sm:$0xff]  ;;  %1565 = vmatpush.msrb.mxu2 %v1253_v29  ;;  %v3991_v22 = vld [vmem:[#allocation3 + $0x8] sm:$0xff]  ;;  %v3997_v48 = vld [vmem:[#allocation3 + $0x10] sm:$0xff] }
 0x23b   :  { %1330 = vmatpush.msra.mxu0 %v1271_v2  ;;  %1376 = vmatmul.f32.vlgmr.msra.gmra.mxu1 %v3985_v28  ;;  %v1221_v57 = vld [vmem:[#allocation16 + $0xf0] sm:$0xff]  ;;  %v1198_v24 = vld [vmem:[#allocation16 + $0x38] sm:$0xff]  ;;  %v1196_v29 = vld [vmem:[#allocation16 + $0x28] sm:$0xff] }
 0x23c   :  { %1451 = vmatpush.msra.mxu3 %v1282_v61  ;;  %1417 = vmatmul.f32.vlgmr.msra.gmra.mxu2 %v3985_v28  ;;  %v4003_v61 = vld [vmem:[#allocation3 + $0x18] sm:$0xff]  ;;  %v1194_v26 = vld [vmem:[#allocation16 + $0x18] sm:$0xff] }
 0x23d   :  { %1331 = vmatpush.msra.mxu0 %v1267_v6  ;;  %1566 = vmatpush.msrb.mxu2 %v1249_v27  ;;  %v1213_v2 = vld [vmem:[#allocation16 + $0xb0] sm:$0xff]  ;;  %v1191_v27 = vld [vmem:[#allocation16] sm:$0xff] }
 0x23e   :  { %1452 = vmatpush.msra.mxu3 %v1278_v1  ;;  %1526 = vmatpush.msrb.mxu1 %v1244_v21  ;;  %v1216_v1 = vld [vmem:[#allocation16 + $0xc8] sm:$0xff]  ;;  %v1209_v6 = vld [vmem:[#allocation16 + $0x90] sm:$0xff]  ;;  %v1848_v34 = vld [vmem:[#allocation23 + $0x1f8] sm:$0xff] }
 0x23f   :  { %1332 = vmatpush.msra.mxu0 %v1263_v10  ;;  %1567 = vmatpush.msrb.mxu2 %v1245_v35  ;;  %v4009_v10 = vld [vmem:[#allocation3 + $0x20] sm:$0xff]  ;;  %v1845_v35 = vld [vmem:[#allocation23 + $0x1e0] sm:$0xff] }
 0x240   :  { %1453 = vmatpush.msra.mxu3 %v1274_v5  ;;  %1527 = vmatpush.msrb.mxu1 %v1240_v40  ;;  %v1212_v5 = vld [vmem:[#allocation16 + $0xa8] sm:$0xff]  ;;  %v1844_v21 = vld [vmem:[#allocation23 + $0x1d8] sm:$0xff]  ;;  %v1839_v40 = vld [vmem:[#allocation23 + $0x1b0] sm:$0xff] }
 0x241   :  { %1333 = vmatpush.msra.mxu0 %v1259_v14  ;;  %1568 = vmatpush.msrb.mxu2 %v1241_v37  ;;  %v1204_v14 = vld [vmem:[#allocation16 + $0x68] sm:$0xff] }
 0x242   :  { %1454 = vmatpush.msra.mxu3 %v1270_v9  ;;  %1528 = vmatpush.msrb.mxu1 %v1236_v44  ;;  %v1208_v9 = vld [vmem:[#allocation16 + $0x88] sm:$0xff]  ;;  %v1835_v44 = vld [vmem:[#allocation23 + $0x190] sm:$0xff] }
 0x243   :  { %1334 = vmatpush.msra.mxu0 %v1255_v20  ;;  %1379 = vmatmul.f32.gmra.mxu1 %v3991_v22  ;;  %v1200_v20 = vld [vmem:[#allocation16 + $0x48] sm:$0xff] }
 0x244   :  { %1455 = vmatpush.msra.mxu3 %v1266_v13  ;;  %1335 = vmatmul.f32.vlgmr.msra.gmra.mxu0 %v3985_v28  ;;  %v1203_v13 = vld [vmem:[#allocation16 + $0x60] sm:$0xff] }
 0x245   :  { %1483 = vmatpush.msrb.mxu0 %v1251_v31  ;;  %1420 = vmatmul.f32.gmra.mxu2 %v3991_v22  ;;  %v1193_v31 = vld [vmem:[#allocation16 + $0x10] sm:$0xff]  ;;  %v1841_v37 = vld [vmem:[#allocation23 + $0x1c0] sm:$0xff] }
 0x246   :  { %1456 = vmatpush.msra.mxu3 %v1262_v19  ;;  %1569 = vmatpush.msrb.mxu2 %v1237_v41  ;;  %v1199_v19 = vld [vmem:[#allocation16 + $0x40] sm:$0xff] }
 0x247   :  { %1484 = vmatpush.msrb.mxu0 %v1247_v18  ;;  %1529 = vmatpush.msrb.mxu1 %v1232_v47  ;;  %v1847_v18 = vld [vmem:[#allocation23 + $0x1f0] sm:$0xff]  ;;  %v1840_v41 = vld [vmem:[#allocation23 + $0x1b8] sm:$0xff] }
 0x248   :  { %1457 = vmatpush.msra.mxu3 %v1258_v25  ;;  %1570 = vmatpush.msrb.mxu2 %v1233_v45  ;;  %v1195_v25 = vld [vmem:[#allocation16 + $0x20] sm:$0xff]  ;;  %v1831_v47 = vld [vmem:[#allocation23 + $0x170] sm:$0xff] }
 0x249   :  { %1458 = vmatmul.f32.vlgmr.msra.gmra.mxu3 %v3985_v28  ;;  %1485 = vmatpush.msrb.mxu0 %v1243_v36  ;;  %v1843_v36 = vld [vmem:[#allocation23 + $0x1d0] sm:$0xff]  ;;  %v1836_v45 = vld [vmem:[#allocation23 + $0x198] sm:$0xff] }
 0x24a   :  { %1606 = vmatpush.msrb.mxu3 %v1254_v30  ;;  %1571 = vmatpush.msrb.mxu2 %v1229_v49  ;;  %v4015_v30 = vld [vmem:[#allocation3 + $0x28] sm:$0xff] }
 0x24b   :  { %1486 = vmatpush.msrb.mxu0 %v1239_v39  ;;  %1382 = vmatmul.f32.gmra.mxu1 %v3997_v48  ;;  %v4021_v39 = vld [vmem:[#allocation3 + $0x30] sm:$0xff]  ;;  %v1832_v49 = vld [vmem:[#allocation23 + $0x178] sm:$0xff] }
 0x24c   :  { %1607 = vmatpush.msrb.mxu3 %v1250_v17  ;;  %1338 = vmatmul.f32.gmra.mxu0 %v3991_v22  ;;  %v1192_v17 = vld [vmem:[#allocation16 + $0x8] sm:$0xff] }
 0x24d   :  { %1487 = vmatpush.msrb.mxu0 %v1235_v43  ;;  %1423 = vmatmul.f32.gmra.mxu2 %v3997_v48  ;;  %v1838_v43 = vld [vmem:[#allocation23 + $0x1a8] sm:$0xff] }
 0x24e   :  { %1608 = vmatpush.msrb.mxu3 %v1246_v33  ;;  %1530 = vmatpush.msrb.mxu1 %v1228_v52  ;;  %v1846_v33 = vld [vmem:[#allocation23 + $0x1e8] sm:$0xff] }
 0x24f   :  { %1488 = vmatpush.msrb.mxu0 %v1231_v46  ;;  %1572 = vmatpush.msrb.mxu2 %v1225_v53  ;;  %v1834_v46 = vld [vmem:[#allocation23 + $0x188] sm:$0xff]  ;;  %v1827_v53 = vld [vmem:[#allocation23 + $0x150] sm:$0xff] }
 0x250   :  { %1609 = vmatpush.msrb.mxu3 %v1242_v38  ;;  %1531 = vmatpush.msrb.mxu1 %v1224_v56  ;;  %v1842_v38 = vld [vmem:[#allocation23 + $0x1c8] sm:$0xff]  ;;  %v1824_v56 = vld [vmem:[#allocation23 + $0x138] sm:$0xff] }
 0x251   :  { %1461 = vmatmul.f32.gmra.mxu3 %v3991_v22  ;;  %1489 = vmatpush.msrb.mxu0 %v1227_v51  ;;  %v1830_v51 = vld [vmem:[#allocation23 + $0x168] sm:$0xff] }
 0x252   :  { %1610 = vmatpush.msrb.mxu3 %v1238_v42  ;;  %1573 = vmatpush.msrb.mxu2 %v1221_v57  ;;  %v1837_v42 = vld [vmem:[#allocation23 + $0x1a0] sm:$0xff]  ;;  %v4027_v52 = vld [vmem:[#allocation3 + $0x38] sm:$0xff] }
 0x253   :  { %1490 = vmatpush.msrb.mxu0 %v1223_v55  ;;  %1532 = vmatpush.msrb.mxu1 %v1220_v60  ;;  %v1823_v55 = vld [vmem:[#allocation23 + $0x130] sm:$0xff]  ;;  %v1825_v57 = vld [vmem:[#allocation23 + $0x140] sm:$0xff]  ;;  %v1820_v60 = vld [vmem:[#allocation23 + $0x118] sm:$0xff] }
 0x254   :  { %1611 = vmatpush.msrb.mxu3 %v1234_v32  ;;  %1341 = vmatmul.f32.gmra.mxu0 %v3997_v48  ;;  %v1833_v32 = vld [vmem:[#allocation23 + $0x180] sm:$0xff] }
 0x255   :  { %1491 = vmatpush.msrb.mxu0 %v1219_v59  ;;  %1385 = vmatmul.f32.gmra.mxu1 %v4003_v61  ;;  %v1819_v59 = vld [vmem:[#allocation23 + $0x110] sm:$0xff] }
 0x256   :  { %1612 = vmatpush.msrb.mxu3 %v1230_v50  ;;  %1426 = vmatmul.f32.gmra.mxu2 %v4003_v61  ;;  %v1829_v50 = vld [vmem:[#allocation23 + $0x160] sm:$0xff] }
 0x257   :  { %1574 = vmatpush.msrb.mxu2 %v1217_v62  ;;  %1492 = vmatpush.msrb.mxu0 %v1215_v0  ;;  %v1821_v62 = vld [vmem:[#allocation23 + $0x120] sm:$0xff]  ;;  %v4033_v0 = vld [vmem:[#allocation2] sm:$0xff] }
 0x258   :  { %1613 = vmatpush.msrb.mxu3 %v1226_v54  ;;  %1533 = vmatpush.msrb.mxu1 %v1216_v1  ;;  %v1828_v54 = vld [vmem:[#allocation23 + $0x158] sm:$0xff]  ;;  %v1815_v1 = vld [vmem:[#allocation23 + $0xf0] sm:$0xff] }
 0x259   :  { %1464 = vmatmul.f32.gmra.mxu3 %v3997_v48  ;;  %1575 = vmatpush.msrb.mxu2 %v1213_v2  ;;  %v1816_v2 = vld [vmem:[#allocation23 + $0xf8] sm:$0xff] }
 0x25a   :  { %1614 = vmatpush.msrb.mxu3 %v1222_v58  ;;  %1493 = vmatpush.msrb.mxu0 %v1211_v4  ;;  %v1826_v58 = vld [vmem:[#allocation23 + $0x148] sm:$0xff] }
 0x25b   :  { %1534 = vmatpush.msrb.mxu1 %v1212_v5  ;;  %1576 = vmatpush.msrb.mxu2 %v1209_v6  ;;  %v1818_v4 = vld [vmem:[#allocation23 + $0x108] sm:$0xff]  ;;  %v1811_v5 = vld [vmem:[#allocation23 + $0xd0] sm:$0xff]  ;;  %v1812_v6 = vld [vmem:[#allocation23 + $0xd8] sm:$0xff] }
 0x25c   :  { %1344 = vmatmul.f32.gmra.mxu0 %v4003_v61  ;;  %1615 = vmatpush.msrb.mxu3 %v1218_v63  ;;  %v1822_v63 = vld [vmem:[#allocation23 + $0x128] sm:$0xff] }
 0x25d   :  { %1494 = vmatpush.msrb.mxu0 %v1207_v8  ;;  %1535 = vmatpush.msrb.mxu1 %v1208_v9  ;;  %v1814_v8 = vld [vmem:[#allocation23 + $0xe8] sm:$0xff]  ;;  %v4039_v9 = vld [vmem:[#allocation2 + $0x8] sm:$0xff] }
 0x25e   :  { %1616 = vmatpush.msrb.mxu3 %v1214_v3  ;;  %1388 = vmatmul.f32.gmra.mxu1 %v4009_v10  ;;  %v1817_v3 = vld [vmem:[#allocation23 + $0x100] sm:$0xff] }
 0x25f   :  { %1429 = vmatmul.f32.gmra.mxu2 %v4009_v10  ;;  %1495 = vmatpush.msrb.mxu0 %v1203_v13  ;;  %v1809_v13 = vld [vmem:[#allocation23 + $0xc0] sm:$0xff] }
 0x260   :  { %1617 = vmatpush.msrb.mxu3 %v1210_v7  ;;  %1577 = vmatpush.msrb.mxu2 %v1205_v11  ;;  %v1813_v7 = vld [vmem:[#allocation23 + $0xe0] sm:$0xff]  ;;  %v1807_v11 = vld [vmem:[#allocation23 + $0xb0] sm:$0xff] }
 0x261   :  { %1467 = vmatmul.f32.gmra.mxu3 %v4003_v61  ;;  %1536 = vmatpush.msrb.mxu1 %v1204_v14  ;;  %v1810_v14 = vld [vmem:[#allocation23 + $0xc8] sm:$0xff] }
 0x262   :  { %1618 = vmatpush.msrb.mxu3 %v1206_v12  ;;  %1578 = vmatpush.msrb.mxu2 %v1201_v15  ;;  %v1808_v12 = vld [vmem:[#allocation23 + $0xb8] sm:$0xff]  ;;  %v1803_v15 = vld [vmem:[#allocation23 + $0x90] sm:$0xff] }
 0x263   :  { %1496 = vmatpush.msrb.mxu0 %v1199_v19  ;;  %1537 = vmatpush.msrb.mxu1 %v1200_v20  ;;  %v1805_v19 = vld [vmem:[#allocation23 + $0xa0] sm:$0xff]  ;;  %v1806_v20 = vld [vmem:[#allocation23 + $0xa8] sm:$0xff] }
 0x264   :  { %1347 = vmatmul.f32.gmra.mxu0 %v4009_v10  ;;  %1619 = vmatpush.msrb.mxu3 %v1202_v16  ;;  %v1804_v16 = vld [vmem:[#allocation23 + $0x98] sm:$0xff] }
 0x265   :  { %1579 = vmatpush.msrb.mxu2 %v1197_v23  ;;  %1497 = vmatpush.msrb.mxu0 %v1195_v25  ;;  %v4045_v23 = vld [vmem:[#allocation2 + $0x10] sm:$0xff]  ;;  %v1800_v25 = vld [vmem:[#allocation23 + $0x78] sm:$0xff] }
 0x266   :  { %1620 = vmatpush.msrb.mxu3 %v1198_v24  ;;  %1538 = vmatpush.msrb.mxu1 %v1196_v29  ;;  %v1799_v24 = vld [vmem:[#allocation23 + $0x70] sm:$0xff]  ;;  %v1801_v29 = vld [vmem:[#allocation23 + $0x80] sm:$0xff] }
 0x267   :  { %1391 = vmatmul.f32.gmra.mxu1 %v4015_v30  ;;  %1432 = vmatmul.f32.gmra.mxu2 %v4015_v30 }
 0x268   :  { %1580 = vmatpush.msrb.mxu2 %v1193_v31  ;;  %1621 = vmatpush.msrb.mxu3 %v1194_v26  ;;  %v1802_v31 = vld [vmem:[#allocation23 + $0x88] sm:$0xff]  ;;  %v1795_v26 = vld [vmem:[#allocation23 + $0x50] sm:$0xff] }
 0x269   :  { %1470 = vmatmul.f32.gmra.mxu3 %v4009_v10  ;;  %1498 = vmatpush.msrb.mxu0 %v1191_v27  ;;  %v1796_v27 = vld [vmem:[#allocation23 + $0x58] sm:$0xff] }
 0x26a   :  { %1539 = vmatpush.msrb.mxu1 %v1192_v17  ;;  %1931 = vmatpush.msra.mxu2 %v1847_v18  ;;  %v1797_v17 = vld [vmem:[#allocation23 + $0x60] sm:$0xff]  ;;  %v1798_v18 = vld [vmem:[#allocation23 + $0x68] sm:$0xff] }
 0x26b   :  { %1972 = vmatpush.msra.mxu3 %v1848_v34  ;;  %1849 = vmatpush.msra.mxu0 %v1845_v35  ;;  %v4051_v34 = vld [vmem:[#allocation2 + $0x18] sm:$0xff] }
 0x26c   :  { %1350 = vmatmul.f32.gmra.mxu0 %v4015_v30  ;;  %1890 = vmatpush.msra.mxu1 %v1846_v33  ;;  %v1791_v35 = vld [vmem:[#allocation23 + $0x30] sm:$0xff]  ;;  %v1792_v33 = vld [vmem:[#allocation23 + $0x38] sm:$0xff] }
 0x26d   :  { %1932 = vmatpush.msra.mxu2 %v1843_v36  ;;  %1973 = vmatpush.msra.mxu3 %v1844_v21  ;;  %v1793_v36 = vld [vmem:[#allocation23 + $0x40] sm:$0xff]  ;;  %v1794_v21 = vld [vmem:[#allocation23 + $0x48] sm:$0xff] }
 0x26e   :  { %1850 = vmatpush.msra.mxu0 %v1841_v37  ;;  %1891 = vmatpush.msra.mxu1 %v1842_v38  ;;  %v1787_v37 = vld [vmem:[#allocation23 + $0x10] sm:$0xff]  ;;  %v1788_v38 = vld [vmem:[#allocation23 + $0x18] sm:$0xff] }
 0x26f   :  { %1394 = vmatmul.f32.gmra.mxu1 %v4021_v39  ;;  %1435 = vmatmul.f32.gmra.mxu2 %v4021_v39 }
 0x270   :  { %1933 = vmatpush.msra.mxu2 %v1839_v40  ;;  %1974 = vmatpush.msra.mxu3 %v1840_v41  ;;  %v4057_v40 = vld [vmem:[#allocation2 + $0x20] sm:$0xff]  ;;  %v1789_v41 = vld [vmem:[#allocation23 + $0x20] sm:$0xff] }
 0x271   :  { %1473 = vmatmul.f32.gmra.mxu3 %v4015_v30  ;;  %1851 = vmatpush.msra.mxu0 %v1837_v42  ;;  %v1790_v42 = vld [vmem:[#allocation23 + $0x28] sm:$0xff] }
 0x272   :  { %1892 = vmatpush.msra.mxu1 %v1838_v43  ;;  %1934 = vmatpush.msra.mxu2 %v1835_v44  ;;  %v1785_v43 = vld [vmem:[#allocation23] sm:$0xff]  ;;  %v1786_v44 = vld [vmem:[#allocation23 + $0x8] sm:$0xff] }
 0x273   :  { %1975 = vmatpush.msra.mxu3 %v1836_v45  ;;  %1852 = vmatpush.msra.mxu0 %v1833_v32  ;;  %v1783_v45 = vld [vmem:[#allocation22 + $0x1f0] sm:$0xff]  ;;  %v1784_v32 = vld [vmem:[#allocation22 + $0x1f8] sm:$0xff] }
 0x274   :  { %1353 = vmatmul.f32.gmra.mxu0 %v4021_v39  ;;  %1893 = vmatpush.msra.mxu1 %v1834_v46  ;;  %v1779_v46 = vld [vmem:[#allocation22 + $0x1d0] sm:$0xff] }
 0x275   :  { %1935 = vmatpush.msra.mxu2 %v1831_v47  ;;  %1976 = vmatpush.msra.mxu3 %v1832_v49  ;;  %v1780_v47 = vld [vmem:[#allocation22 + $0x1d8] sm:$0xff] }
 0x276   :  { %1853 = vmatpush.msra.mxu0 %v1829_v50  ;;  %1894 = vmatpush.msra.mxu1 %v1830_v51  ;;  %v4063_v49 = vld [vmem:[#allocation2 + $0x28] sm:$0xff]  ;;  %v1782_v51 = vld [vmem:[#allocation22 + $0x1e8] sm:$0xff] }
 0x277   :  { %1397 = vmatmul.f32.gmra.mxu1 %v4027_v52  ;;  %1438 = vmatmul.f32.gmra.mxu2 %v4027_v52  ;;  %v1781_v50 = vld [vmem:[#allocation22 + $0x1e0] sm:$0xff] }
 0x278   :  { %1936 = vmatpush.msra.mxu2 %v1827_v53  ;;  %1977 = vmatpush.msra.mxu3 %v1828_v54  ;;  %v1775_v53 = vld [vmem:[#allocation22 + $0x1b0] sm:$0xff]  ;;  %v1776_v54 = vld [vmem:[#allocation22 + $0x1b8] sm:$0xff] }
 0x279   :  { %1476 = vmatmul.f32.gmra.mxu3 %v4021_v39  ;;  %1854 = vmatpush.msra.mxu0 %v1825_v57  ;;  %v1771_v57 = vld [vmem:[#allocation22 + $0x190] sm:$0xff] }
 0x27a   :  { %1895 = vmatpush.msra.mxu1 %v1826_v58  ;;  %1937 = vmatpush.msra.mxu2 %v1823_v55  ;;  %v1777_v55 = vld [vmem:[#allocation22 + $0x1c0] sm:$0xff]  ;;  %v1772_v58 = vld [vmem:[#allocation22 + $0x198] sm:$0xff] }
 0x27b   :  { %1978 = vmatpush.msra.mxu3 %v1824_v56  ;;  %1855 = vmatpush.msra.mxu0 %v1821_v62  ;;  %v1778_v56 = vld [vmem:[#allocation22 + $0x1c8] sm:$0xff] }
 0x27c   :  { %1356 = vmatmul.f32.gmra.mxu0 %v4027_v52  ;;  %1896 = vmatpush.msra.mxu1 %v1822_v63  ;;  %v1774_v62 = vld [vmem:[#allocation22 + $0x1a8] sm:$0xff]  ;;  %v1767_v63 = vld [vmem:[#allocation22 + $0x170] sm:$0xff] }
 0x27d   :  { %1938 = vmatpush.msra.mxu2 %v1819_v59  ;;  %1979 = vmatpush.msra.mxu3 %v1820_v60  ;;  %v4069_v59 = vld [vmem:[#allocation2 + $0x30] sm:$0xff] }
 0x27e   :  { %1856 = vmatpush.msra.mxu0 %v1817_v3  ;;  %1897 = vmatpush.msra.mxu1 %v1818_v4  ;;  %v1773_v60 = vld [vmem:[#allocation22 + $0x1a0] sm:$0xff]  ;;  %v1770_v3 = vld [vmem:[#allocation22 + $0x188] sm:$0xff]  ;;  %v1763_v4 = vld [vmem:[#allocation22 + $0x150] sm:$0xff] }
 0x27f   :  { %1540 = vmatmul.f32.vlgmr.msrb.gmra.mxu1 %v4033_v0  ;;  %1581 = vmatmul.f32.vlgmr.msrb.gmra.mxu2 %v4033_v0 }
 0x280   :  { %1939 = vmatpush.msra.mxu2 %v1815_v1  ;;  %1980 = vmatpush.msra.mxu3 %v1816_v2  ;;  %v1768_v1 = vld [vmem:[#allocation22 + $0x178] sm:$0xff]  ;;  %v1769_v2 = vld [vmem:[#allocation22 + $0x180] sm:$0xff] }
 0x281   :  { %1479 = vmatmul.f32.gmra.mxu3 %v4027_v52  ;;  %1857 = vmatpush.msra.mxu0 %v1813_v7  ;;  %v1765_v7 = vld [vmem:[#allocation22 + $0x160] sm:$0xff] }
 0x282   :  { %1940 = vmatpush.msra.mxu2 %v1811_v5  ;;  %1981 = vmatpush.msra.mxu3 %v1812_v6  ;;  %v1764_v5 = vld [vmem:[#allocation22 + $0x158] sm:$0xff]  ;;  %v4075_v6 = vld [vmem:[#allocation2 + $0x38] sm:$0xff] }
 0x283   :  { %1898 = vmatpush.msra.mxu1 %v1814_v8  ;;  %1858 = vmatpush.msra.mxu0 %v1809_v13  ;;  %v1766_v8 = vld [vmem:[#allocation22 + $0x168] sm:$0xff]  ;;  %v1761_v13 = vld [vmem:[#allocation22 + $0x140] sm:$0xff] }
 0x284   :  { %1499 = vmatmul.f32.vlgmr.msrb.gmra.mxu0 %v4033_v0  ;;  %1941 = vmatpush.msra.mxu2 %v1807_v11  ;;  %v1759_v11 = vld [vmem:[#allocation22 + $0x130] sm:$0xff] }
 0x285   :  { %1982 = vmatpush.msra.mxu3 %v1808_v12  ;;  %1899 = vmatpush.msra.mxu1 %v1810_v14  ;;  %v1760_v12 = vld [vmem:[#allocation22 + $0x138] sm:$0xff]  ;;  %v1762_v14 = vld [vmem:[#allocation22 + $0x148] sm:$0xff] }
 0x286   :  { %1942 = vmatpush.msra.mxu2 %v1803_v15  ;;  %1859 = vmatpush.msra.mxu0 %v1805_v19  ;;  %v1755_v15 = vld [vmem:[#allocation22 + $0x110] sm:$0xff] }
 0x287   :  { %1543 = vmatmul.f32.gmra.mxu1 %v4039_v9  ;;  %1584 = vmatmul.f32.gmra.mxu2 %v4039_v9 }
 0x288   :  { %1983 = vmatpush.msra.mxu3 %v1804_v16  ;;  %1900 = vmatpush.msra.mxu1 %v1806_v20  ;;  %v1756_v16 = vld [vmem:[#allocation22 + $0x118] sm:$0xff] }
 0x289   :  { %1622 = vmatmul.f32.vlgmr.msrb.gmra.mxu3 %v4033_v0  ;;  %1943 = vmatpush.msra.mxu2 %v1799_v24  ;;  %v1757_v24 = vld [vmem:[#allocation22 + $0x120] sm:$0xff] }
 0x28a   :  { %1984 = vmatpush.msra.mxu3 %v1800_v25  ;;  %1860 = vmatpush.msra.mxu0 %v1801_v29  ;;  %v1758_v25 = vld [vmem:[#allocation22 + $0x128] sm:$0xff]  ;;  %v1751_v29 = vld [vmem:[#allocation22 + $0xf0] sm:$0xff] }
 0x28b   :  { %1901 = vmatpush.msra.mxu1 %v1802_v31  ;;  %1944 = vmatpush.msra.mxu2 %v1795_v26  ;;  %v1752_v31 = vld [vmem:[#allocation22 + $0xf8] sm:$0xff]  ;;  %v1753_v26 = vld [vmem:[#allocation22 + $0x100] sm:$0xff] }
 0x28c   :  { %1502 = vmatmul.f32.gmra.mxu0 %v4039_v9  ;;  %1985 = vmatpush.msra.mxu3 %v1796_v27  ;;  %v1754_v27 = vld [vmem:[#allocation22 + $0x108] sm:$0xff] }
 0x28d   :  { %1861 = vmatpush.msra.mxu0 %v1797_v17  ;;  %1902 = vmatpush.msra.mxu1 %v1798_v18 }
 0x28e   :  { %1945 = vmatpush.msra.mxu2 %v1791_v35  ;;  %1986 = vmatpush.msra.mxu3 %v1792_v33  ;;  %v1747_v35 = vld [vmem:[#allocation22 + $0xd0] sm:$0xff]  ;;  %v1748_v33 = vld [vmem:[#allocation22 + $0xd8] sm:$0xff] }
 0x28f   :  { %1546 = vmatmul.f32.gmra.mxu1 %v4045_v23  ;;  %1587 = vmatmul.f32.gmra.mxu2 %v4045_v23 }
 0x290   :  { %1862 = vmatpush.msra.mxu0 %v1793_v36  ;;  %1903 = vmatpush.msra.mxu1 %v1794_v21 }
 0x291   :  { %1625 = vmatmul.f32.gmra.mxu3 %v4039_v9  ;;  %1946 = vmatpush.msra.mxu2 %v1787_v37  ;;  %v1750_v37 = vld [vmem:[#allocation22 + $0xe8] sm:$0xff] }
 0x292   :  { %1987 = vmatpush.msra.mxu3 %v1788_v38  ;;  %1863 = vmatpush.msra.mxu0 %v1789_v41  ;;  %v1743_v38 = vld [vmem:[#allocation22 + $0xb0] sm:$0xff]  ;;  %v1744_v41 = vld [vmem:[#allocation22 + $0xb8] sm:$0xff] }
 0x293   :  { %1904 = vmatpush.msra.mxu1 %v1790_v42  ;;  %2095 = vmatpush.msrb.mxu2 %v1783_v45  ;;  %v1745_v42 = vld [vmem:[#allocation22 + $0xc0] sm:$0xff] }
 0x294   :  { %1505 = vmatmul.f32.gmra.mxu0 %v4045_v23  ;;  %2136 = vmatpush.msrb.mxu3 %v1784_v32  ;;  %v1739_v32 = vld [vmem:[#allocation22 + $0x90] sm:$0xff] }
 0x295   :  { %1864 = vmatpush.msra.mxu0 %v1785_v43  ;;  %1905 = vmatpush.msra.mxu1 %v1786_v44  ;;  %v1746_v43 = vld [vmem:[#allocation22 + $0xc8] sm:$0xff] }
 0x296   :  { %2096 = vmatpush.msrb.mxu2 %v1779_v46  ;;  %2137 = vmatpush.msrb.mxu3 %v1780_v47  ;;  %v1740_v46 = vld [vmem:[#allocation22 + $0x98] sm:$0xff] }
 0x297   :  { %1549 = vmatmul.f32.gmra.mxu1 %v4051_v34  ;;  %1590 = vmatmul.f32.gmra.mxu2 %v4051_v34 }
 0x298   :  { %2013 = vmatpush.msrb.mxu0 %v1781_v50  ;;  %2054 = vmatpush.msrb.mxu1 %v1782_v51  ;;  %v1742_v51 = vld [vmem:[#allocation22 + $0xa8] sm:$0xff] }
 0x299   :  { %1628 = vmatmul.f32.gmra.mxu3 %v4045_v23  ;;  %2097 = vmatpush.msrb.mxu2 %v1775_v53  ;;  %v1735_v53 = vld [vmem:[#allocation22 + $0x70] sm:$0xff] }
 0x29a   :  { %2138 = vmatpush.msrb.mxu3 %v1776_v54  ;;  %2014 = vmatpush.msrb.mxu0 %v1777_v55  ;;  %v1736_v54 = vld [vmem:[#allocation22 + $0x78] sm:$0xff]  ;;  %v1737_v55 = vld [vmem:[#allocation22 + $0x80] sm:$0xff] }
 0x29b   :  { %2055 = vmatpush.msrb.mxu1 %v1778_v56  ;;  %2098 = vmatpush.msrb.mxu2 %v1771_v57  ;;  %v1738_v56 = vld [vmem:[#allocation22 + $0x88] sm:$0xff] }
 0x29c   :  { %1508 = vmatmul.f32.gmra.mxu0 %v4051_v34  ;;  %2139 = vmatpush.msrb.mxu3 %v1772_v58 }
 0x29d   :  { %2015 = vmatpush.msrb.mxu0 %v1773_v60  ;;  %2056 = vmatpush.msrb.mxu1 %v1774_v62  ;;  %v1731_v60 = vld [vmem:[#allocation22 + $0x50] sm:$0xff]  ;;  %v1732_v62 = vld [vmem:[#allocation22 + $0x58] sm:$0xff] }
 0x29e   :  { %2099 = vmatpush.msrb.mxu2 %v1767_v63  ;;  %2140 = vmatpush.msrb.mxu3 %v1768_v1 }
 0x29f   :  { %1552 = vmatmul.f32.gmra.mxu1 %v4057_v40  ;;  %1593 = vmatmul.f32.gmra.mxu2 %v4057_v40 }
 0x2a0   :  { %2016 = vmatpush.msrb.mxu0 %v1769_v2  ;;  %2057 = vmatpush.msrb.mxu1 %v1770_v3  ;;  %v1734_v2 = vld [vmem:[#allocation22 + $0x68] sm:$0xff]  ;;  %v1727_v3 = vld [vmem:[#allocation22 + $0x30] sm:$0xff] }
 0x2a1   :  { %1631 = vmatmul.f32.gmra.mxu3 %v4051_v34  ;;  %2100 = vmatpush.msrb.mxu2 %v1763_v4  ;;  %v1728_v4 = vld [vmem:[#allocation22 + $0x38] sm:$0xff] }
 0x2a2   :  { %2141 = vmatpush.msrb.mxu3 %v1764_v5  ;;  %2017 = vmatpush.msrb.mxu0 %v1765_v7  ;;  %v1729_v5 = vld [vmem:[#allocation22 + $0x40] sm:$0xff]  ;;  %v1730_v7 = vld [vmem:[#allocation22 + $0x48] sm:$0xff] }
 0x2a3   :  { %2058 = vmatpush.msrb.mxu1 %v1766_v8  ;;  %2101 = vmatpush.msrb.mxu2 %v1759_v11 }
 0x2a4   :  { %1511 = vmatmul.f32.gmra.mxu0 %v4057_v40  ;;  %2142 = vmatpush.msrb.mxu3 %v1760_v12  ;;  %v1723_v12 = vld [vmem:[#allocation22 + $0x10] sm:$0xff] }
 0x2a5   :  { %2018 = vmatpush.msrb.mxu0 %v1761_v13  ;;  %2059 = vmatpush.msrb.mxu1 %v1762_v14  ;;  %v1724_v13 = vld [vmem:[#allocation22 + $0x18] sm:$0xff] }
 0x2a6   :  { %2102 = vmatpush.msrb.mxu2 %v1755_v15  ;;  %2143 = vmatpush.msrb.mxu3 %v1756_v16  ;;  %v1726_v16 = vld [vmem:[#allocation22 + $0x28] sm:$0xff] }
 0x2a7   :  { %1555 = vmatmul.f32.gmra.mxu1 %v4063_v49  ;;  %1596 = vmatmul.f32.gmra.mxu2 %v4063_v49 }
 0x2a8   :  { %2019 = vmatpush.msrb.mxu0 %v1757_v24  ;;  %2060 = vmatpush.msrb.mxu1 %v1758_v25  ;;  %v1721_v24 = vld [vmem:[#allocation22] sm:$0xff]  ;;  %v1722_v25 = vld [vmem:[#allocation22 + $0x8] sm:$0xff] }
 0x2a9   :  { %1634 = vmatmul.f32.gmra.mxu3 %v4057_v40  ;;  %2103 = vmatpush.msrb.mxu2 %v1751_v29 }
 0x2aa   :  { %2144 = vmatpush.msrb.mxu3 %v1752_v31  ;;  %2020 = vmatpush.msrb.mxu0 %v1753_v26 }
 0x2ab   :  { %2061 = vmatpush.msrb.mxu1 %v1754_v27  ;;  %2104 = vmatpush.msrb.mxu2 %v1747_v35 }
 0x2ac   :  { %1514 = vmatmul.f32.gmra.mxu0 %v4063_v49  ;;  %2145 = vmatpush.msrb.mxu3 %v1748_v33 }
 0x2ad   :  { %2062 = vmatpush.msrb.mxu1 %v1750_v37  ;;  %2105 = vmatpush.msrb.mxu2 %v1743_v38 }
 0x2ae   :  { %2146 = vmatpush.msrb.mxu3 %v1744_v41 }
 0x2af   :  { %1558 = vmatmul.f32.gmra.mxu1 %v4069_v59  ;;  %1599 = vmatmul.f32.gmra.mxu2 %v4069_v59 }
 0x2b0   :  { %2063 = vmatpush.msrb.mxu1 %v1746_v43  ;;  %2106 = vmatpush.msrb.mxu2 %v1739_v32 }
 0x2b1   :  { %1637 = vmatmul.f32.gmra.mxu3 %v4063_v49 }
 0x2b2   :  { %2147 = vmatpush.msrb.mxu3 %v1740_v46  ;;  %2064 = vmatpush.msrb.mxu1 %v1742_v51 }
 0x2b3   :  { %2107 = vmatpush.msrb.mxu2 %v1735_v53 }
 0x2b4   :  { %1517 = vmatmul.f32.gmra.mxu0 %v4069_v59  ;;  %2148 = vmatpush.msrb.mxu3 %v1736_v54 }
 0x2b5   :  { %2065 = vmatpush.msrb.mxu1 %v1738_v56  ;;  %2108 = vmatpush.msrb.mxu2 %v1731_v60 }
 0x2b6   :  { %2149 = vmatpush.msrb.mxu3 %v1732_v62 }
 0x2b7   :  { %1561 = vmatmul.f32.gmra.mxu1 %v4075_v6  ;;  %1602 = vmatmul.f32.gmra.mxu2 %v4075_v6 }
 0x2b8   :  { %v4083_v20 = vpop.f32.mrf.mxu1  ;;  %2066 = vmatpush.msrb.mxu1 %v1734_v2  ;;  %2109 = vmatpush.msrb.mxu2 %v1727_v3 }
 0x2b9   :  { %1640 = vmatmul.f32.gmra.mxu3 %v4069_v59 }
 0x2ba   :  { %2150 = vmatpush.msrb.mxu3 %v1728_v4  ;;  %2067 = vmatpush.msrb.mxu1 %v1730_v7 }
 0x2bb   :  { %2110 = vmatpush.msrb.mxu2 %v1723_v12 }
 0x2bc   :  { %1520 = vmatmul.f32.gmra.mxu0 %v4075_v6  ;;  %2151 = vmatpush.msrb.mxu3 %v1724_v13 }
 0x2bd   :  { %2068 = vmatpush.msrb.mxu1 %v1726_v16 }
 0x2bf   :  { %1906 = vmatmul.f32.vlgmr.msra.gmra.mxu1 %v3985_v28  ;;  %1947 = vmatmul.f32.vlgmr.msra.gmra.mxu2 %v3985_v28  ;;  %v4089_v17 = vpop.f32.mrf.mxu2 }
 0x2c0   :  { %v4095_v21 = vpop.f32.mrf.mxu1  ;;  %2069 = vmatpush.msrb.mxu1 %v1722_v25 }
 0x2c1   :  { %1643 = vmatmul.f32.gmra.mxu3 %v4075_v6  ;;  %v4081_v19 = vpop.f32.mrf.mxu0 }
 0x2c4   :  { %1865 = vmatmul.f32.vlgmr.msra.gmra.mxu0 %v3985_v28 }
 0x2c7   :  { %1909 = vmatmul.f32.gmra.mxu1 %v3991_v22  ;;  %1950 = vmatmul.f32.gmra.mxu2 %v3991_v22 }
 0x2c8   :  { %v4101_v44 = vpop.f32.mrf.mxu2  ;;  %v4107_v50 = vpop.f32.mrf.mxu1 }
 0x2c9   :  { %1988 = vmatmul.f32.vlgmr.msra.gmra.mxu3 %v3985_v28  ;;  %v4093_v36 = vpop.f32.mrf.mxu0  ;;  %v1749_v28 = vld [vmem:[#allocation22 + $0xe0] sm:$0xff] }
 0x2ca   :  { %2021 = vmatpush.msrb.mxu0 %v1749_v28 }
 0x2cc   :  { %v4091_v18 = vpop.f32.mrf.mxu3  ;;  %1868 = vmatmul.f32.gmra.mxu0 %v3991_v22 }
 0x2cd   :  { %2022 = vmatpush.msrb.mxu0 %v1745_v42  ;;  %v1647_v42 = vld [vmem:[#allocation20] sm:$0xf] }
 0x2ce   :  { %v4177_v32 = vperm.slane %v1647_v42, 0  ;;  %v4179_v46 = vperm.slane %v1647_v42, 1  ;;  %v4191_v60 = vperm.slane %v1647_v42, 3 }
 0x2cf   :  { %1912 = vmatmul.f32.gmra.mxu1 %v3997_v48  ;;  %1953 = vmatmul.f32.gmra.mxu2 %v3997_v48 }
 0x2d0   :  { %v4113_v57 = vpop.f32.mrf.mxu2 }
 0x2d1   :  { %1991 = vmatmul.f32.gmra.mxu3 %v3991_v22  ;;  %v4105_v47 = vpop.f32.mrf.mxu0  ;;  %v1741_v22 = vld [vmem:[#allocation22 + $0xa0] sm:$0xff] }
 0x2d2   :  { %2023 = vmatpush.msrb.mxu0 %v1741_v22  ;;  %v4119_v1 = vpop.f32.mrf.mxu1 }
 0x2d4   :  { %v4103_v45 = vpop.f32.mrf.mxu3  ;;  %1871 = vmatmul.f32.gmra.mxu0 %v3997_v48 }
 0x2d5   :  { %2024 = vmatpush.msrb.mxu0 %v1737_v55 }
 0x2d7   :  { %1915 = vmatmul.f32.gmra.mxu1 %v4003_v61  ;;  %1956 = vmatmul.f32.gmra.mxu2 %v4003_v61 }
 0x2d9   :  { %1994 = vmatmul.f32.gmra.mxu3 %v3997_v48  ;;  %v4117_v63 = vpop.f32.mrf.mxu0  ;;  %v1733_v48 = vld [vmem:[#allocation22 + $0x60] sm:$0xff]  ;;  %v4125_v8 = vpop.f32.mrf.mxu2 }
 0x2da   :  { %2025 = vmatpush.msrb.mxu0 %v1733_v48 }
 0x2db   :  { %v4131_v15 = vpop.f32.mrf.mxu1 }
 0x2dc   :  { %v4115_v58 = vpop.f32.mrf.mxu3  ;;  %1874 = vmatmul.f32.gmra.mxu0 %v4003_v61 }
 0x2dd   :  { %2026 = vmatpush.msrb.mxu0 %v1729_v5 }
 0x2df   :  { %1918 = vmatmul.f32.gmra.mxu1 %v4009_v10  ;;  %1959 = vmatmul.f32.gmra.mxu2 %v4009_v10 }
 0x2e1   :  { %1997 = vmatmul.f32.gmra.mxu3 %v4003_v61  ;;  %v4129_v14 = vpop.f32.mrf.mxu0  ;;  %v1725_v61 = vld [vmem:[#allocation22 + $0x20] sm:$0xff] }
 0x2e2   :  { %2027 = vmatpush.msrb.mxu0 %v1725_v61  ;;  %v4137_v29 = vpop.f32.mrf.mxu2 }
 0x2e4   :  { %v4127_v11 = vpop.f32.mrf.mxu3  ;;  %1877 = vmatmul.f32.gmra.mxu0 %v4009_v10  ;;  %v4143_v27 = vpop.f32.mrf.mxu1 }
 0x2e5   :  { %2028 = vmatpush.msrb.mxu0 %v1721_v24 }
 0x2e7   :  { %1921 = vmatmul.f32.gmra.mxu1 %v4015_v30  ;;  %1962 = vmatmul.f32.gmra.mxu2 %v4015_v30 }
 0x2e9   :  { %2000 = vmatmul.f32.gmra.mxu3 %v4009_v10  ;;  %v4141_v26 = vpop.f32.mrf.mxu0 }
 0x2ea   :  { %v4149_v35 = vpop.f32.mrf.mxu2 }
 0x2ec   :  { %v4139_v31 = vpop.f32.mrf.mxu3  ;;  %1880 = vmatmul.f32.gmra.mxu0 %v4015_v30  ;;  %v4155_v28 = vpop.f32.mrf.mxu1 }
 0x2ef   :  { %1924 = vmatmul.f32.gmra.mxu1 %v4021_v39  ;;  %1965 = vmatmul.f32.gmra.mxu2 %v4021_v39 }
 0x2f1   :  { %2003 = vmatmul.f32.gmra.mxu3 %v4015_v30  ;;  %v4153_v33 = vpop.f32.mrf.mxu0 }
 0x2f2   :  { %v4161_v37 = vpop.f32.mrf.mxu2 }
 0x2f4   :  { %v4151_v10 = vpop.f32.mrf.mxu3  ;;  %1883 = vmatmul.f32.gmra.mxu0 %v4021_v39  ;;  %v4167_v41 = vpop.f32.mrf.mxu1 }
 0x2f7   :  { %1927 = vmatmul.f32.gmra.mxu1 %v4027_v52  ;;  %1968 = vmatmul.f32.gmra.mxu2 %v4027_v52 }
 0x2f9   :  { %2006 = vmatmul.f32.gmra.mxu3 %v4021_v39  ;;  %v4165_v30 = vpop.f32.mrf.mxu0 }
 0x2fa   :  { %v4173_v43 = vpop.f32.mrf.mxu2 }
 0x2fc   :  { %v4163_v38 = vpop.f32.mrf.mxu3  ;;  %1886 = vmatmul.f32.gmra.mxu0 %v4027_v52  ;;  %v1541_v51 = vpop.f32.mrf.mxu1 }
 0x2fd   :  { %v1542_v54 = vadd.f32 %v1541_v51, %v4083_v20 }
 0x2ff   :  { %v1658_v56 = vadd.f32 %v4179_v46, %v1542_v54  ;;  %2070 = vmatmul.f32.vlgmr.msrb.gmra.mxu1 %v4033_v0  ;;  %2111 = vmatmul.f32.vlgmr.msrb.gmra.mxu2 %v4033_v0 }
 0x301   :  { %2009 = vmatmul.f32.gmra.mxu3 %v4027_v52  ;;  %v1500_v22 = vpop.f32.mrf.mxu0  ;;  %1690 = vst [vmem:[#allocation4 + $0x8] sm:$0xff] %v1658_v56  ;;  %v4189_v52 = vperm.slane %v1647_v42, 2 }
 0x302   :  { %v1501_v53 = vadd.f32 %v1500_v22, %v4081_v19  ;;  %v1582_v19 = vpop.f32.mrf.mxu2 }
 0x303   :  { %v1583_v62 = vadd.f32 %v1582_v19, %v4089_v17 }
 0x304   :  { %v4175_v39 = vpop.f32.mrf.mxu3  ;;  %v1657_v55 = vadd.f32 %v4177_v32, %v1501_v53  ;;  %2029 = vmatmul.f32.vlgmr.msrb.gmra.mxu0 %v4033_v0  ;;  %v1544_v3 = vpop.f32.mrf.mxu1 }
 0x305   :  { %v1545_v5 = vadd.f32 %v1544_v3, %v4095_v21 }
 0x306   :  { %1689 = vst [vmem:[#allocation4] sm:$0xff] %v1657_v55 }
 0x307   :  { %v1662_v13 = vadd.f32 %v4179_v46, %v1545_v5  ;;  %2073 = vmatmul.f32.gmra.mxu1 %v4039_v9  ;;  %2114 = vmatmul.f32.gmra.mxu2 %v4039_v9 }
 0x309   :  { %2152 = vmatmul.f32.vlgmr.msrb.gmra.mxu3 %v4033_v0  ;;  %v1503_v2 = vpop.f32.mrf.mxu0  ;;  %v1659_v0 = vadd.f32 %v4189_v52, %v1583_v62  ;;  %1694 = vst [vmem:[#allocation4 + $0x28] sm:$0xff] %v1662_v13 }
 0x30a   :  { %v1504_v4 = vadd.f32 %v1503_v2, %v4093_v36  ;;  %v1585_v17 = vpop.f32.mrf.mxu2 }
 0x30b   :  { %1691 = vst [vmem:[#allocation4 + $0x10] sm:$0xff] %v1659_v0  ;;  %v1586_v36 = vadd.f32 %v1585_v17, %v4101_v44 }
 0x30c   :  { %v1623_v20 = vpop.f32.mrf.mxu3  ;;  %v1661_v12 = vadd.f32 %v4177_v32, %v1504_v4  ;;  %2032 = vmatmul.f32.gmra.mxu0 %v4039_v9  ;;  %v1547_v16 = vpop.f32.mrf.mxu1 }
 0x30d   :  { %v1624_v48 = vadd.f32 %v1623_v20, %v4091_v18  ;;  %v1548_v25 = vadd.f32 %v1547_v16, %v4107_v50  ;;  %v1663_v42 = vadd.f32 %v4189_v52, %v1586_v36 }
 0x30e   :  { %1693 = vst [vmem:[#allocation4 + $0x20] sm:$0xff] %v1661_v12 }
 0x30f   :  { %v1660_v7 = vadd.f32 %v4191_v60, %v1624_v48  ;;  %v1666_v51 = vadd.f32 %v4179_v46, %v1548_v25  ;;  %2076 = vmatmul.f32.gmra.mxu1 %v4045_v23  ;;  %1695 = vst [vmem:[#allocation4 + $0x30] sm:$0xff] %v1663_v42  ;;  %2117 = vmatmul.f32.gmra.mxu2 %v4045_v23 }
 0x311   :  { %2155 = vmatmul.f32.gmra.mxu3 %v4039_v9  ;;  %1692 = vst [vmem:[#allocation4 + $0x18] sm:$0xff] %v1660_v7  ;;  %v1506_v61 = vpop.f32.mrf.mxu0 }
 0x312   :  { %v1507_v24 = vadd.f32 %v1506_v61, %v4105_v47  ;;  %1698 = vst [vmem:[#allocation4 + $0x48] sm:$0xff] %v1666_v51  ;;  %v1588_v44 = vpop.f32.mrf.mxu2 }
 0x313   :  { %v1589_v47 = vadd.f32 %v1588_v44, %v4113_v57 }
 0x314   :  { %v1626_v18 = vpop.f32.mrf.mxu3  ;;  %v1665_v9 = vadd.f32 %v4177_v32, %v1507_v24  ;;  %2035 = vmatmul.f32.gmra.mxu0 %v4045_v23  ;;  %v1550_v54 = vpop.f32.mrf.mxu1 }
 0x315   :  { %v1627_v21 = vadd.f32 %v1626_v18, %v4103_v45  ;;  %v1551_v56 = vadd.f32 %v1550_v54, %v4119_v1  ;;  %v1667_v19 = vadd.f32 %v4189_v52, %v1589_v47 }
 0x316   :  { %1697 = vst [vmem:[#allocation4 + $0x40] sm:$0xff] %v1665_v9 }
 0x317   :  { %v1664_v22 = vadd.f32 %v4191_v60, %v1627_v21  ;;  %v1670_v62 = vadd.f32 %v4179_v46, %v1551_v56  ;;  %2079 = vmatmul.f32.gmra.mxu1 %v4051_v34  ;;  %1699 = vst [vmem:[#allocation4 + $0x50] sm:$0xff] %v1667_v19  ;;  %2120 = vmatmul.f32.gmra.mxu2 %v4051_v34 }
 0x319   :  { %2158 = vmatmul.f32.gmra.mxu3 %v4045_v23  ;;  %1696 = vst [vmem:[#allocation4 + $0x38] sm:$0xff] %v1664_v22  ;;  %v1509_v53 = vpop.f32.mrf.mxu0 }
 0x31a   :  { %v1510_v55 = vadd.f32 %v1509_v53, %v4117_v63  ;;  %1702 = vst [vmem:[#allocation4 + $0x68] sm:$0xff] %v1670_v62  ;;  %v1591_v57 = vpop.f32.mrf.mxu2 }
 0x31b   :  { %v1592_v63 = vadd.f32 %v1591_v57, %v4125_v8 }
 0x31c   :  { %v1629_v45 = vpop.f32.mrf.mxu3  ;;  %v1669_v23 = vadd.f32 %v4177_v32, %v1510_v55  ;;  %2038 = vmatmul.f32.gmra.mxu0 %v4051_v34  ;;  %v1553_v2 = vpop.f32.mrf.mxu1 }
 0x31d   :  { %v1630_v50 = vadd.f32 %v1629_v45, %v4115_v58  ;;  %v1554_v4 = vadd.f32 %v1553_v2, %v4131_v15  ;;  %v1671_v5 = vadd.f32 %v4189_v52, %v1592_v63 }
 0x31e   :  { %1701 = vst [vmem:[#allocation4 + $0x60] sm:$0xff] %v1669_v23 }
 0x31f   :  { %v1668_v20 = vadd.f32 %v4191_v60, %v1630_v50  ;;  %v1674_v7 = vadd.f32 %v4179_v46, %v1554_v4  ;;  %2082 = vmatmul.f32.gmra.mxu1 %v4057_v40  ;;  %1703 = vst [vmem:[#allocation4 + $0x70] sm:$0xff] %v1671_v5  ;;  %2123 = vmatmul.f32.gmra.mxu2 %v4057_v40 }
 0x321   :  { %2161 = vmatmul.f32.gmra.mxu3 %v4051_v34  ;;  %1700 = vst [vmem:[#allocation4 + $0x58] sm:$0xff] %v1668_v20  ;;  %v1512_v48 = vpop.f32.mrf.mxu0 }
 0x322   :  { %v1513_v3 = vadd.f32 %v1512_v48, %v4129_v14  ;;  %1706 = vst [vmem:[#allocation4 + $0x88] sm:$0xff] %v1674_v7  ;;  %v1594_v8 = vpop.f32.mrf.mxu2 }
 0x323   :  { %v1595_v14 = vadd.f32 %v1594_v8, %v4137_v29 }
 0x324   :  { %v1632_v58 = vpop.f32.mrf.mxu3  ;;  %v1673_v34 = vadd.f32 %v4177_v32, %v1513_v3  ;;  %2041 = vmatmul.f32.gmra.mxu0 %v4057_v40  ;;  %v1556_v13 = vpop.f32.mrf.mxu1 }
 0x325   :  { %v1633_v1 = vadd.f32 %v1632_v58, %v4127_v11  ;;  %v1557_v18 = vadd.f32 %v1556_v13, %v4143_v27  ;;  %v1675_v36 = vadd.f32 %v4189_v52, %v1595_v14 }
 0x326   :  { %1705 = vst [vmem:[#allocation4 + $0x80] sm:$0xff] %v1673_v34 }
 0x327   :  { %v1672_v0 = vadd.f32 %v4191_v60, %v1633_v1  ;;  %v1678_v61 = vadd.f32 %v4179_v46, %v1557_v18  ;;  %2085 = vmatmul.f32.gmra.mxu1 %v4063_v49  ;;  %1707 = vst [vmem:[#allocation4 + $0x90] sm:$0xff] %v1675_v36  ;;  %2126 = vmatmul.f32.gmra.mxu2 %v4063_v49  ;;  %v2177_v36 = vld [vmem:[#allocation26] sm:$0xf] }
 0x329   :  { %2164 = vmatmul.f32.gmra.mxu3 %v4057_v40  ;;  %1704 = vst [vmem:[#allocation4 + $0x78] sm:$0xff] %v1672_v0  ;;  %v1515_v12 = vpop.f32.mrf.mxu0 }
 0x32a   :  { %v1516_v17 = vadd.f32 %v1515_v12, %v4141_v26  ;;  %1710 = vst [vmem:[#allocation4 + $0xa8] sm:$0xff] %v1678_v61  ;;  %v1597_v29 = vpop.f32.mrf.mxu2  ;;  %v4325_v61 = vperm.slane %v2177_v36, 0 }
 0x32b   :  { %v1598_v26 = vadd.f32 %v1597_v29, %v4149_v35  ;;  %v4327_v29 = vperm.slane %v2177_v36, 1 }
 0x32c   :  { %v1635_v11 = vpop.f32.mrf.mxu3  ;;  %v1677_v40 = vadd.f32 %v4177_v32, %v1516_v17  ;;  %2044 = vmatmul.f32.gmra.mxu0 %v4063_v49  ;;  %v1559_v24 = vpop.f32.mrf.mxu1 }
 0x32d   :  { %v1636_v15 = vadd.f32 %v1635_v11, %v4139_v31  ;;  %v1560_v42 = vadd.f32 %v1559_v24, %v4155_v28  ;;  %v1679_v22 = vadd.f32 %v4189_v52, %v1598_v26 }
 0x32e   :  { %1709 = vst [vmem:[#allocation4 + $0xa0] sm:$0xff] %v1677_v40 }
 0x32f   :  { %v1676_v21 = vadd.f32 %v4191_v60, %v1636_v15  ;;  %v1682_v51 = vadd.f32 %v4179_v46, %v1560_v42  ;;  %2088 = vmatmul.f32.gmra.mxu1 %v4069_v59  ;;  %1711 = vst [vmem:[#allocation4 + $0xb0] sm:$0xff] %v1679_v22  ;;  %2129 = vmatmul.f32.gmra.mxu2 %v4069_v59  ;;  %v4331_v42 = vperm.slane %v2177_v36, 2  ;;  %v4333_v22 = vperm.slane %v2177_v36, 3 }
 0x331   :  { %2167 = vmatmul.f32.gmra.mxu3 %v4063_v49  ;;  %1708 = vst [vmem:[#allocation4 + $0x98] sm:$0xff] %v1676_v21  ;;  %v1518_v16 = vpop.f32.mrf.mxu0 }
 0x332   :  { %v1519_v25 = vadd.f32 %v1518_v16, %v4153_v33  ;;  %1714 = vst [vmem:[#allocation4 + $0xc8] sm:$0xff] %v1682_v51  ;;  %v1600_v35 = vpop.f32.mrf.mxu2 }
 0x333   :  { %v1601_v33 = vadd.f32 %v1600_v35, %v4161_v37 }
 0x334   :  { %v1638_v31 = vpop.f32.mrf.mxu3  ;;  %v1681_v49 = vadd.f32 %v4177_v32, %v1519_v25  ;;  %2047 = vmatmul.f32.gmra.mxu0 %v4069_v59  ;;  %v1562_v45 = vpop.f32.mrf.mxu1 }
 0x335   :  { %v1639_v27 = vadd.f32 %v1638_v31, %v4151_v10  ;;  %v1563_v50 = vadd.f32 %v1562_v45, %v4167_v41  ;;  %v1683_v53 = vadd.f32 %v4189_v52, %v1601_v33 }
 0x336   :  { %1713 = vst [vmem:[#allocation4 + $0xc0] sm:$0xff] %v1681_v49 }
 0x337   :  { %v1680_v9 = vadd.f32 %v4191_v60, %v1639_v27  ;;  %v1686_v55 = vadd.f32 %v4179_v46, %v1563_v50  ;;  %2091 = vmatmul.f32.gmra.mxu1 %v4075_v6  ;;  %1715 = vst [vmem:[#allocation4 + $0xd0] sm:$0xff] %v1683_v53  ;;  %2132 = vmatmul.f32.gmra.mxu2 %v4075_v6 }
 0x339   :  { %2170 = vmatmul.f32.gmra.mxu3 %v4069_v59  ;;  %1712 = vst [vmem:[#allocation4 + $0xb8] sm:$0xff] %v1680_v9  ;;  %v1521_v44 = vpop.f32.mrf.mxu0 }
 0x33a   :  { %v1522_v47 = vadd.f32 %v1521_v44, %v4165_v30  ;;  %1718 = vst [vmem:[#allocation4 + $0xe8] sm:$0xff] %v1686_v55  ;;  %v1603_v37 = vpop.f32.mrf.mxu2 }
 0x33b   :  { %v1604_v30 = vadd.f32 %v1603_v37, %v4173_v43 }
 0x33c   :  { %v1641_v10 = vpop.f32.mrf.mxu3  ;;  %v1685_v59 = vadd.f32 %v4177_v32, %v1522_v47  ;;  %2050 = vmatmul.f32.gmra.mxu0 %v4075_v6  ;;  %v1907_v46 = vpop.f32.mrf.mxu1 }
 0x33d   :  { %v1642_v28 = vadd.f32 %v1641_v10, %v4163_v38  ;;  %v1687_v56 = vadd.f32 %v4189_v52, %v1604_v30 }
 0x33e   :  { %1717 = vst [vmem:[#allocation4 + $0xe0] sm:$0xff] %v1685_v59 }
 0x33f   :  { %v1684_v54 = vadd.f32 %v4191_v60, %v1642_v28  ;;  %1719 = vst [vmem:[#allocation4 + $0xf0] sm:$0xff] %v1687_v56 }
 0x341   :  { %2173 = vmatmul.f32.gmra.mxu3 %v4075_v6  ;;  %1716 = vst [vmem:[#allocation4 + $0xd8] sm:$0xff] %v1684_v54  ;;  %v1866_v32 = vpop.f32.mrf.mxu0 }
 0x342   :  { %v1948_v20 = vpop.f32.mrf.mxu2 }
 0x344   :  { %v1644_v38 = vpop.f32.mrf.mxu3  ;;  %v1910_v62 = vpop.f32.mrf.mxu1 }
 0x345   :  { %v1645_v41 = vadd.f32 %v1644_v38, %v4175_v39 }
 0x347   :  { %v1688_v19 = vadd.f32 %v4191_v60, %v1645_v41 }
 0x349   :  { %1720 = vst [vmem:[#allocation4 + $0xf8] sm:$0xff] %v1688_v19  ;;  %v1869_v6 = vpop.f32.mrf.mxu0 }
 0x34a   :  { %v1951_v57 = vpop.f32.mrf.mxu2 }
 0x34c   :  { %v1989_v23 = vpop.f32.mrf.mxu3  ;;  %v1913_v1 = vpop.f32.mrf.mxu1 }
 0x351   :  { %v1872_v63 = vpop.f32.mrf.mxu0 }
 0x352   :  { %v4281_v48 = vpop.f32.mrf.mxu2 }
 0x354   :  { %v1992_v58 = vpop.f32.mrf.mxu3  ;;  %v4287_v2 = vpop.f32.mrf.mxu1 }
 0x359   :  { %v4285_v39 = vpop.f32.mrf.mxu0 }
 0x35a   :  { %v4289_v52 = vpop.f32.mrf.mxu2 }
 0x35c   :  { %v4283_v43 = vpop.f32.mrf.mxu3  ;;  %v4295_v4 = vpop.f32.mrf.mxu1 }
 0x361   :  { %v4293_v3 = vpop.f32.mrf.mxu0 }
 0x362   :  { %v4297_v5 = vpop.f32.mrf.mxu2 }
 0x364   :  { %v4291_v60 = vpop.f32.mrf.mxu3  ;;  %v4303_v7 = vpop.f32.mrf.mxu1 }
 0x369   :  { %v4301_v34 = vpop.f32.mrf.mxu0 }
 0x36a   :  { %v4305_v8 = vpop.f32.mrf.mxu2 }
 0x36c   :  { %v4299_v0 = vpop.f32.mrf.mxu3  ;;  %v4311_v15 = vpop.f32.mrf.mxu1 }
 0x371   :  { %v4309_v14 = vpop.f32.mrf.mxu0 }
 0x372   :  { %v4313_v12 = vpop.f32.mrf.mxu2 }
 0x374   :  { %v4307_v11 = vpop.f32.mrf.mxu3  ;;  %v4319_v18 = vpop.f32.mrf.mxu1 }
 0x379   :  { %v4317_v17 = vpop.f32.mrf.mxu0 }
 0x37a   :  { %v4321_v21 = vpop.f32.mrf.mxu2 }
 0x37c   :  { %v4315_v13 = vpop.f32.mrf.mxu3  ;;  %v2071_v26 = vpop.f32.mrf.mxu1 }
 0x37d   :  { %v2072_v16 = vadd.f32 %v2071_v26, %v1907_v46 }
 0x37f   :  { %v2188_v25 = vadd.f32 %v4327_v29, %v2072_v16 }
 0x381   :  { %v2030_v31 = vpop.f32.mrf.mxu0  ;;  %2220 = vst [vmem:[#allocation5 + $0x8] sm:$0xff] %v2188_v25 }
 0x382   :  { %v2031_v27 = vadd.f32 %v2030_v31, %v1866_v32  ;;  %v2112_v9 = vpop.f32.mrf.mxu2 }
 0x383   :  { %v2113_v51 = vadd.f32 %v2112_v9, %v1948_v20 }
 0x384   :  { %v4323_v40 = vpop.f32.mrf.mxu3  ;;  %v2187_v24 = vadd.f32 %v4325_v61, %v2031_v27  ;;  %v2074_v33 = vpop.f32.mrf.mxu1 }
 0x385   :  { %v2075_v44 = vadd.f32 %v2074_v33, %v1910_v62  ;;  %v2189_v45 = vadd.f32 %v4331_v42, %v2113_v51 }
 0x386   :  { %2219 = vst [vmem:[#allocation5] sm:$0xff] %v2187_v24 }
 0x387   :  { %v2192_v53 = vadd.f32 %v4327_v29, %v2075_v44  ;;  %2221 = vst [vmem:[#allocation5 + $0x10] sm:$0xff] %v2189_v45  ;;  %v3575_v45 = vmov 0.0  }
 0x388   :  { %2251 = vst [vmem:[%s4583_s17] sm:$0xff] %v3575_v45 }
 0x389   :  { %v2033_v10 = vpop.f32.mrf.mxu0  ;;  %2224 = vst [vmem:[#allocation5 + $0x28] sm:$0xff] %v2192_v53 }
 0x38a   :  { %v2034_v28 = vadd.f32 %v2033_v10, %v1869_v6  ;;  %v2115_v54 = vpop.f32.mrf.mxu2  ;;  %2252 = vst [vmem:[%s4583_s17 + $0x8] sm:$0xff] %v3575_v45 }
 0x38b   :  { %v2116_v55 = vadd.f32 %v2115_v54, %v1951_v57  ;;  %2253 = vst [vmem:[%s4583_s17 + $0x10] sm:$0xff] %v3575_v45 }
 0x38c   :  { %v2153_v49 = vpop.f32.mrf.mxu3  ;;  %v2191_v50 = vadd.f32 %v4325_v61, %v2034_v28  ;;  %v2077_v30 = vpop.f32.mrf.mxu1  ;;  %2254 = vst [vmem:[%s4583_s17 + $0x18] sm:$0xff] %v3575_v45 }
 0x38d   :  { %v2154_v35 = vadd.f32 %v2153_v49, %v1989_v23  ;;  %v2078_v32 = vadd.f32 %v2077_v30, %v1913_v1  ;;  %v2193_v46 = vadd.f32 %v4331_v42, %v2116_v55  ;;  %2255 = vst [vmem:[%s4583_s17 + $0x20] sm:$0xff] %v3575_v45 }
 0x38e   :  { %2223 = vst [vmem:[#allocation5 + $0x20] sm:$0xff] %v2191_v50 }
 0x38f   :  { %v2190_v47 = vadd.f32 %v4333_v22, %v2154_v35  ;;  %v2196_v20 = vadd.f32 %v4327_v29, %v2078_v32  ;;  %2225 = vst [vmem:[#allocation5 + $0x30] sm:$0xff] %v2193_v46 }
 0x390   :  { %2256 = vst [vmem:[%s4583_s17 + $0x28] sm:$0xff] %v3575_v45 }
 0x391   :  { %2222 = vst [vmem:[#allocation5 + $0x18] sm:$0xff] %v2190_v47  ;;  %v2036_v38 = vpop.f32.mrf.mxu0 }
 0x392   :  { %v2037_v41 = vadd.f32 %v2036_v38, %v1872_v63  ;;  %2228 = vst [vmem:[#allocation5 + $0x48] sm:$0xff] %v2196_v20  ;;  %v2118_v23 = vpop.f32.mrf.mxu2 }
 0x393   :  { %v2119_v62 = vadd.f32 %v2118_v23, %v4281_v48  ;;  %2257 = vst [vmem:[%s4583_s17 + $0x30] sm:$0xff] %v3575_v45 }
 0x394   :  { %v2156_v59 = vpop.f32.mrf.mxu3  ;;  %v2195_v19 = vadd.f32 %v4325_v61, %v2037_v41  ;;  %v2080_v63 = vpop.f32.mrf.mxu1  ;;  %2258 = vst [vmem:[%s4583_s17 + $0x38] sm:$0xff] %v3575_v45 }
 0x395   :  { %v2157_v37 = vadd.f32 %v2156_v59, %v1992_v58  ;;  %v2081_v36 = vadd.f32 %v2080_v63, %v4287_v2  ;;  %v2197_v31 = vadd.f32 %v4331_v42, %v2119_v62 }
 0x396   :  { %2227 = vst [vmem:[#allocation5 + $0x40] sm:$0xff] %v2195_v19 }
 0x397   :  { %v2194_v56 = vadd.f32 %v4333_v22, %v2157_v37  ;;  %v2200_v16 = vadd.f32 %v4327_v29, %v2081_v36  ;;  %2229 = vst [vmem:[#allocation5 + $0x50] sm:$0xff] %v2197_v31 }
 0x399   :  { %2226 = vst [vmem:[#allocation5 + $0x38] sm:$0xff] %v2194_v56  ;;  %v2039_v58 = vpop.f32.mrf.mxu0 }
 0x39a   :  { %v2040_v1 = vadd.f32 %v2039_v58, %v4285_v39  ;;  %2232 = vst [vmem:[#allocation5 + $0x68] sm:$0xff] %v2200_v16  ;;  %v2121_v48 = vpop.f32.mrf.mxu2 }
 0x39b   :  { %v2122_v24 = vadd.f32 %v2121_v48, %v4289_v52 }
 0x39c   :  { %v2159_v6 = vpop.f32.mrf.mxu3  ;;  %v2199_v27 = vadd.f32 %v4325_v61, %v2040_v1  ;;  %v2083_v2 = vpop.f32.mrf.mxu1 }
 0x39d   :  { %v2160_v57 = vadd.f32 %v2159_v6, %v4283_v43  ;;  %v2084_v49 = vadd.f32 %v2083_v2, %v4295_v4  ;;  %v2201_v51 = vadd.f32 %v4331_v42, %v2122_v24 }
 0x39e   :  { %2231 = vst [vmem:[#allocation5 + $0x60] sm:$0xff] %v2199_v27  ;;  %v4417_v27 = vmov 0.0  }
 0x39f   :  { %v2198_v26 = vadd.f32 %v4333_v22, %v2160_v57  ;;  %v2204_v33 = vadd.f32 %v4327_v29, %v2084_v49  ;;  %2233 = vst [vmem:[#allocation5 + $0x70] sm:$0xff] %v2201_v51 }
 0x3a1   :  { %2230 = vst [vmem:[#allocation5 + $0x58] sm:$0xff] %v2198_v26  ;;  %v2042_v25 = vpop.f32.mrf.mxu0  ;;  %v4411_v26 = vmov 0.0  }
 0x3a2   :  { %v2043_v9 = vadd.f32 %v2042_v25, %v4293_v3  ;;  %2236 = vst [vmem:[#allocation5 + $0x88] sm:$0xff] %v2204_v33  ;;  %v2124_v52 = vpop.f32.mrf.mxu2 }
 0x3a3   :  { %v2125_v28 = vadd.f32 %v2124_v52, %v4297_v5 }
 0x3a4   :  { %v2162_v43 = vpop.f32.mrf.mxu3  ;;  %v2203_v10 = vadd.f32 %v4325_v61, %v2043_v9  ;;  %v2086_v4 = vpop.f32.mrf.mxu1 }
 0x3a5   :  { %v2163_v39 = vadd.f32 %v2162_v43, %v4291_v60  ;;  %v2087_v50 = vadd.f32 %v2086_v4, %v4303_v7  ;;  %v2205_v53 = vadd.f32 %v4331_v42, %v2125_v28 }
 0x3a6   :  { %2235 = vst [vmem:[#allocation5 + $0x80] sm:$0xff] %v2203_v10 }
 0x3a7   :  { %v2202_v35 = vadd.f32 %v4333_v22, %v2163_v39  ;;  %v2208_v54 = vadd.f32 %v4327_v29, %v2087_v50  ;;  %2237 = vst [vmem:[#allocation5 + $0x90] sm:$0xff] %v2205_v53 }
 0x3a9   :  { %2234 = vst [vmem:[#allocation5 + $0x78] sm:$0xff] %v2202_v35  ;;  %v2045_v44 = vpop.f32.mrf.mxu0 }
 0x3aa   :  { %v2046_v47 = vadd.f32 %v2045_v44, %v4301_v34  ;;  %2240 = vst [vmem:[#allocation5 + $0xa8] sm:$0xff] %v2208_v54  ;;  %v2127_v34 = vpop.f32.mrf.mxu2 }
 0x3ab   :  { %v2128_v59 = vadd.f32 %v2127_v34, %v4305_v8 }
 0x3ac   :  { %v2165_v60 = vpop.f32.mrf.mxu3  ;;  %v2089_v38 = vpop.f32.mrf.mxu1 }
 0x3ad   :  { %v2166_v3 = vadd.f32 %v2165_v60, %v4299_v0  ;;  %v2207_v0 = vadd.f32 %v4325_v61, %v2046_v47  ;;  %v2090_v41 = vadd.f32 %v2089_v38, %v4311_v15  ;;  %v2209_v32 = vadd.f32 %v4331_v42, %v2128_v59 }
 0x3af   :  { %v2206_v5 = vadd.f32 %v4333_v22, %v2166_v3  ;;  %2239 = vst [vmem:[#allocation5 + $0xa0] sm:$0xff] %v2207_v0  ;;  %v2212_v46 = vadd.f32 %v4327_v29, %v2090_v41 }
 0x3b0   :  { %2241 = vst [vmem:[#allocation5 + $0xb0] sm:$0xff] %v2209_v32 }
 0x3b1   :  { %2238 = vst [vmem:[#allocation5 + $0x98] sm:$0xff] %v2206_v5  ;;  %v2048_v37 = vpop.f32.mrf.mxu0 }
 0x3b2   :  { %v2049_v30 = vadd.f32 %v2048_v37, %v4309_v14  ;;  %2244 = vst [vmem:[#allocation5 + $0xc8] sm:$0xff] %v2212_v46  ;;  %v2130_v14 = vpop.f32.mrf.mxu2 }
 0x3b3   :  { %v2131_v56 = vadd.f32 %v2130_v14, %v4313_v12 }
 0x3b4   :  { %v2168_v7 = vpop.f32.mrf.mxu3  ;;  %v2092_v23 = vpop.f32.mrf.mxu1 }
 0x3b5   :  { %v2169_v55 = vadd.f32 %v2168_v7, %v4307_v11  ;;  %v2211_v11 = vadd.f32 %v4325_v61, %v2049_v30  ;;  %v2093_v62 = vadd.f32 %v2092_v23, %v4319_v18  ;;  %v2213_v57 = vadd.f32 %v4331_v42, %v2131_v56 }
 0x3b7   :  { %v2210_v8 = vadd.f32 %v4333_v22, %v2169_v55  ;;  %2243 = vst [vmem:[#allocation5 + $0xc0] sm:$0xff] %v2211_v11  ;;  %v2216_v1 = vadd.f32 %v4327_v29, %v2093_v62  ;;  %v4415_v29 = vmov 0.0  }
 0x3b8   :  { %2245 = vst [vmem:[#allocation5 + $0xd0] sm:$0xff] %v2213_v57 }
 0x3b9   :  { %2242 = vst [vmem:[#allocation5 + $0xb8] sm:$0xff] %v2210_v8  ;;  %v2051_v20 = vpop.f32.mrf.mxu0 }
 0x3ba   :  { %v2052_v6 = vadd.f32 %v2051_v20, %v4317_v17  ;;  %2248 = vst [vmem:[#allocation5 + $0xe8] sm:$0xff] %v2216_v1  ;;  %v2133_v12 = vpop.f32.mrf.mxu2 }
 0x3bb   :  { %v2134_v36 = vadd.f32 %v2133_v12, %v4321_v21 }
 0x3bc   :  { %v2171_v15 = vpop.f32.mrf.mxu3  ;;  %v2215_v63 = vadd.f32 %v4325_v61, %v2052_v6  ;;  %v4413_v61 = vmov 0.0  }
 0x3bd   :  { %v2172_v19 = vadd.f32 %v2171_v15, %v4315_v13  ;;  %v2217_v18 = vadd.f32 %v4331_v42, %v2134_v36 }
 0x3be   :  { %2247 = vst [vmem:[#allocation5 + $0xe0] sm:$0xff] %v2215_v63 }
 0x3bf   :  { %v2214_v58 = vadd.f32 %v4333_v22, %v2172_v19  ;;  %2249 = vst [vmem:[#allocation5 + $0xf0] sm:$0xff] %v2217_v18 }
 0x3c1   :  { %2246 = vst [vmem:[#allocation5 + $0xd8] sm:$0xff] %v2214_v58 }
 0x3c4   :  { %v2174_v13 = vpop.f32.mrf.mxu3 }
 0x3c5   :  { %v2175_v17 = vadd.f32 %v2174_v13, %v4323_v40 }
 0x3c7   :  { %v2218_v31 = vadd.f32 %v4333_v22, %v2175_v17 }
 0x3c9   :  { %2250 = vst [vmem:[#allocation5 + $0xf8] sm:$0xff] %v2218_v31 }
 0x3ca LB: > { %v2330_v21 = vld [vmem:[#allocation19 + $0x1e0] sm:$0xff]  ;;  %v2331_v40 = vld [vmem:[#allocation19 + $0x1e8] sm:$0xff]  ;;  %v2332_v42 = vld [vmem:[#allocation19 + $0x1f0] sm:$0xff]  ;;  %s2934_s9 = sshll.u32 %s3554_s0, 5  ;;  %s2269_s21 = ssub.s32 7, %s3554_s0  ;;  %s3554_s0 = sphi %s4419_s0, %s2264_s0   ;;  %v3550_v27 = vphi %v4417_v27, %v4540_v27   ;;  %v3546_v29 = vphi %v4415_v29, %v4599_v29   ;;  %v3542_v61 = vphi %v4413_v61, %v2697_v61   ;;  %v3538_v26 = vphi %v4411_v26, %v2695_v26  }
 0x3cb   : > { %2341 = vmatpush.msra.mxu0 %v2330_v21  ;;  %2361 = vmatpush.msra.mxu1 %v2331_v40  ;;  %v2326_v22 = vld [vmem:[#allocation19 + $0x1c0] sm:$0xff]  ;;  %v2327_v16 = vld [vmem:[#allocation19 + $0x1c8] sm:$0xff]  ;;  %v2328_v48 = vld [vmem:[#allocation19 + $0x1d0] sm:$0xff]  ;;  %s4445_s1 = scalar_lea.vmem [#allocation4], %s2934_s9  ;;  %s2935_s24 = sshll.u32 %s2269_s21, 5 }
 0x3cc   : > { %2381 = vmatpush.msra.mxu2 %v2332_v42  ;;  %v2322_v43 = vld [vmem:[#allocation19 + $0x1a0] sm:$0xff]  ;;  %v2323_v24 = vld [vmem:[#allocation19 + $0x1a8] sm:$0xff]  ;;  %v2324_v39 = vld [vmem:[#allocation19 + $0x1b0] sm:$0xff]  ;;  %s4493_s25 = scalar_lea.vmem [#allocation5], %s2935_s24  ;;  %s2930_s13 = sshll.u32 %s3554_s0, 3 }
 0x3cd   : > { %2342 = vmatpush.msra.mxu0 %v2326_v22  ;;  %2362 = vmatpush.msra.mxu1 %v2327_v16  ;;  %v2318_v25 = vld [vmem:[#allocation19 + $0x180] sm:$0xff]  ;;  %v2319_v2 = vld [vmem:[#allocation19 + $0x188] sm:$0xff]  ;;  %v2320_v9 = vld [vmem:[#allocation19 + $0x190] sm:$0xff]  ;;  %s2699_s24 = scalar_lea.vmem %s4583_s17, %s2930_s13  ;;  %s2931_s15 = sshll.u32 %s2269_s21, 3 }
 0x3ce   : > { %2382 = vmatpush.msra.mxu2 %v2328_v48  ;;  %v2314_v49 = vld [vmem:[#allocation19 + $0x160] sm:$0xff]  ;;  %v2315_v51 = vld [vmem:[#allocation19 + $0x168] sm:$0xff]  ;;  %v2316_v35 = vld [vmem:[#allocation19 + $0x170] sm:$0xff]  ;;  %s2741_s10 = scalar_lea.vmem %s4583_s17, %s2931_s15  ;;  %s2264_s0 = sadd.s32 1, %s3554_s0  }
 0x3cf   : > { %2343 = vmatpush.msra.mxu0 %v2322_v43  ;;  %2363 = vmatpush.msra.mxu1 %v2323_v24  ;;  %v2310_v10 = vld [vmem:[#allocation19 + $0x140] sm:$0xff]  ;;  %v2311_v33 = vld [vmem:[#allocation19 + $0x148] sm:$0xff]  ;;  %v2333_v52 = vld [vmem:[#allocation19 + $0x1f8] sm:$0xff]  ;;  %p2261_p1 = scmp.ge.s32.totalorder %s2264_s0, 8  }
 0x3d0   : > { %2383 = vmatpush.msra.mxu2 %v2324_v39  ;;  %v2312_v60 = vld [vmem:[#allocation19 + $0x150] sm:$0xff]  ;;  %v2329_v28 = vld [vmem:[#allocation19 + $0x1d8] sm:$0xff]  ;;  %v2306_v3 = vld [vmem:[#allocation19 + $0x120] sm:$0xff]  ;;  %2401 = vmatpush.msra.mxu3 %v2333_v52 }
 0x3d1   : > { %2344 = vmatpush.msra.mxu0 %v2318_v25  ;;  %2364 = vmatpush.msra.mxu1 %v2319_v2  ;;  %v2307_v44 = vld [vmem:[#allocation19 + $0x128] sm:$0xff]  ;;  %v2308_v4 = vld [vmem:[#allocation19 + $0x130] sm:$0xff]  ;;  %v2325_v45 = vld [vmem:[#allocation19 + $0x1b8] sm:$0xff] }
 0x3d2   : > { %2384 = vmatpush.msra.mxu2 %v2320_v9  ;;  %v2302_v47 = vld [vmem:[#allocation19 + $0x100] sm:$0xff]  ;;  %v2303_v50 = vld [vmem:[#allocation19 + $0x108] sm:$0xff]  ;;  %2402 = vmatpush.msra.mxu3 %v2329_v28  ;;  %v2304_v53 = vld [vmem:[#allocation19 + $0x110] sm:$0xff] }
 0x3d3   : > { %2345 = vmatpush.msra.mxu0 %v2314_v49  ;;  %2365 = vmatpush.msra.mxu1 %v2315_v51  ;;  %v2321_v5 = vld [vmem:[#allocation19 + $0x198] sm:$0xff]  ;;  %v2298_v0 = vld [vmem:[#allocation19 + $0xe0] sm:$0xff]  ;;  %v2299_v54 = vld [vmem:[#allocation19 + $0xe8] sm:$0xff] }
 0x3d4   : > { %2385 = vmatpush.msra.mxu2 %v2316_v35  ;;  %2403 = vmatpush.msra.mxu3 %v2325_v45  ;;  %v2300_v34 = vld [vmem:[#allocation19 + $0xf0] sm:$0xff]  ;;  %v2317_v7 = vld [vmem:[#allocation19 + $0x178] sm:$0xff]  ;;  %v2294_v59 = vld [vmem:[#allocation19 + $0xc0] sm:$0xff] }
 0x3d5   : > { %2346 = vmatpush.msra.mxu0 %v2310_v10  ;;  %2366 = vmatpush.msra.mxu1 %v2311_v33  ;;  %v2295_v55 = vld [vmem:[#allocation19 + $0xc8] sm:$0xff]  ;;  %v2296_v37 = vld [vmem:[#allocation19 + $0xd0] sm:$0xff]  ;;  %v2313_v38 = vld [vmem:[#allocation19 + $0x158] sm:$0xff] }
 0x3d6   : > { %2386 = vmatpush.msra.mxu2 %v2312_v60  ;;  %2404 = vmatpush.msra.mxu3 %v2321_v5  ;;  %v2290_v30 = vld [vmem:[#allocation19 + $0xa0] sm:$0xff]  ;;  %v2291_v41 = vld [vmem:[#allocation19 + $0xa8] sm:$0xff]  ;;  %v2292_v32 = vld [vmem:[#allocation19 + $0xb0] sm:$0xff] }
 0x3d7   : > { %2347 = vmatpush.msra.mxu0 %v2306_v3  ;;  %2367 = vmatpush.msra.mxu1 %v2307_v44  ;;  %v2309_v8 = vld [vmem:[#allocation19 + $0x138] sm:$0xff]  ;;  %v2286_v11 = vld [vmem:[#allocation19 + $0x80] sm:$0xff]  ;;  %v2287_v46 = vld [vmem:[#allocation19 + $0x88] sm:$0xff] }
 0x3d8   : > { %2387 = vmatpush.msra.mxu2 %v2308_v4  ;;  %2405 = vmatpush.msra.mxu3 %v2317_v7  ;;  %v2288_v14 = vld [vmem:[#allocation19 + $0x90] sm:$0xff]  ;;  %v2305_v15 = vld [vmem:[#allocation19 + $0x118] sm:$0xff]  ;;  %v2282_v56 = vld [vmem:[#allocation19 + $0x60] sm:$0xff] }
 0x3d9   : > { %2348 = vmatpush.msra.mxu0 %v2302_v47  ;;  %2368 = vmatpush.msra.mxu1 %v2303_v50  ;;  %v2283_v19 = vld [vmem:[#allocation19 + $0x68] sm:$0xff]  ;;  %v2284_v20 = vld [vmem:[#allocation19 + $0x70] sm:$0xff]  ;;  %v2301_v23 = vld [vmem:[#allocation19 + $0xf8] sm:$0xff] }
 0x3da   : > { %2388 = vmatpush.msra.mxu2 %v2304_v53  ;;  %2406 = vmatpush.msra.mxu3 %v2313_v38  ;;  %v2278_v6 = vld [vmem:[#allocation19 + $0x40] sm:$0xff]  ;;  %v2279_v62 = vld [vmem:[#allocation19 + $0x48] sm:$0xff]  ;;  %v2280_v57 = vld [vmem:[#allocation19 + $0x50] sm:$0xff] }
 0x3db   : > { %2349 = vmatpush.msra.mxu0 %v2298_v0  ;;  %2369 = vmatpush.msra.mxu1 %v2299_v54  ;;  %v2297_v58 = vld [vmem:[#allocation19 + $0xd8] sm:$0xff]  ;;  %v2274_v63 = vld [vmem:[#allocation19 + $0x20] sm:$0xff]  ;;  %v2275_v1 = vld [vmem:[#allocation19 + $0x28] sm:$0xff] }
 0x3dc   : > { %2389 = vmatpush.msra.mxu2 %v2300_v34  ;;  %2407 = vmatpush.msra.mxu3 %v2309_v8  ;;  %v2276_v12 = vld [vmem:[#allocation19 + $0x30] sm:$0xff]  ;;  %v2293_v13 = vld [vmem:[#allocation19 + $0xb8] sm:$0xff]  ;;  %v2270_v36 = vld [vmem:[#allocation19] sm:$0xff] }
 0x3dd   : > { %2350 = vmatpush.msra.mxu0 %v2294_v59  ;;  %2370 = vmatpush.msra.mxu1 %v2295_v55  ;;  %v2271_v17 = vld [vmem:[#allocation19 + $0x8] sm:$0xff]  ;;  %v2272_v18 = vld [vmem:[#allocation19 + $0x10] sm:$0xff]  ;;  %v2289_v22 = vld [vmem:[#allocation19 + $0x98] sm:$0xff] }
 0x3de   : > { %2390 = vmatpush.msra.mxu2 %v2296_v37  ;;  %2408 = vmatpush.msra.mxu3 %v2305_v15  ;;  %v2481_v31 = vld [vmem:[#allocation25 + $0x1e0] sm:$0xff]  ;;  %v2482_v21 = vld [vmem:[#allocation25 + $0x1e8] sm:$0xff]  ;;  %v2483_v40 = vld [vmem:[#allocation25 + $0x1f0] sm:$0xff] }
 0x3df   : > { %2351 = vmatpush.msra.mxu0 %v2290_v30  ;;  %2371 = vmatpush.msra.mxu1 %v2291_v41  ;;  %v2477_v42 = vld [vmem:[#allocation25 + $0x1c0] sm:$0xff]  ;;  %v2478_v16 = vld [vmem:[#allocation25 + $0x1c8] sm:$0xff]  ;;  %v2479_v48 = vld [vmem:[#allocation25 + $0x1d0] sm:$0xff] }
 0x3e0   : > { %2391 = vmatpush.msra.mxu2 %v2292_v32  ;;  %2409 = vmatpush.msra.mxu3 %v2301_v23  ;;  %v2473_v43 = vld [vmem:[#allocation25 + $0x1a0] sm:$0xff]  ;;  %v2474_v24 = vld [vmem:[#allocation25 + $0x1a8] sm:$0xff]  ;;  %v2475_v39 = vld [vmem:[#allocation25 + $0x1b0] sm:$0xff] }
 0x3e1   : > { %2352 = vmatpush.msra.mxu0 %v2286_v11  ;;  %2372 = vmatpush.msra.mxu1 %v2287_v46  ;;  %v2469_v25 = vld [vmem:[#allocation25 + $0x180] sm:$0xff]  ;;  %v2285_v2 = vld [vmem:[#allocation19 + $0x78] sm:$0xff]  ;;  %v2470_v9 = vld [vmem:[#allocation25 + $0x188] sm:$0xff] }
 0x3e2   : > { %2392 = vmatpush.msra.mxu2 %v2288_v14  ;;  %2410 = vmatpush.msra.mxu3 %v2297_v58  ;;  %v2471_v49 = vld [vmem:[#allocation25 + $0x190] sm:$0xff]  ;;  %v2465_v35 = vld [vmem:[#allocation25 + $0x160] sm:$0xff]  ;;  %v2466_v10 = vld [vmem:[#allocation25 + $0x168] sm:$0xff] }
 0x3e3   : > { %2353 = vmatpush.msra.mxu0 %v2282_v56  ;;  %2373 = vmatpush.msra.mxu1 %v2283_v19  ;;  %v2281_v51 = vld [vmem:[#allocation19 + $0x58] sm:$0xff]  ;;  %v2461_v60 = vld [vmem:[#allocation25 + $0x140] sm:$0xff]  ;;  %v2462_v28 = vld [vmem:[#allocation25 + $0x148] sm:$0xff] }
 0x3e4   : > { %2393 = vmatpush.msra.mxu2 %v2284_v20  ;;  %2411 = vmatpush.msra.mxu3 %v2293_v13  ;;  %v2467_v33 = vld [vmem:[#allocation25 + $0x170] sm:$0xff]  ;;  %v2457_v4 = vld [vmem:[#allocation25 + $0x120] sm:$0xff]  ;;  %v2458_v45 = vld [vmem:[#allocation25 + $0x128] sm:$0xff] }
 0x3e5   : > { %2354 = vmatpush.msra.mxu0 %v2278_v6  ;;  %2374 = vmatpush.msra.mxu1 %v2279_v62  ;;  %v2277_v52 = vld [vmem:[#allocation19 + $0x38] sm:$0xff]  ;;  %v2453_v53 = vld [vmem:[#allocation25 + $0x100] sm:$0xff]  ;;  %v2454_v5 = vld [vmem:[#allocation25 + $0x108] sm:$0xff] }
 0x3e6   : > { %2394 = vmatpush.msra.mxu2 %v2280_v57  ;;  %2412 = vmatpush.msra.mxu3 %v2289_v22  ;;  %v2463_v3 = vld [vmem:[#allocation25 + $0x150] sm:$0xff]  ;;  %v2484_v50 = vld [vmem:[#allocation25 + $0x1f8] sm:$0xff]  ;;  %v2449_v54 = vld [vmem:[#allocation25 + $0xe0] sm:$0xff] }
 0x3e7   : > { %2355 = vmatpush.msra.mxu0 %v2274_v63  ;;  %2375 = vmatpush.msra.mxu1 %v2275_v1  ;;  %v2273_v44 = vld [vmem:[#allocation19 + $0x18] sm:$0xff]  ;;  %v2450_v7 = vld [vmem:[#allocation25 + $0xe8] sm:$0xff]  ;;  %v2445_v55 = vld [vmem:[#allocation25 + $0xc0] sm:$0xff] }
 0x3e8   : > { %2395 = vmatpush.msra.mxu2 %v2276_v12  ;;  %2413 = vmatpush.msra.mxu3 %v2285_v2  ;;  %v2459_v47 = vld [vmem:[#allocation25 + $0x130] sm:$0xff]  ;;  %v2480_v34 = vld [vmem:[#allocation25 + $0x1d8] sm:$0xff]  ;;  %v2446_v38 = vld [vmem:[#allocation25 + $0xc8] sm:$0xff] }
 0x3e9   : > { %2356 = vmatpush.msra.mxu0 %v2270_v36  ;;  %2376 = vmatpush.msra.mxu1 %v2271_v17  ;;  %v2455_v0 = vld [vmem:[#allocation25 + $0x110] sm:$0xff]  ;;  %v2476_v37 = vld [vmem:[#allocation25 + $0x1b8] sm:$0xff]  ;;  %v2441_v41 = vld [vmem:[#allocation25 + $0xa0] sm:$0xff] }
 0x3ea   : > { %2396 = vmatpush.msra.mxu2 %v2272_v18  ;;  %2377 = vmatmul.f32.vlgmr.msra.gmra.mxu1 %v3550_v27  ;;  %v2451_v59 = vld [vmem:[#allocation25 + $0xf0] sm:$0xff]  ;;  %v2472_v32 = vld [vmem:[#allocation25 + $0x198] sm:$0xff]  ;;  %v2442_v8 = vld [vmem:[#allocation25 + $0xa8] sm:$0xff] }
 0x3eb   : > { %2492 = vmatpush.msrb.mxu0 %v2481_v31  ;;  %2512 = vmatpush.msrb.mxu1 %v2482_v21  ;;  %v2447_v30 = vld [vmem:[#allocation25 + $0xd0] sm:$0xff]  ;;  %v2437_v46 = vld [vmem:[#allocation25 + $0x80] sm:$0xff]  ;;  %v2438_v14 = vld [vmem:[#allocation25 + $0x88] sm:$0xff] }
 0x3ec   : > { %2532 = vmatpush.msrb.mxu2 %v2483_v40  ;;  %2357 = vmatmul.f32.vlgmr.msra.gmra.mxu0 %v3550_v27  ;;  %v2443_v11 = vld [vmem:[#allocation25 + $0xb0] sm:$0xff]  ;;  %v2468_v56 = vld [vmem:[#allocation25 + $0x178] sm:$0xff]  ;;  %v2433_v19 = vld [vmem:[#allocation25 + $0x60] sm:$0xff] }
 0x3ed   : > { %2493 = vmatpush.msrb.mxu0 %v2477_v42  ;;  %2513 = vmatpush.msrb.mxu1 %v2478_v16  ;;  %v2439_v15 = vld [vmem:[#allocation25 + $0x90] sm:$0xff]  ;;  %v2434_v20 = vld [vmem:[#allocation25 + $0x68] sm:$0xff]  ;;  %v2464_v6 = vld [vmem:[#allocation25 + $0x158] sm:$0xff] }
 0x3ee   : > { %2533 = vmatpush.msrb.mxu2 %v2479_v48  ;;  %2414 = vmatpush.msra.mxu3 %v2281_v51  ;;  %v2435_v23 = vld [vmem:[#allocation25 + $0x70] sm:$0xff]  ;;  %v2429_v62 = vld [vmem:[#allocation25 + $0x40] sm:$0xff]  ;;  %v2430_v57 = vld [vmem:[#allocation25 + $0x48] sm:$0xff] }
 0x3ef   : > { %2494 = vmatpush.msrb.mxu0 %v2473_v43  ;;  %2514 = vmatpush.msrb.mxu1 %v2474_v24  ;;  %v2431_v58 = vld [vmem:[#allocation25 + $0x50] sm:$0xff]  ;;  %v2460_v63 = vld [vmem:[#allocation25 + $0x138] sm:$0xff]  ;;  %v2425_v1 = vld [vmem:[#allocation25 + $0x20] sm:$0xff] }
 0x3f0   : > { %2534 = vmatpush.msrb.mxu2 %v2475_v39  ;;  %2415 = vmatpush.msra.mxu3 %v2277_v52  ;;  %v2426_v12 = vld [vmem:[#allocation25 + $0x28] sm:$0xff]  ;;  %v2427_v13 = vld [vmem:[#allocation25 + $0x30] sm:$0xff]  ;;  %v2421_v36 = vld [vmem:[#allocation25] sm:$0xff] }
 0x3f1   : > { %2495 = vmatpush.msrb.mxu0 %v2469_v25  ;;  %2515 = vmatpush.msrb.mxu1 %v2470_v9  ;;  %v2422_v17 = vld [vmem:[#allocation25 + $0x8] sm:$0xff]  ;;  %v2423_v18 = vld [vmem:[#allocation25 + $0x10] sm:$0xff]  ;;  %v2452_v31 = vld [vmem:[#allocation25 + $0xf8] sm:$0xff] }
 0x3f2   : > { %2535 = vmatpush.msrb.mxu2 %v2471_v49  ;;  %2416 = vmatpush.msra.mxu3 %v2273_v44  ;;  %v2448_v21 = vld [vmem:[#allocation25 + $0xd8] sm:$0xff]  ;;  %v2715_v25 = vld [vmem:[#allocation28 + $0x68] sm:$0xff]  ;;  %v2714_v2 = vld [vmem:[#allocation28 + $0x60] sm:$0xff] }
 0x3f3   : > { %2496 = vmatpush.msrb.mxu0 %v2465_v35  ;;  %2516 = vmatpush.msrb.mxu1 %v2466_v10  ;;  %v2444_v40 = vld [vmem:[#allocation25 + $0xb8] sm:$0xff]  ;;  %v2711_v10 = vld [vmem:[#allocation28 + $0x48] sm:$0xff] }
 0x3f4   : > { %2536 = vmatpush.msrb.mxu2 %v2467_v33  ;;  %2552 = vmatpush.msrb.mxu3 %v2484_v50  ;;  %v2440_v42 = vld [vmem:[#allocation25 + $0x98] sm:$0xff] }
 0x3f5   : > { %2497 = vmatpush.msrb.mxu0 %v2461_v60  ;;  %2517 = vmatpush.msrb.mxu1 %v2462_v28  ;;  %v2436_v22 = vld [vmem:[#allocation25 + $0x78] sm:$0xff]  ;;  %v2710_v60 = vld [vmem:[#allocation28 + $0x40] sm:$0xff] }
 0x3f6   : > { %2537 = vmatpush.msrb.mxu2 %v2463_v3  ;;  %2553 = vmatpush.msrb.mxu3 %v2480_v34  ;;  %v2432_v16 = vld [vmem:[#allocation25 + $0x58] sm:$0xff]  ;;  %v2758_v34 = vld [vmem:[%s4582_s16 + $0x70] sm:$0xff] }
 0x3f7   : > { %2498 = vmatpush.msrb.mxu0 %v2457_v4  ;;  %2518 = vmatpush.msrb.mxu1 %v2458_v45  ;;  %v2428_v48 = vld [vmem:[#allocation25 + $0x38] sm:$0xff] }
 0x3f8   : > { %2538 = vmatpush.msrb.mxu2 %v2459_v47  ;;  %2554 = vmatpush.msrb.mxu3 %v2476_v37  ;;  %v2424_v43 = vld [vmem:[#allocation25 + $0x18] sm:$0xff]  ;;  %v2707_v47 = vld [vmem:[#allocation28 + $0x28] sm:$0xff] }
 0x3f9   : > { %2397 = vmatmul.f32.vlgmr.msra.gmra.mxu2 %v3550_v27  ;;  %2499 = vmatpush.msrb.mxu0 %v2453_v53  ;;  %v2717_v24 = vld [vmem:[#allocation28 + $0x78] sm:$0xff]  ;;  %v2716_v39 = vld [vmem:[#allocation28 + $0x70] sm:$0xff]  ;;  %v2706_v53 = vld [vmem:[#allocation28 + $0x20] sm:$0xff] }
 0x3fa   : > { %2519 = vmatpush.msrb.mxu1 %v2454_v5  ;;  %2539 = vmatpush.msrb.mxu2 %v2455_v0  ;;  %v2713_v9 = vld [vmem:[#allocation28 + $0x58] sm:$0xff]  ;;  %v2712_v51 = vld [vmem:[#allocation28 + $0x50] sm:$0xff]  ;;  %v2759_v0 = vld [vmem:[%s4582_s16 + $0x78] sm:$0xff] }
 0x3fb   : > { %2500 = vmatpush.msrb.mxu0 %v2449_v54  ;;  %2555 = vmatpush.msrb.mxu3 %v2472_v32  ;;  %v2338_v49 = vld [vmem:[%s4445_s1 + $0x8] sm:$0xff]  ;;  %v2337_v33 = vld [vmem:[%s4445_s1] sm:$0xff] }
 0x3fc   : > { %2520 = vmatpush.msrb.mxu1 %v2450_v7  ;;  %2540 = vmatpush.msrb.mxu2 %v2451_v59  ;;  %v2709_v44 = vld [vmem:[#allocation28 + $0x38] sm:$0xff]  ;;  %v2708_v45 = vld [vmem:[#allocation28 + $0x30] sm:$0xff]  ;;  %v2339_v59 = vld [vmem:[%s4445_s1 + $0x10] sm:$0xff] }
 0x3fd   : > { %2501 = vmatpush.msrb.mxu0 %v2445_v55  ;;  %2417 = vmatmul.f32.vlgmr.msra.gmra.mxu3 %v3550_v27  ;;  %v2456_v27 = vld [vmem:[#allocation25 + $0x118] sm:$0xff] }
 0x3fe   : > { %2521 = vmatpush.msrb.mxu1 %v2446_v38  ;;  %2541 = vmatpush.msrb.mxu2 %v2447_v30  ;;  %v2705_v54 = vld [vmem:[#allocation28 + $0x18] sm:$0xff]  ;;  %v2704_v55 = vld [vmem:[#allocation28 + $0x10] sm:$0xff] }
 0x3ff   : > { %2502 = vmatpush.msrb.mxu0 %v2441_v41  ;;  %2556 = vmatpush.msrb.mxu3 %v2468_v56  ;;  %v2757_v38 = vld [vmem:[%s4582_s16 + $0x68] sm:$0xff]  ;;  %v2703_v41 = vld [vmem:[#allocation28 + $0x8] sm:$0xff] }
 0x400   : > { %2522 = vmatpush.msrb.mxu1 %v2442_v8  ;;  %2542 = vmatpush.msrb.mxu2 %v2443_v11  ;;  %v2756_v8 = vld [vmem:[%s4582_s16 + $0x60] sm:$0xff]  ;;  %v2702_v11 = vld [vmem:[#allocation28] sm:$0xff] }
 0x401   : > { %2503 = vmatpush.msrb.mxu0 %v2437_v46  ;;  %2557 = vmatpush.msrb.mxu3 %v2464_v6 }
 0x402   : > { %2523 = vmatpush.msrb.mxu1 %v2438_v14  ;;  %2543 = vmatpush.msrb.mxu2 %v2439_v15  ;;  %v2755_v15 = vld [vmem:[%s4582_s16 + $0x58] sm:$0xff] }
 0x403   : > { %2504 = vmatpush.msrb.mxu0 %v2433_v19  ;;  %2558 = vmatpush.msrb.mxu3 %v2460_v63 }
 0x404   : > { %2524 = vmatpush.msrb.mxu1 %v2434_v20  ;;  %2544 = vmatpush.msrb.mxu2 %v2435_v23  ;;  %v2754_v23 = vld [vmem:[%s4582_s16 + $0x50] sm:$0xff] }
 0x405   : > { %2505 = vmatpush.msrb.mxu0 %v2429_v62  ;;  %2559 = vmatpush.msrb.mxu3 %v2456_v27  ;;  %v2340_v62 = vld [vmem:[%s4445_s1 + $0x18] sm:$0xff] }
 0x406   : > { %2525 = vmatpush.msrb.mxu1 %v2430_v57  ;;  %2545 = vmatpush.msrb.mxu2 %v2431_v58  ;;  %v2753_v58 = vld [vmem:[%s4582_s16 + $0x48] sm:$0xff] }
 0x407   : > { %2506 = vmatpush.msrb.mxu0 %v2425_v1  ;;  %2560 = vmatpush.msrb.mxu3 %v2452_v31  ;;  %v2752_v31 = vld [vmem:[%s4582_s16 + $0x40] sm:$0xff] }
 0x408   : > { %2526 = vmatpush.msrb.mxu1 %v2426_v12  ;;  %2546 = vmatpush.msrb.mxu2 %v2427_v13 }
 0x409   : > { %2507 = vmatpush.msrb.mxu0 %v2421_v36  ;;  %2561 = vmatpush.msrb.mxu3 %v2448_v21 }
 0x40a   : > { %2527 = vmatpush.msrb.mxu1 %v2422_v17  ;;  %2547 = vmatpush.msrb.mxu2 %v2423_v18 }
 0x40b   : > { %2508 = vmatmul.f32.vlgmr.msrb.gmra.mxu0 %v3542_v61  ;;  %2528 = vmatmul.f32.vlgmr.msrb.gmra.mxu1 %v3542_v61 }
 0x40c   : > { %2548 = vmatmul.f32.vlgmr.msrb.gmra.mxu2 %v3542_v61  ;;  %2562 = vmatpush.msrb.mxu3 %v2444_v40 }
 0x40d   : > { %2718 = vmatpush.msra.mxu0 %v2717_v24  ;;  %2760 = vmatpush.msra.mxu1 %v2759_v0  ;;  %v2747_v0 = vld [vmem:[%s4582_s16 + $0x18] sm:$0xff] }
 0x40e   : > { %2563 = vmatpush.msrb.mxu3 %v2440_v42 }
 0x40f   : > { %2719 = vmatpush.msra.mxu0 %v2716_v39  ;;  %2761 = vmatpush.msra.mxu1 %v2758_v34 }
 0x410   : > { %2564 = vmatpush.msrb.mxu3 %v2436_v22  ;;  %v2488_v22 = vld [vmem:[%s4493_s25] sm:$0xff] }
 0x411   : > { %2720 = vmatpush.msra.mxu0 %v2715_v25  ;;  %2762 = vmatpush.msra.mxu1 %v2757_v38  ;;  %v2745_v38 = vld [vmem:[%s4582_s16 + $0x8] sm:$0xff] }
 0x412   : > { %2565 = vmatpush.msrb.mxu3 %v2432_v16  ;;  %v2489_v16 = vld [vmem:[%s4493_s25 + $0x8] sm:$0xff] }
 0x413   : > { %2721 = vmatpush.msra.mxu0 %v2714_v2  ;;  %2763 = vmatpush.msra.mxu1 %v2756_v8 }
 0x414   : > { %2566 = vmatpush.msrb.mxu3 %v2428_v48 }
 0x415   : > { %2722 = vmatpush.msra.mxu0 %v2713_v9  ;;  %2764 = vmatpush.msra.mxu1 %v2755_v15 }
 0x416   : > { %2567 = vmatpush.msrb.mxu3 %v2424_v43  ;;  %v2751_v43 = vld [vmem:[%s4582_s16 + $0x38] sm:$0xff] }
 0x417   : > { %2568 = vmatmul.f32.vlgmr.msrb.gmra.mxu3 %v3542_v61  ;;  %2723 = vmatpush.msra.mxu0 %v2712_v51 }
 0x418   : > { %2765 = vmatpush.msra.mxu1 %v2754_v23 }
 0x419   : > { %2724 = vmatpush.msra.mxu0 %v2711_v10 }
 0x41a   : > { %2766 = vmatpush.msra.mxu1 %v2753_v58 }
 0x41b   : > { %2725 = vmatpush.msra.mxu0 %v2710_v60 }
 0x41c   : > { %2767 = vmatpush.msra.mxu1 %v2752_v31 }
 0x41d   : > { %2726 = vmatpush.msra.mxu0 %v2709_v44 }
 0x41e   : > { %2768 = vmatpush.msra.mxu1 %v2751_v43 }
 0x41f   : > { %2727 = vmatpush.msra.mxu0 %v2708_v45  ;;  %v2748_v45 = vld [vmem:[%s4582_s16 + $0x20] sm:$0xff] }
 0x421   : > { %2728 = vmatpush.msra.mxu0 %v2707_v47 }
 0x423   : > { %2729 = vmatpush.msra.mxu0 %v2706_v53  ;;  %v2490_v53 = vld [vmem:[%s4493_s25 + $0x10] sm:$0xff] }
 0x425   : > { %2730 = vmatpush.msra.mxu0 %v2705_v54 }
 0x427   : > { %2731 = vmatpush.msra.mxu0 %v2704_v55 }
 0x429   : > { %2732 = vmatpush.msra.mxu0 %v2703_v41 }
 0x42b   : > { %2733 = vmatpush.msra.mxu0 %v2702_v11 }
 0x467   : > { %v2378_v35 = vpop.f32.mrf.mxu1 }
 0x468   : > { %v2379_v61 = vadd.f32 %v2378_v35, %v2338_v49 }
 0x469   : > { %v2358_v28 = vpop.f32.mrf.mxu0 }
 0x46a   : > { %v2925_v52 = vmul.f32 -1.442695, %v2379_v61  ;;  %v2359_v3 = vadd.f32 %v2358_v28, %v2337_v33  ;;  %v2750_v33 = vld [vmem:[%s4582_s16 + $0x30] sm:$0xff] }
 0x46b   : > { %2769 = vmatpush.msra.mxu1 %v2750_v33 }
 0x46c   : > { %3068 = vpow2.f32 %v2925_v52  ;;  %v2924_v4 = vmul.f32 -1.442695, %v2359_v3 }
 0x46e   : > { %3070 = vpow2.f32 %v2924_v4  ;;  %v2749_v4 = vld [vmem:[%s4582_s16 + $0x28] sm:$0xff] }
 0x46f   : > { %2770 = vmatpush.msra.mxu1 %v2749_v4 }
 0x471   : > { %2771 = vmatpush.msra.mxu1 %v2748_v45 }
 0x472   : > { %v3069_v50 = vpop.eup %3068 }
 0x473   : > { %v2582_v5 = vadd.f32 1.0, %v3069_v50  ;;  %2772 = vmatpush.msra.mxu1 %v2747_v0 }
 0x474   : > { %v3071_v7 = vpop.eup %3070 }
 0x475   : > { %3072 = vrcp.f32 %v2582_v5  ;;  %v4456_v37 = vadd.f32 1.0, %v3071_v7  ;;  %v2610_v19 = vand.u32 2147483648, %v2582_v5  ;;  %v2608_v20 = vand.u32 2147483647, %v2582_v5 }
 0x476   : > { %vm2604_vm9 = vweird.f32 %v2582_v5 }
 0x477   : > { %3074 = vrcp.f32 %v4456_v37  ;;  %v2611_v12 = vor.u32 1.1754944e-38, %v2610_v19  ;;  %vm2589_vm12 = vweird.f32 %v4456_v37  ;;  %v2595_v17 = vand.u32 2147483648, %v4456_v37 }
 0x478   : > { %vm4485_vm13 = vcmp.eq.f32.partialorder %v2608_v20, 8.507059e+37  ;;  %v2593_v40 = vand.u32 2147483647, %v4456_v37 }
 0x479   : > { %v2596_v51 = vor.u32 1.1754944e-38, %v2595_v17 }
 0x47a   : > { %vm2594_vm0 = vcmp.eq.f32.partialorder %v2593_v40, 8.507059e+37 }
 0x47b   : > { %v3073_v46 = vpop.eup %3072 }
 0x47c   : > { %v2398_v30 = vpop.f32.mrf.mxu2  ;;  %v2600_v56 = vmul.f32 %v3073_v46, %v2582_v5  ;;  %vm2605_vm10 = vweird.f32 %v3073_v46 }
 0x47d   : > { %v2399_v32 = vadd.f32 %v2398_v30, %v2339_v59  ;;  %v3075_v57 = vpop.eup %3074  ;;  %vm4479_vm11 = vmor %vm2604_vm9, %vm2605_vm10  ;;  %v2746_v59 = vld [vmem:[%s4582_s16 + $0x10] sm:$0xff] }
 0x47e   : > { %v2601_v6 = vsub.f32 1.0, %v2600_v56  ;;  %v2585_v63 = vmul.f32 %v3075_v57, %v4456_v37  ;;  %vm2590_vm14 = vweird.f32 %v3075_v57  ;;  %2773 = vmatpush.msra.mxu1 %v2746_v59 }
 0x47f   : > { %v2926_v14 = vmul.f32 -1.442695, %v2399_v32  ;;  %vm4505_vm15 = vmor %vm2589_vm12, %vm2590_vm14 }
 0x480   : > { %v2602_v1 = vmul.f32 %v3073_v46, %v2601_v6  ;;  %v2418_v13 = vpop.f32.mrf.mxu3  ;;  %v2586_v21 = vsub.f32 1.0, %v2585_v63  ;;  %2774 = vmatpush.msra.mxu1 %v2745_v38 }
 0x481   : > { %3076 = vpow2.f32 %v2926_v14  ;;  %v2419_v36 = vadd.f32 %v2418_v13, %v2340_v62  ;;  %v2744_v14 = vld [vmem:[%s4582_s16] sm:$0xff] }
 0x482   : > { %v2603_v42 = vadd.f32 %v3073_v46, %v2602_v1  ;;  %v2587_v39 = vmul.f32 %v3075_v57, %v2586_v21  ;;  %2775 = vmatpush.msra.mxu1 %v2744_v14  ;;  %v2491_v1 = vld [vmem:[%s4493_s25 + $0x18] sm:$0xff] }
 0x483   : > { %3078 = vtanh.f32 %v2419_v36 }
 0x484   : > { %v2607_v25 = vsel %vm4479_vm11, %v3073_v46, %v2603_v42  ;;  %v2588_v52 = vadd.f32 %v3075_v57, %v2587_v39 }
 0x485   : > { %v2612_v35 = vsel %vm4485_vm13, %v2611_v12, %v2607_v25 }
 0x486   : > { %v2592_v3 = vsel %vm4505_vm15, %v3075_v57, %v2588_v52  ;;  %v2630_v44 = vmul.f32 %v3546_v29, %v2612_v35 }
 0x487   : > { %v3077_v48 = vpop.eup %3076  ;;  %v2597_v50 = vsel %vm2594_vm0, %v2596_v51, %v2592_v3 }
 0x488   : > { %v2583_v24 = vadd.f32 1.0, %v3077_v48  ;;  %v2509_v2 = vpop.f32.mrf.mxu0  ;;  %v2529_v9 = vpop.f32.mrf.mxu1 }
 0x489   : > { %v2510_v61 = vadd.f32 %v2509_v2, %v2488_v22  ;;  %v2530_v10 = vadd.f32 %v2529_v9, %v2489_v16  ;;  %v3079_v47 = vpop.eup %3078 }
 0x48a   : > { %3080 = vrcp.f32 %v2583_v24  ;;  %v2631_v5 = vmul.f32 %v3079_v47, %v2597_v50  ;;  %vm2619_vm1 = vweird.f32 %v2583_v24  ;;  %v2625_v32 = vand.u32 2147483648, %v2583_v24 }
 0x48b   : > { %v2927_v60 = vmul.f32 -1.442695, %v2510_v61  ;;  %v2928_v28 = vmul.f32 -1.442695, %v2530_v10  ;;  %v2623_v46 = vand.u32 2147483647, %v2583_v24 }
 0x48c   : > { %v4527_v34 = vadd.f32 %v2631_v5, %v2630_v44   ;;  %v2626_v19 = vor.u32 1.1754944e-38, %v2625_v32 }
 0x48d   : > { %3082 = vpow2.f32 %v2927_v60  ;;  %vm2624_vm4 = vcmp.eq.f32.partialorder %v2623_v46, 8.507059e+37 }
 0x48e   : > { %3084 = vpow2.f32 %v2928_v28 }
 0x48f   : > { %v2549_v29 = vpop.f32.mrf.mxu2  ;;  %3086 = vtanh.f32 %v4527_v34 }
 0x490   : > { %v3081_v54 = vpop.eup %3080  ;;  %v2550_v7 = vadd.f32 %v2549_v29, %v2490_v53 }
 0x491   : > { %v2615_v55 = vmul.f32 %v3081_v54, %v2583_v24  ;;  %vm2620_vm2 = vweird.f32 %v3081_v54 }
 0x492   : > { %v2929_v37 = vmul.f32 -1.442695, %v2550_v7  ;;  %vm2621_vm3 = vmor %vm2619_vm1, %vm2620_vm2 }
 0x493   : > { %v3083_v30 = vpop.eup %3082  ;;  %v2616_v41 = vsub.f32 1.0, %v2615_v55 }
 0x494   : > { %v3085_v8 = vpop.eup %3084  ;;  %v2644_v11 = vadd.f32 1.0, %v3083_v30  ;;  %3088 = vpow2.f32 %v2929_v37 }
 0x495   : > { %v2645_v15 = vadd.f32 1.0, %v3085_v8  ;;  %v2617_v56 = vmul.f32 %v3081_v54, %v2616_v41  ;;  %v3087_v23 = vpop.eup %3086 }
 0x496   : > { %3090 = vrcp.f32 %v2644_v11  ;;  %v2656_v42 = vand.u32 2147483647, %v2644_v11  ;;  %v2658_v22 = vand.u32 2147483648, %v2644_v11  ;;  %vm2652_vm7 = vweird.f32 %v2644_v11 }
 0x497   : > { %3092 = vrcp.f32 %v2645_v15  ;;  %v2618_v20 = vadd.f32 %v3081_v54, %v2617_v56  ;;  %v2673_v16 = vand.u32 2147483648, %v2645_v15  ;;  %v2671_v24 = vand.u32 2147483647, %v2645_v15 }
 0x498   : > { %vm2667_vm8 = vweird.f32 %v2645_v15  ;;  %v2659_v9 = vor.u32 1.1754944e-38, %v2658_v22  ;;  %vm2657_vm11 = vcmp.eq.f32.partialorder %v2656_v42, 8.507059e+37 }
 0x499   : > { %v2622_v62 = vsel %vm2621_vm3, %v3081_v54, %v2618_v20  ;;  %v2674_v51 = vor.u32 1.1754944e-38, %v2673_v16  ;;  %vm2672_vm12 = vcmp.eq.f32.partialorder %v2671_v24, 8.507059e+37  ;;  %v2700_v54 = vld [vmem:[%s2699_s24] sm:$0xff] }
 0x49a   : > { %v3089_v6 = vpop.eup %3088  ;;  %v2627_v58 = vsel %vm2624_vm4, %v2626_v19, %v2622_v62  ;;  %v2569_v17 = vpop.f32.mrf.mxu3 }
 0x49b   : > { %v2646_v57 = vadd.f32 1.0, %v3089_v6  ;;  %v4540_v27 = vmul.f32 %v3087_v23, %v2627_v58   ;;  %v2570_v21 = vadd.f32 %v2569_v17, %v2491_v1 }
 0x49c   : > { %v3091_v63 = vpop.eup %3090 }
 0x49d   : > { %v3093_v12 = vpop.eup %3092  ;;  %v2648_v13 = vmul.f32 %v3091_v63, %v2644_v11  ;;  %3094 = vrcp.f32 %v2646_v57  ;;  %v2701_v18 = vmax.f32 %v4540_v27, 0.0  ;;  %vm2653_vm5 = vweird.f32 %v3091_v63 }
 0x49e   : > { %v2663_v36 = vmul.f32 %v3093_v12, %v2645_v15  ;;  %3096 = vtanh.f32 %v2570_v21  ;;  %vm2668_vm6 = vweird.f32 %v3093_v12  ;;  %vm2654_vm9 = vmor %vm2652_vm7, %vm2653_vm5  ;;  %v2688_v45 = vand.u32 2147483648, %v2646_v57 }
 0x49f   : > { %v2649_v31 = vsub.f32 1.0, %v2648_v13  ;;  %2734 = vmatmul.f32.vlgmr.msra.gmra.mxu0 %v2701_v18  ;;  %vm2669_vm10 = vmor %vm2667_vm8, %vm2668_vm6  ;;  %vm2682_vm14 = vweird.f32 %v2646_v57  ;;  %v2686_v47 = vand.u32 2147483647, %v2646_v57 }
 0x4a0   : > { %v2664_v40 = vsub.f32 1.0, %v2663_v36  ;;  %v2689_v53 = vor.u32 1.1754944e-38, %v2688_v45 }
 0x4a1   : > { %v2650_v48 = vmul.f32 %v3091_v63, %v2649_v31  ;;  %vm2687_vm0 = vcmp.eq.f32.partialorder %v2686_v47, 8.507059e+37 }
 0x4a2   : > { %v2665_v43 = vmul.f32 %v3093_v12, %v2664_v40 }
 0x4a3   : > { %v3095_v39 = vpop.eup %3094  ;;  %v2651_v25 = vadd.f32 %v3091_v63, %v2650_v48 }
 0x4a4   : > { %v2678_v2 = vmul.f32 %v3095_v39, %v2646_v57  ;;  %v2666_v49 = vadd.f32 %v3093_v12, %v2665_v43  ;;  %v3097_v52 = vpop.eup %3096  ;;  %vm2683_vm13 = vweird.f32 %v3095_v39 }
 0x4a5   : > { %v2655_v35 = vsel %vm2654_vm9, %v3091_v63, %v2651_v25  ;;  %vm2684_vm15 = vmor %vm2682_vm14, %vm2683_vm13 }
 0x4a6   : > { %v2679_v61 = vsub.f32 1.0, %v2678_v2  ;;  %v2660_v10 = vsel %vm2657_vm11, %v2659_v9, %v2655_v35  ;;  %v2670_v33 = vsel %vm2669_vm10, %v3093_v12, %v2666_v49 }
 0x4a7   : > { %v2675_v60 = vsel %vm2672_vm12, %v2674_v51, %v2670_v33  ;;  %v2694_v3 = vmul.f32 %v3097_v52, %v2660_v10 }
 0x4a8   : > { %v2693_v28 = vmul.f32 %v3538_v26, %v2675_v60  ;;  %v2680_v44 = vmul.f32 %v3095_v39, %v2679_v61 }
 0x4aa   : > { %v2695_v26 = vadd.f32 %v2694_v3, %v2693_v28   ;;  %v2681_v4 = vadd.f32 %v3095_v39, %v2680_v44 }
 0x4ac   : > { %3098 = vtanh.f32 %v2695_v26  ;;  %v2685_v50 = vsel %vm2684_vm15, %v3095_v39, %v2681_v4 }
 0x4ad   : > { %v2690_v0 = vsel %vm2687_vm0, %v2689_v53, %v2685_v50 }
 0x4b2   : > { %v3099_v5 = vpop.eup %3098 }
 0x4b3   : > { %v2697_v61 = vmul.f32 %v3099_v5, %v2690_v0  }
 0x4b5   : > { %v2743_v29 = vmax.f32 %v2697_v61, 0.0 }
 0x4b7   : > { %2776 = vmatmul.f32.vlgmr.msra.gmra.mxu1 %v2743_v29  ;;  %v4599_v29 = vmov %v4527_v34 }
 0x51c   : > { %v2735_v7 = vpop.f32.mrf.mxu0 }
 0x51d   : > { %v2738_v59 = vadd.f32 %v2735_v7, %v2700_v54 }
 0x51f   : > { %2739 = vst [vmem:[%s2699_s24] sm:$0xff] %v2738_v59 }
 0x526   : > { %v2742_v55 = vld [vmem:[%s2741_s10] sm:$0xff] }
 0x533   :  { %2263 = sbr.rel (!%p2261_p1) target bundleno = 970 (0x3ca), region = 181 }
 0x534   : > { %v2777_v37 = vpop.f32.mrf.mxu1 }
 0x535   : > { %v2780_v38 = vadd.f32 %v2777_v37, %v2742_v55 }
 0x537   : > { %2781 = vst [vmem:[%s2741_s10] sm:$0xff] %v2780_v38 }
 0x538   :  { %2786 = vsyncpa [#allocation7], 1 }
 0x539   :  { %2787 = vsyncpa [#allocation9], 1 }
 0x53a   :  { %2788 = vsyncpa [#allocation12], 1 }
 0x53b   :  { %2789 = vsyncpa [#allocation15], 1 }
 0x53c   :  { %2790 = vsyncpa [#allocation18], 1 }
 0x53d   :  { %2791 = vsyncpa [#allocation21], 1 }
 0x53e   :  { %2792 = vsyncpa [#allocation24], 1 }
 0x53f   :  { %2793 = vsyncpa [#allocation27], 1 }

</bundles_post_ra>
